<compile_context>
chip_gen: v6e
topology: v6e:2x2x1
jax: 0.10.0
libtpu: 0.0.40
codegen_flags: <defaults>
</compile_context>

<pallas_src>
import functools

import jax
import jax.numpy as jnp
import numpy as np
from jax.experimental import pallas as pl
from jax.experimental.pallas import tpu as pltpu

C_IN = 1024       # pooled feature width (loss3 path)
HIDDEN = 2048     # cls_fc_pose width
HEAD_PAD = 128    # lane-dense fused head width (xy lanes 0:3, wpqr lanes 3:7, rest zero)


def _round_up(x, m):
    return ((x + m - 1) // m) * m


def regression_head_kernel(x_ref, w1_ref, b1_ref, wh_ref, bh_ref, out_ref):
    # x_ref: (TILE_N, 1024) f32 pooled features; cast to bf16 for a native bf16 MXU
    # pass against the bf16-resident w1 (f32 accumulation preserved).
    x = x_ref[...].astype(jnp.bfloat16)

    # cls_fc_pose: Linear(1024, 2048) + ReLU
    h = jnp.dot(x, w1_ref[...], preferred_element_type=jnp.float32) + b1_ref[...]
    h = jnp.maximum(h, 0.0)

    # TODO(synk): nn.Dropout(p=0.5) is the identity in eval mode; training-mode RNG mask
    # is not implemented.

    # Fused heads: one lane-dense matmul against the zero-padded (2048, 128) weight.
    # Columns 0:3 = cls_fc_xy, columns 3:7 = cls_fc_wpqr, columns 7:128 = zeros.
    y = jnp.dot(h, wh_ref[...], preferred_element_type=jnp.float32) + bh_ref[...]

    # F.normalize(p=2, dim=1, eps=1e-12) applied only to the 4 real wpqr lanes.
    lane = jax.lax.broadcasted_iota(jnp.int32, y.shape, dimension=1)
    q_mask = (lane >= 3) & (lane < 7)
    ss = jnp.sum(jnp.where(q_mask, y * y, 0.0), axis=1, keepdims=True)
    inv_norm = jax.lax.rsqrt(jnp.maximum(ss, 1e-24))        # == 1 / max(||q||, 1e-12)
    out_ref[...] = jnp.where(q_mask, y * inv_norm, y)


@functools.partial(jax.jit, static_argnames=("tile_n",))
def regression_head(x_nchw, params, *, tile_n=128):
    """x_nchw: (N, 1024, 7, 7) float32 (PyTorch NCHW). Returns (xy (N,3), wpqr (N,4))."""
    w1, b1, wxy, bxy, wq, bq = params
    N = x_nchw.shape[0]

    # AvgPool2d(7, stride=1) + flatten, hoisted to XLA (memory-bound either way);
    # avoids the NCHW->NHWC transpose and shrinks the kernel's streamed input 49x.
    pooled = jnp.mean(x_nchw, axis=(2, 3)).astype(jnp.float32)          # (N, 1024)

    # Batch tiling: tile_n rows per grid step (multiple of 8 for sublane alignment).
    tile_n = min(tile_n, _round_up(N, 8))
    n_pad = _round_up(N, tile_n)
    if n_pad != N:
        pooled = jnp.pad(pooled, ((0, n_pad - N), (0, 0)))

    # Weight packaging: w1 in bf16 (halves the dominant HBM read), fused head in f32.
    w1_bf16 = w1.astype(jnp.bfloat16)                                    # (1024, 2048)
    b1_row = b1.reshape(1, HIDDEN).astype(jnp.float32)
    w_head = (jnp.zeros((HIDDEN, HEAD_PAD), jnp.float32)
              .at[:, 0:3].set(wxy).at[:, 3:7].set(wq))
    b_head = (jnp.zeros((1, HEAD_PAD), jnp.float32)
              .at[:, 0:3].set(bxy.reshape(1, 3)).at[:, 3:7].set(bq.reshape(1, 4)))

    grid = (n_pad // tile_n,)
    cost = pl.CostEstimate(
        flops=2 * n_pad * C_IN * HIDDEN + 2 * n_pad * HIDDEN * HEAD_PAD,
        transcendentals=n_pad,
        bytes_accessed=(w1_bf16.size * 2 + w_head.size * 4 + b1_row.size * 4
                        + b_head.size * 4 + n_pad * C_IN * 4 + n_pad * HEAD_PAD * 4),
    )

    out = pl.pallas_call(
        regression_head_kernel,
        out_shape=jax.ShapeDtypeStruct((n_pad, HEAD_PAD), jnp.float32),
        grid_spec=pltpu.PrefetchScalarGridSpec(
            num_scalar_prefetch=0,
            grid=grid,
            in_specs=[
                pl.BlockSpec((tile_n, C_IN), lambda i: (i, 0)),          # pooled x tile
                pl.BlockSpec((C_IN, HIDDEN), lambda i: (0, 0)),          # w1 (resident)
                pl.BlockSpec((1, HIDDEN), lambda i: (0, 0)),             # b1 (resident)
                pl.BlockSpec((HIDDEN, HEAD_PAD), lambda i: (0, 0)),      # fused head W
                pl.BlockSpec((1, HEAD_PAD), lambda i: (0, 0)),           # fused head b
            ],
            out_specs=pl.BlockSpec((tile_n, HEAD_PAD), lambda i: (i, 0)),
        ),
        compiler_params=pltpu.CompilerParams(
            dimension_semantics=("parallel",),          # megacore batch split on v7x
            vmem_limit_bytes=32 * 1024 * 1024,          # fits v5e/v6e/v7x comfortably
        ),
        cost_estimate=cost,
    )(pooled, w1_bf16, b1_row, w_head, b_head)

    out_xy = out[:N, 0:3]
    out_wpqr = out[:N, 3:7]
    return out_xy, out_wpqr


def regression_head_reference(x_nchw, params):
    """Pure-JAX reference (mirrors the PyTorch eval-mode forward, f32 HIGHEST)."""
    w1, b1, wxy, bxy, wq, bq = params
    N, C, H, W = x_nchw.shape
    hi = jax.lax.Precision.HIGHEST
    pooled = jnp.mean(x_nchw.reshape(N, C, H * W), axis=2)              # AvgPool + flatten
    h = jnp.maximum(jnp.dot(pooled, w1, precision=hi) + b1.reshape(1, -1), 0.0)
    xy = jnp.dot(h, wxy, precision=hi) + bxy.reshape(1, -1)
    q = jnp.dot(h, wq, precision=hi) + bq.reshape(1, -1)
    q = q / jnp.maximum(jnp.linalg.norm(q, axis=1, keepdims=True), 1e-12)
    return xy, q


if __name__ == "__main__":
    key = jax.random.PRNGKey(0)
    k0, k1, k2, k3 = jax.random.split(key, 4)

    # loss3 path: input must be (N, 1024, 7, 7) so the pooled vector is 1024-d.
    N, C, H, W = 2, 1024, 7, 7
    x = jax.random.normal(k0, (N, C, H, W), jnp.float32)

    # Deterministic synthetic params matching weight_init_googlenet:
    #   'pose' Linear(1024,2048): weight ~ N(0, 0.01), bias = 0
    #   'XYZ'  Linear(2048,3):    weight ~ N(0, 0.5),  bias = 0
    #   'WPQR' Linear(2048,4):    weight ~ N(0, 0.5),  bias = 0
    # (stored pre-transposed as (in, out) so the computation is x @ W)
    w1 = 0.01 * jax.random.normal(k1, (C_IN, HIDDEN), jnp.float32)
    b1 = jnp.zeros((HIDDEN,), jnp.float32)
    wxy = 0.5 * jax.random.normal(k2, (HIDDEN, 3), jnp.float32)
    bxy = jnp.zeros((3,), jnp.float32)
    wq = 0.5 * jax.random.normal(k3, (HIDDEN, 4), jnp.float32)
    bq = jnp.zeros((4,), jnp.float32)
    params = (w1, b1, wxy, bxy, wq, bq)

    out_xy, out_wpqr = regression_head(x, params)
    jax.block_until_ready((out_xy, out_wpqr))

    ref_xy, ref_wpqr = regression_head_reference(x, params)
    assert out_xy.shape == (N, 3) and out_wpqr.shape == (N, 4)
    np.testing.assert_allclose(np.asarray(out_xy), np.asarray(ref_xy), rtol=2e-2, atol=2e-2)
    np.testing.assert_allclose(np.asarray(out_wpqr), np.asarray(ref_wpqr), rtol=2e-2, atol=2e-2)

    print("KERNEL_OK")
</pallas_src>

<mosaic_0001>
module attributes {stable_mosaic.version = 11 : i64} {
  func.func @regression_head_kernel(%arg0: i32, %arg1: memref<8x1024xf32, #tpu.memory_space<vmem>>, %arg2: memref<1024x2048xbf16, #tpu.memory_space<vmem>>, %arg3: memref<1x2048xf32, #tpu.memory_space<vmem>>, %arg4: memref<2048x128xf32, #tpu.memory_space<vmem>>, %arg5: memref<1x128xf32, #tpu.memory_space<vmem>>, %arg6: memref<8x128xf32, #tpu.memory_space<vmem>>) attributes {dimension_semantics = [#tpu.dimension_semantics<parallel>], iteration_bounds = array<i64: 1>, scalar_prefetch = 0 : i64, scratch_operands = 0 : i64, tpu.core_type = #tpu.core_type<tc>, window_params = [{transform_indices = @transform_0, window_bounds = array<i64: 8, 1024>}, {pipeline_mode = #tpu.pipeline_mode<synchronous>, transform_indices = @transform_1, window_bounds = array<i64: 1024, 2048>}, {pipeline_mode = #tpu.pipeline_mode<synchronous>, transform_indices = @transform_2, window_bounds = array<i64: 1, 2048>}, {pipeline_mode = #tpu.pipeline_mode<synchronous>, transform_indices = @transform_3, window_bounds = array<i64: 2048, 128>}, {pipeline_mode = #tpu.pipeline_mode<synchronous>, transform_indices = @transform_4, window_bounds = array<i64: 1, 128>}, {transform_indices = @transform_5, window_bounds = array<i64: 8, 128>}]} {
    %c0 = arith.constant 0 : index
    %c0_0 = arith.constant 0 : index
    %0 = vector.load %arg1[%c0, %c0_0] : memref<8x1024xf32, #tpu.memory_space<vmem>>, vector<8x1024xf32>
    %1 = arith.truncf %0 : vector<8x1024xf32> to vector<8x1024xbf16>
    %c0_1 = arith.constant 0 : index
    %c0_2 = arith.constant 0 : index
    %2 = vector.load %arg2[%c0_1, %c0_2] : memref<1024x2048xbf16, #tpu.memory_space<vmem>>, vector<1024x2048xbf16>
    %cst = arith.constant dense<0.000000e+00> : vector<8x2048xf32>
    %3 = tpu.matmul %1, %2, %cst {dimension_numbers = #tpu.dot_dimension_numbers<[1], [0], [0], [1], [0, 0, 1, 1], [], []>} : vector<8x1024xbf16>, vector<1024x2048xbf16>, vector<8x2048xf32> -> vector<8x2048xf32>
    %c0_3 = arith.constant 0 : index
    %c0_4 = arith.constant 0 : index
    %4 = vector.load %arg3[%c0_3, %c0_4] : memref<1x2048xf32, #tpu.memory_space<vmem>>, vector<1x2048xf32>
    %5 = vector.broadcast %4 : vector<1x2048xf32> to vector<8x2048xf32>
    %6 = arith.addf %3, %5 : vector<8x2048xf32>
    %cst_5 = arith.constant 0.000000e+00 : f32
    %7 = vector.broadcast %cst_5 : f32 to vector<8x2048xf32>
    %8 = arith.maximumf %6, %7 : vector<8x2048xf32>
    %c0_6 = arith.constant 0 : index
    %c0_7 = arith.constant 0 : index
    %9 = vector.load %arg4[%c0_6, %c0_7] : memref<2048x128xf32, #tpu.memory_space<vmem>>, vector<2048x128xf32>
    %cst_8 = arith.constant dense<0.000000e+00> : vector<8x128xf32>
    %10 = tpu.matmul %8, %9, %cst_8 {dimension_numbers = #tpu.dot_dimension_numbers<[1], [0], [0], [1], [0, 0, 1, 1], [], []>} : vector<8x2048xf32>, vector<2048x128xf32>, vector<8x128xf32> -> vector<8x128xf32>
    %c0_9 = arith.constant 0 : index
    %c0_10 = arith.constant 0 : index
    %11 = vector.load %arg5[%c0_9, %c0_10] : memref<1x128xf32, #tpu.memory_space<vmem>>, vector<1x128xf32>
    %12 = vector.broadcast %11 : vector<1x128xf32> to vector<8x128xf32>
    %13 = arith.addf %10, %12 : vector<8x128xf32>
    %14 = tpu.iota {dimensions = array<i32: 1>} : vector<8x128xi32>
    %c3_i32 = arith.constant 3 : i32
    %15 = vector.broadcast %c3_i32 : i32 to vector<8x128xi32>
    %16 = arith.cmpi sge, %14, %15 : vector<8x128xi32>
    %c7_i32 = arith.constant 7 : i32
    %17 = vector.broadcast %c7_i32 : i32 to vector<8x128xi32>
    %18 = arith.cmpi slt, %14, %17 : vector<8x128xi32>
    %19 = arith.andi %16, %18 : vector<8x128xi1>
    %20 = arith.mulf %13, %13 : vector<8x128xf32>
    %cst_11 = arith.constant 0.000000e+00 : f32
    %21 = vector.broadcast %cst_11 : f32 to vector<8x128xf32>
    %22 = arith.select %19, %20, %21 : vector<8x128xi1>, vector<8x128xf32>
    %cst_12 = arith.constant dense<0.000000e+00> : vector<8xf32>
    %23 = vector.multi_reduction <add>, %22, %cst_12 [1] : vector<8x128xf32> to vector<8xf32>
    %24 = vector.shape_cast %23 : vector<8xf32> to vector<8x1xf32>
    %cst_13 = arith.constant 1.000000e-24 : f32
    %25 = vector.broadcast %cst_13 : f32 to vector<8x1xf32>
    %26 = arith.maximumf %24, %25 : vector<8x1xf32>
    %27 = math.rsqrt %26 : vector<8x1xf32>
    %28 = vector.broadcast %27 : vector<8x1xf32> to vector<8x128xf32>
    %29 = arith.mulf %13, %28 : vector<8x128xf32>
    %30 = arith.select %19, %29, %13 : vector<8x128xi1>, vector<8x128xf32>
    %c0_14 = arith.constant 0 : index
    %c0_15 = arith.constant 0 : index
    %31 = vector.load %arg6[%c0_14, %c0_15] : memref<8x128xf32, #tpu.memory_space<vmem>>, vector<8x128xf32>
    tpu.vector_store %arg6[%c0_14, %c0_15], %30 {strides = array<i32>} : memref<8x128xf32, #tpu.memory_space<vmem>>, vector<8x128xf32>,
    return
  }
  func.func @transform_0(%arg0: i32) -> (i32, i32) {
    %c0_i32 = arith.constant 0 : i32
    %c0_i32_0 = arith.constant 0 : i32
    return %arg0, %c0_i32 : i32, i32
  }
  func.func @transform_1(%arg0: i32) -> (i32, i32) {
    %c0_i32 = arith.constant 0 : i32
    %c0_i32_0 = arith.constant 0 : i32
    %c0_i32_1 = arith.constant 0 : i32
    return %c0_i32, %c0_i32_0 : i32, i32
  }
  func.func @transform_2(%arg0: i32) -> (i32, i32) {
    %c0_i32 = arith.constant 0 : i32
    %c0_i32_0 = arith.constant 0 : i32
    %c0_i32_1 = arith.constant 0 : i32
    return %c0_i32, %c0_i32_0 : i32, i32
  }
  func.func @transform_3(%arg0: i32) -> (i32, i32) {
    %c0_i32 = arith.constant 0 : i32
    %c0_i32_0 = arith.constant 0 : i32
    %c0_i32_1 = arith.constant 0 : i32
    return %c0_i32, %c0_i32_0 : i32, i32
  }
  func.func @transform_4(%arg0: i32) -> (i32, i32) {
    %c0_i32 = arith.constant 0 : i32
    %c0_i32_0 = arith.constant 0 : i32
    %c0_i32_1 = arith.constant 0 : i32
    return %c0_i32, %c0_i32_0 : i32, i32
  }
  func.func @transform_5(%arg0: i32) -> (i32, i32) {
    %c0_i32 = arith.constant 0 : i32
    %c0_i32_0 = arith.constant 0 : i32
    return %arg0, %c0_i32 : i32, i32
  }
}

</mosaic_0001>

<bundles_post_ra>
// kernel: regression_head.1
= control target key start
LH: loop header
LB: loop body
LE: loop exit
PB: predicated region body
PF: predicated region fallthrough
CT: control target
= control target key end

     0   :  { %s13887_s1 = inlined_call_operand.vmem [shape: bf16[1024,2048], index: 1, kind: input, shape index: {}]   ;;  %s13888_s0 = inlined_call_operand.vmem [shape: f32[8,1024], index: 0, kind: input, shape index: {}]   ;;  %s13889_s2 = inlined_call_operand.vmem [shape: f32[1,2048], index: 2, kind: input, shape index: {}]   ;;  %s13890_s3 = inlined_call_operand.vmem [shape: f32[2048,128], index: 3, kind: input, shape index: {}]   ;;  %s13891_s4 = inlined_call_operand.vmem [shape: f32[1,128], index: 4, kind: input, shape index: {}]   ;;  %s13892_s5 = inlined_call_operand.vmem [shape: f32[8,128], index: 5, kind: output, shape index: {}]  }
   0x1   :  { %v148_v0 = vld [vmem:[%s13887_s1 + $0x380] sm:$0xff]  ;;  %v21_v53 = vld [vmem:[%s13888_s0 + $0x8] sm:$0xff]  ;;  %v23_v54 = vld [vmem:[%s13888_s0 + $0x18] sm:$0xff] }
   0x2   :  { %v156_v1 = vld [vmem:[%s13887_s1 + $0x3c0] sm:$0xff]  ;;  %v9869_v58 = vpack.c.bf16 %v21_v53, %v21_v53  ;;  %v9871_v59 = vpack.c.bf16 %v23_v54, %v23_v54 }
   0x3   :  { %v404_v2 = vld [vmem:[%s13887_s1 + $0xb80] sm:$0xff]  ;;  %v8546_v3 = vcombine.high %v148_v0, %v156_v1  ;;  %v8545_v5 = vcombine.low %v148_v0, %v156_v1 }
   0x4   :  { %v412_v4 = vld [vmem:[%s13887_s1 + $0xbc0] sm:$0xff]  ;;  %6296 = vmatprep.mubr.bf16.mxu0 %v9869_v58  ;;  %6337 = vmatprep.mubr.bf16.mxu1 %v9871_v59 }
   0x5   :  { %v132_v6 = vld [vmem:[%s13887_s1 + $0x300] sm:$0xff]  ;;  %v8802_v8 = vcombine.high %v404_v2, %v412_v4  ;;  %v8801_v9 = vcombine.low %v404_v2, %v412_v4  ;;  %6264 = vmatprep.subr.bf16.mxu0 %v8546_v3 }
   0x6   :  { %v140_v7 = vld [vmem:[%s13887_s1 + $0x340] sm:$0xff]  ;;  %6265 = vmatpush1.bf16.msra.mxu0 %v8545_v5 }
   0x7   :  { %v8530_v10 = vcombine.high %v132_v6, %v140_v7  ;;  %v388_v11 = vld [vmem:[%s13887_s1 + $0xb00] sm:$0xff]  ;;  %6305 = vmatprep.subr.bf16.mxu1 %v8802_v8  ;;  %v8529_v18 = vcombine.low %v132_v6, %v140_v7 }
   0x8   :  { %v396_v12 = vld [vmem:[%s13887_s1 + $0xb40] sm:$0xff]  ;;  %6306 = vmatpush1.bf16.msra.mxu1 %v8801_v9 }
   0x9   :  { %v116_v13 = vld [vmem:[%s13887_s1 + $0x280] sm:$0xff]  ;;  %v8786_v14 = vcombine.high %v388_v11, %v396_v12  ;;  %6266 = vmatprep.subr.bf16.mxu0 %v8530_v10  ;;  %v8785_v19 = vcombine.low %v388_v11, %v396_v12 }
   0xa   :  { %v124_v15 = vld [vmem:[%s13887_s1 + $0x2c0] sm:$0xff]  ;;  %6267 = vmatpush1.bf16.msra.mxu0 %v8529_v18 }
   0xb   :  { %v372_v16 = vld [vmem:[%s13887_s1 + $0xa80] sm:$0xff]  ;;  %v8514_v20 = vcombine.high %v116_v13, %v124_v15  ;;  %6307 = vmatprep.subr.bf16.mxu1 %v8786_v14  ;;  %v8513_v26 = vcombine.low %v116_v13, %v124_v15 }
   0xc   :  { %v380_v17 = vld [vmem:[%s13887_s1 + $0xac0] sm:$0xff]  ;;  %6308 = vmatpush1.bf16.msra.mxu1 %v8785_v19 }
   0xd   :  { %v8770_v21 = vcombine.high %v372_v16, %v380_v17  ;;  %v100_v22 = vld [vmem:[%s13887_s1 + $0x200] sm:$0xff]  ;;  %6268 = vmatprep.subr.bf16.mxu0 %v8514_v20  ;;  %v8769_v27 = vcombine.low %v372_v16, %v380_v17 }
   0xe   :  { %v108_v23 = vld [vmem:[%s13887_s1 + $0x240] sm:$0xff]  ;;  %6269 = vmatpush1.bf16.msra.mxu0 %v8513_v26 }
   0xf   :  { %v356_v24 = vld [vmem:[%s13887_s1 + $0xa00] sm:$0xff]  ;;  %v8498_v28 = vcombine.high %v100_v22, %v108_v23  ;;  %6309 = vmatprep.subr.bf16.mxu1 %v8770_v21  ;;  %v8497_v34 = vcombine.low %v100_v22, %v108_v23 }
  0x10   :  { %v364_v25 = vld [vmem:[%s13887_s1 + $0xa40] sm:$0xff]  ;;  %6310 = vmatpush1.bf16.msra.mxu1 %v8769_v27 }
  0x11   :  { %v8754_v29 = vcombine.high %v356_v24, %v364_v25  ;;  %v84_v30 = vld [vmem:[%s13887_s1 + $0x180] sm:$0xff]  ;;  %6270 = vmatprep.subr.bf16.mxu0 %v8498_v28  ;;  %v8753_v35 = vcombine.low %v356_v24, %v364_v25 }
  0x12   :  { %v92_v31 = vld [vmem:[%s13887_s1 + $0x1c0] sm:$0xff]  ;;  %6271 = vmatpush1.bf16.msra.mxu0 %v8497_v34 }
  0x13   :  { %v340_v32 = vld [vmem:[%s13887_s1 + $0x980] sm:$0xff]  ;;  %v8482_v36 = vcombine.high %v84_v30, %v92_v31  ;;  %6311 = vmatprep.subr.bf16.mxu1 %v8754_v29  ;;  %v8481_v42 = vcombine.low %v84_v30, %v92_v31 }
  0x14   :  { %v348_v33 = vld [vmem:[%s13887_s1 + $0x9c0] sm:$0xff]  ;;  %6312 = vmatpush1.bf16.msra.mxu1 %v8753_v35 }
  0x15   :  { %v8738_v37 = vcombine.high %v340_v32, %v348_v33  ;;  %v68_v38 = vld [vmem:[%s13887_s1 + $0x100] sm:$0xff]  ;;  %6272 = vmatprep.subr.bf16.mxu0 %v8482_v36  ;;  %v8737_v43 = vcombine.low %v340_v32, %v348_v33 }
  0x16   :  { %v76_v39 = vld [vmem:[%s13887_s1 + $0x140] sm:$0xff]  ;;  %6273 = vmatpush1.bf16.msra.mxu0 %v8481_v42 }
  0x17   :  { %v324_v40 = vld [vmem:[%s13887_s1 + $0x900] sm:$0xff]  ;;  %v8466_v44 = vcombine.high %v68_v38, %v76_v39  ;;  %6313 = vmatprep.subr.bf16.mxu1 %v8738_v37  ;;  %v8465_v50 = vcombine.low %v68_v38, %v76_v39 }
  0x18   :  { %v332_v41 = vld [vmem:[%s13887_s1 + $0x940] sm:$0xff]  ;;  %6314 = vmatpush1.bf16.msra.mxu1 %v8737_v43 }
  0x19   :  { %v8722_v45 = vcombine.high %v324_v40, %v332_v41  ;;  %v52_v46 = vld [vmem:[%s13887_s1 + $0x80] sm:$0xff]  ;;  %6274 = vmatprep.subr.bf16.mxu0 %v8466_v44  ;;  %v8721_v51 = vcombine.low %v324_v40, %v332_v41 }
  0x1a   :  { %v60_v47 = vld [vmem:[%s13887_s1 + $0xc0] sm:$0xff]  ;;  %6275 = vmatpush1.bf16.msra.mxu0 %v8465_v50 }
  0x1b   :  { %v308_v48 = vld [vmem:[%s13887_s1 + $0x880] sm:$0xff]  ;;  %v8450_v52 = vcombine.high %v52_v46, %v60_v47  ;;  %6315 = vmatprep.subr.bf16.mxu1 %v8722_v45  ;;  %v8449_v62 = vcombine.low %v52_v46, %v60_v47 }
  0x1c   :  { %v316_v49 = vld [vmem:[%s13887_s1 + $0x8c0] sm:$0xff]  ;;  %6316 = vmatpush1.bf16.msra.mxu1 %v8721_v51 }
  0x1d   :  { %v8706_v55 = vcombine.high %v308_v48, %v316_v49  ;;  %v36_v56 = vld [vmem:[%s13887_s1] sm:$0xff]  ;;  %6276 = vmatprep.subr.bf16.mxu0 %v8450_v52  ;;  %v8705_v63 = vcombine.low %v308_v48, %v316_v49 }
  0x1e   :  { %v44_v57 = vld [vmem:[%s13887_s1 + $0x40] sm:$0xff]  ;;  %6277 = vmatpush1.bf16.msra.mxu0 %v8449_v62 }
  0x1f   :  { %v292_v60 = vld [vmem:[%s13887_s1 + $0x800] sm:$0xff]  ;;  %v8434_v0 = vcombine.high %v36_v56, %v44_v57  ;;  %6317 = vmatprep.subr.bf16.mxu1 %v8706_v55  ;;  %v8433_v6 = vcombine.low %v36_v56, %v44_v57 }
  0x20   :  { %v300_v61 = vld [vmem:[%s13887_s1 + $0x840] sm:$0xff]  ;;  %6318 = vmatpush1.bf16.msra.mxu1 %v8705_v63 }
  0x21   :  { %v8690_v1 = vcombine.high %v292_v60, %v300_v61  ;;  %v276_v2 = vld [vmem:[%s13887_s1 + $0x780] sm:$0xff]  ;;  %6278 = vmatprep.subr.bf16.mxu0 %v8434_v0  ;;  %v8689_v7 = vcombine.low %v292_v60, %v300_v61 }
  0x22   :  { %v284_v3 = vld [vmem:[%s13887_s1 + $0x7c0] sm:$0xff]  ;;  %6279 = vmatpush1.bf16.msra.mxu0 %v8433_v6 }
  0x23   :  { %v532_v4 = vld [vmem:[%s13887_s1 + $0xf80] sm:$0xff]  ;;  %v8674_v8 = vcombine.high %v276_v2, %v284_v3  ;;  %6319 = vmatprep.subr.bf16.mxu1 %v8690_v1  ;;  %v8673_v14 = vcombine.low %v276_v2, %v284_v3 }
  0x24   :  { %v540_v5 = vld [vmem:[%s13887_s1 + $0xfc0] sm:$0xff]  ;;  %6320 = vmatpush1.bf16.msra.mxu1 %v8689_v7 }
  0x25   :  { %v8930_v9 = vcombine.high %v532_v4, %v540_v5  ;;  %v260_v10 = vld [vmem:[%s13887_s1 + $0x700] sm:$0xff]  ;;  %6280 = vmatprep.subr.bf16.mxu0 %v8674_v8  ;;  %v8929_v15 = vcombine.low %v532_v4, %v540_v5 }
  0x26   :  { %v268_v11 = vld [vmem:[%s13887_s1 + $0x740] sm:$0xff]  ;;  %6281 = vmatpush2.bf16.msra.mxu0 %v8673_v14 }
  0x27   :  { %v516_v12 = vld [vmem:[%s13887_s1 + $0xf00] sm:$0xff]  ;;  %v8658_v16 = vcombine.high %v260_v10, %v268_v11  ;;  %6321 = vmatprep.subr.bf16.mxu1 %v8930_v9  ;;  %v8657_v22 = vcombine.low %v260_v10, %v268_v11  ;;  %v22_v11 = vld [vmem:[%s13888_s0 + $0x10] sm:$0xff] }
  0x28   :  { %v524_v13 = vld [vmem:[%s13887_s1 + $0xf40] sm:$0xff]  ;;  %6322 = vmatpush2.bf16.msra.mxu1 %v8929_v15 }
  0x29   :  { %v8914_v17 = vcombine.high %v516_v12, %v524_v13  ;;  %v244_v18 = vld [vmem:[%s13887_s1 + $0x680] sm:$0xff]  ;;  %6282 = vmatprep.subr.bf16.mxu0 %v8658_v16  ;;  %v8913_v23 = vcombine.low %v516_v12, %v524_v13 }
  0x2a   :  { %v252_v19 = vld [vmem:[%s13887_s1 + $0x6c0] sm:$0xff]  ;;  %6283 = vmatpush2.bf16.msra.mxu0 %v8657_v22  ;;  %v27_v22 = vld [vmem:[%s13888_s0 + $0x38] sm:$0xff] }
  0x2b   :  { %v500_v20 = vld [vmem:[%s13887_s1 + $0xe80] sm:$0xff]  ;;  %v8642_v24 = vcombine.high %v244_v18, %v252_v19  ;;  %6323 = vmatprep.subr.bf16.mxu1 %v8914_v17  ;;  %v8641_v30 = vcombine.low %v244_v18, %v252_v19  ;;  %v25_v19 = vld [vmem:[%s13888_s0 + $0x28] sm:$0xff] }
  0x2c   :  { %v508_v21 = vld [vmem:[%s13887_s1 + $0xec0] sm:$0xff]  ;;  %6324 = vmatpush2.bf16.msra.mxu1 %v8913_v23 }
  0x2d   :  { %v8898_v25 = vcombine.high %v500_v20, %v508_v21  ;;  %v228_v26 = vld [vmem:[%s13887_s1 + $0x600] sm:$0xff]  ;;  %6284 = vmatprep.subr.bf16.mxu0 %v8642_v24  ;;  %v8897_v31 = vcombine.low %v500_v20, %v508_v21  ;;  %v10012_v20 = vpack.c.bf16 %v22_v11, %v22_v11 }
  0x2e   :  { %v236_v27 = vld [vmem:[%s13887_s1 + $0x640] sm:$0xff]  ;;  %6285 = vmatpush2.bf16.msra.mxu0 %v8641_v30 }
  0x2f   :  { %v484_v28 = vld [vmem:[%s13887_s1 + $0xe00] sm:$0xff]  ;;  %v8626_v32 = vcombine.high %v228_v26, %v236_v27  ;;  %6325 = vmatprep.subr.bf16.mxu1 %v8898_v25  ;;  %v8625_v38 = vcombine.low %v228_v26, %v236_v27 }
  0x30   :  { %v492_v29 = vld [vmem:[%s13887_s1 + $0xe40] sm:$0xff]  ;;  %6326 = vmatpush2.bf16.msra.mxu1 %v8897_v31  ;;  %v10032_v31 = vpack.c.bf16 %v27_v22, %v27_v22 }
  0x31   :  { %v8882_v33 = vcombine.high %v484_v28, %v492_v29  ;;  %v212_v34 = vld [vmem:[%s13887_s1 + $0x580] sm:$0xff]  ;;  %6286 = vmatprep.subr.bf16.mxu0 %v8626_v32  ;;  %v8881_v39 = vcombine.low %v484_v28, %v492_v29  ;;  %v10023_v28 = vpack.c.bf16 %v25_v19, %v25_v19 }
  0x32   :  { %v220_v35 = vld [vmem:[%s13887_s1 + $0x5c0] sm:$0xff]  ;;  %6287 = vmatpush2.bf16.msra.mxu0 %v8625_v38 }
  0x33   :  { %v468_v36 = vld [vmem:[%s13887_s1 + $0xd80] sm:$0xff]  ;;  %v8610_v40 = vcombine.high %v212_v34, %v220_v35  ;;  %6327 = vmatprep.subr.bf16.mxu1 %v8882_v33  ;;  %v8609_v46 = vcombine.low %v212_v34, %v220_v35 }
  0x34   :  { %v476_v37 = vld [vmem:[%s13887_s1 + $0xdc0] sm:$0xff]  ;;  %6328 = vmatpush2.bf16.msra.mxu1 %v8881_v39 }
  0x35   :  { %v8866_v41 = vcombine.high %v468_v36, %v476_v37  ;;  %v196_v42 = vld [vmem:[%s13887_s1 + $0x500] sm:$0xff]  ;;  %6288 = vmatprep.subr.bf16.mxu0 %v8610_v40  ;;  %v8865_v47 = vcombine.low %v468_v36, %v476_v37 }
  0x36   :  { %v204_v43 = vld [vmem:[%s13887_s1 + $0x540] sm:$0xff]  ;;  %6289 = vmatpush2.bf16.msra.mxu0 %v8609_v46 }
  0x37   :  { %v452_v44 = vld [vmem:[%s13887_s1 + $0xd00] sm:$0xff]  ;;  %v8594_v48 = vcombine.high %v196_v42, %v204_v43  ;;  %6329 = vmatprep.subr.bf16.mxu1 %v8866_v41  ;;  %v8593_v54 = vcombine.low %v196_v42, %v204_v43 }
  0x38   :  { %v460_v45 = vld [vmem:[%s13887_s1 + $0xd40] sm:$0xff]  ;;  %6330 = vmatpush2.bf16.msra.mxu1 %v8865_v47 }
  0x39   :  { %v8850_v49 = vcombine.high %v452_v44, %v460_v45  ;;  %v180_v50 = vld [vmem:[%s13887_s1 + $0x480] sm:$0xff]  ;;  %6290 = vmatprep.subr.bf16.mxu0 %v8594_v48  ;;  %v8849_v55 = vcombine.low %v452_v44, %v460_v45 }
  0x3a   :  { %v188_v51 = vld [vmem:[%s13887_s1 + $0x4c0] sm:$0xff]  ;;  %6291 = vmatpush2.bf16.msra.mxu0 %v8593_v54 }
  0x3b   :  { %v436_v52 = vld [vmem:[%s13887_s1 + $0xc80] sm:$0xff]  ;;  %v8578_v56 = vcombine.high %v180_v50, %v188_v51  ;;  %6331 = vmatprep.subr.bf16.mxu1 %v8850_v49  ;;  %v8577_v0 = vcombine.low %v180_v50, %v188_v51 }
  0x3c   :  { %v444_v53 = vld [vmem:[%s13887_s1 + $0xcc0] sm:$0xff]  ;;  %6332 = vmatpush2.bf16.msra.mxu1 %v8849_v55 }
  0x3d   :  { %v8834_v57 = vcombine.high %v436_v52, %v444_v53  ;;  %v164_v60 = vld [vmem:[%s13887_s1 + $0x400] sm:$0xff]  ;;  %6292 = vmatprep.subr.bf16.mxu0 %v8578_v56  ;;  %v8833_v1 = vcombine.low %v436_v52, %v444_v53 }
  0x3e   :  { %v172_v61 = vld [vmem:[%s13887_s1 + $0x440] sm:$0xff]  ;;  %6293 = vmatpush2.bf16.msra.mxu0 %v8577_v0 }
  0x3f   :  { %v420_v62 = vld [vmem:[%s13887_s1 + $0xc00] sm:$0xff]  ;;  %v8562_v2 = vcombine.high %v164_v60, %v172_v61  ;;  %6333 = vmatprep.subr.bf16.mxu1 %v8834_v57  ;;  %v8561_v8 = vcombine.low %v164_v60, %v172_v61 }
  0x40   :  { %v428_v63 = vld [vmem:[%s13887_s1 + $0xc40] sm:$0xff]  ;;  %6334 = vmatpush2.bf16.msra.mxu1 %v8833_v1 }
  0x41   :  { %v8818_v3 = vcombine.high %v420_v62, %v428_v63  ;;  %v660_v4 = vld [vmem:[%s13887_s1 + $0x1380] sm:$0xff]  ;;  %6294 = vmatprep.subr.bf16.mxu0 %v8562_v2  ;;  %v8817_v10 = vcombine.low %v420_v62, %v428_v63 }
  0x42   :  { %v668_v5 = vld [vmem:[%s13887_s1 + $0x13c0] sm:$0xff]  ;;  %6295 = vmatpush2.bf16.msra.mxu0 %v8561_v8 }
  0x43   :  { %v916_v6 = vld [vmem:[%s13887_s1 + $0x1b80] sm:$0xff]  ;;  %v9058_v12 = vcombine.high %v660_v4, %v668_v5  ;;  %6335 = vmatprep.subr.bf16.mxu1 %v8818_v3  ;;  %v9057_v21 = vcombine.low %v660_v4, %v668_v5 }
  0x44   :  { %v924_v7 = vld [vmem:[%s13887_s1 + $0x1bc0] sm:$0xff]  ;;  %6336 = vmatpush2.bf16.msra.mxu1 %v8817_v10 }
  0x45   :  { %v20_v9 = vld [vmem:[%s13888_s0] sm:$0xff]  ;;  %v9314_v13 = vcombine.high %v916_v6, %v924_v7  ;;  %6346 = vmatprep.subr.bf16.mxu0 %v9058_v12  ;;  %v9313_v23 = vcombine.low %v916_v6, %v924_v7 }
  0x46   :  { %v644_v14 = vld [vmem:[%s13887_s1 + $0x1300] sm:$0xff]  ;;  %v10001_v16 = vpack.c.bf16 %v20_v9, %v20_v9 }
  0x47   :  { %v652_v15 = vld [vmem:[%s13887_s1 + $0x1340] sm:$0xff]  ;;  %6387 = vmatprep.subr.bf16.mxu1 %v9314_v13  ;;  %6338 = vmatmul.mubr.bf16.vlgmr.msra.gmra.mxu1 %v10012_v20 }
  0x48   :  { %v900_v17 = vld [vmem:[%s13887_s1 + $0x1b00] sm:$0xff]  ;;  %v9042_v24 = vcombine.high %v644_v14, %v652_v15  ;;  %6297 = vmatmul.mubr.bf16.vlgmr.msra.gmra.mxu0 %v10001_v16  ;;  %v9041_v32 = vcombine.low %v644_v14, %v652_v15  ;;  %6388 = vmatpush1.bf16.msra.mxu1 %v9313_v23 }
  0x49   :  { %v908_v18 = vld [vmem:[%s13887_s1 + $0x1b40] sm:$0xff]  ;;  %6347 = vmatpush1.bf16.msra.mxu0 %v9057_v21  ;;  %6378 = vmatprep.mubr.bf16.mxu0 %v10023_v28 }
  0x4a   :  { %v9298_v25 = vcombine.high %v900_v17, %v908_v18  ;;  %v628_v26 = vld [vmem:[%s13887_s1 + $0x1280] sm:$0xff]  ;;  %6348 = vmatprep.subr.bf16.mxu0 %v9042_v24  ;;  %v9297_v33 = vcombine.low %v900_v17, %v908_v18  ;;  %6419 = vmatprep.mubr.bf16.mxu1 %v10032_v31 }
  0x4b   :  { %v636_v27 = vld [vmem:[%s13887_s1 + $0x12c0] sm:$0xff] }
  0x4c   :  { %v884_v29 = vld [vmem:[%s13887_s1 + $0x1a80] sm:$0xff]  ;;  %v9026_v34 = vcombine.high %v628_v26, %v636_v27  ;;  %6389 = vmatprep.subr.bf16.mxu1 %v9298_v25  ;;  %v9025_v40 = vcombine.low %v628_v26, %v636_v27 }
  0x4d   :  { %v892_v30 = vld [vmem:[%s13887_s1 + $0x1ac0] sm:$0xff]  ;;  %6349 = vmatpush1.bf16.msra.mxu0 %v9041_v32  ;;  %6390 = vmatpush1.bf16.msra.mxu1 %v9297_v33 }
  0x4e   :  { %v9282_v35 = vcombine.high %v884_v29, %v892_v30  ;;  %v612_v36 = vld [vmem:[%s13887_s1 + $0x1200] sm:$0xff]  ;;  %6350 = vmatprep.subr.bf16.mxu0 %v9026_v34  ;;  %v9281_v41 = vcombine.low %v884_v29, %v892_v30 }
  0x4f   :  { %v620_v37 = vld [vmem:[%s13887_s1 + $0x1240] sm:$0xff] }
  0x50   :  { %v868_v38 = vld [vmem:[%s13887_s1 + $0x1a00] sm:$0xff]  ;;  %v9010_v42 = vcombine.high %v612_v36, %v620_v37  ;;  %6391 = vmatprep.subr.bf16.mxu1 %v9282_v35  ;;  %v9009_v48 = vcombine.low %v612_v36, %v620_v37 }
  0x51   :  { %v876_v39 = vld [vmem:[%s13887_s1 + $0x1a40] sm:$0xff]  ;;  %6351 = vmatpush1.bf16.msra.mxu0 %v9025_v40  ;;  %6392 = vmatpush1.bf16.msra.mxu1 %v9281_v41 }
  0x52   :  { %v9266_v43 = vcombine.high %v868_v38, %v876_v39  ;;  %v596_v44 = vld [vmem:[%s13887_s1 + $0x1180] sm:$0xff]  ;;  %6352 = vmatprep.subr.bf16.mxu0 %v9010_v42  ;;  %v9265_v49 = vcombine.low %v868_v38, %v876_v39 }
  0x53   :  { %v604_v45 = vld [vmem:[%s13887_s1 + $0x11c0] sm:$0xff] }
  0x54   :  { %v852_v46 = vld [vmem:[%s13887_s1 + $0x1980] sm:$0xff]  ;;  %v8994_v50 = vcombine.high %v596_v44, %v604_v45  ;;  %6393 = vmatprep.subr.bf16.mxu1 %v9266_v43  ;;  %v8993_v56 = vcombine.low %v596_v44, %v604_v45 }
  0x55   :  { %v860_v47 = vld [vmem:[%s13887_s1 + $0x19c0] sm:$0xff]  ;;  %6353 = vmatpush1.bf16.msra.mxu0 %v9009_v48  ;;  %6394 = vmatpush1.bf16.msra.mxu1 %v9265_v49 }
  0x56   :  { %v9250_v51 = vcombine.high %v852_v46, %v860_v47  ;;  %v580_v52 = vld [vmem:[%s13887_s1 + $0x1100] sm:$0xff]  ;;  %6354 = vmatprep.subr.bf16.mxu0 %v8994_v50  ;;  %v9249_v57 = vcombine.low %v852_v46, %v860_v47 }
  0x57   :  { %v588_v53 = vld [vmem:[%s13887_s1 + $0x1140] sm:$0xff] }
  0x58   :  { %v836_v54 = vld [vmem:[%s13887_s1 + $0x1900] sm:$0xff]  ;;  %v8978_v60 = vcombine.high %v580_v52, %v588_v53  ;;  %6395 = vmatprep.subr.bf16.mxu1 %v9250_v51  ;;  %v8977_v2 = vcombine.low %v580_v52, %v588_v53 }
  0x59   :  { %v844_v55 = vld [vmem:[%s13887_s1 + $0x1940] sm:$0xff]  ;;  %6355 = vmatpush1.bf16.msra.mxu0 %v8993_v56  ;;  %6396 = vmatpush1.bf16.msra.mxu1 %v9249_v57 }
  0x5a   :  { %v9234_v61 = vcombine.high %v836_v54, %v844_v55  ;;  %v564_v62 = vld [vmem:[%s13887_s1 + $0x1080] sm:$0xff]  ;;  %6356 = vmatprep.subr.bf16.mxu0 %v8978_v60  ;;  %v9233_v3 = vcombine.low %v836_v54, %v844_v55 }
  0x5b   :  { %v572_v63 = vld [vmem:[%s13887_s1 + $0x10c0] sm:$0xff] }
  0x5c   :  { %v820_v0 = vld [vmem:[%s13887_s1 + $0x1880] sm:$0xff]  ;;  %v8962_v4 = vcombine.high %v564_v62, %v572_v63  ;;  %6397 = vmatprep.subr.bf16.mxu1 %v9234_v61  ;;  %v8961_v10 = vcombine.low %v564_v62, %v572_v63 }
  0x5d   :  { %v828_v1 = vld [vmem:[%s13887_s1 + $0x18c0] sm:$0xff]  ;;  %6357 = vmatpush1.bf16.msra.mxu0 %v8977_v2  ;;  %6398 = vmatpush1.bf16.msra.mxu1 %v9233_v3 }
  0x5e   :  { %v9218_v5 = vcombine.high %v820_v0, %v828_v1  ;;  %v548_v6 = vld [vmem:[%s13887_s1 + $0x1000] sm:$0xff]  ;;  %6358 = vmatprep.subr.bf16.mxu0 %v8962_v4  ;;  %v9217_v11 = vcombine.low %v820_v0, %v828_v1 }
  0x5f   :  { %v556_v7 = vld [vmem:[%s13887_s1 + $0x1040] sm:$0xff] }
  0x60   :  { %v804_v8 = vld [vmem:[%s13887_s1 + $0x1800] sm:$0xff]  ;;  %v8946_v12 = vcombine.high %v548_v6, %v556_v7  ;;  %6399 = vmatprep.subr.bf16.mxu1 %v9218_v5  ;;  %v8945_v19 = vcombine.low %v548_v6, %v556_v7 }
  0x61   :  { %v812_v9 = vld [vmem:[%s13887_s1 + $0x1840] sm:$0xff]  ;;  %6359 = vmatpush1.bf16.msra.mxu0 %v8961_v10  ;;  %6400 = vmatpush1.bf16.msra.mxu1 %v9217_v11 }
  0x62   :  { %v9202_v13 = vcombine.high %v804_v8, %v812_v9  ;;  %v788_v14 = vld [vmem:[%s13887_s1 + $0x1780] sm:$0xff]  ;;  %6360 = vmatprep.subr.bf16.mxu0 %v8946_v12  ;;  %v9201_v21 = vcombine.low %v804_v8, %v812_v9 }
  0x63   :  { %v796_v15 = vld [vmem:[%s13887_s1 + $0x17c0] sm:$0xff] }
  0x64   :  { %v1044_v17 = vld [vmem:[%s13887_s1 + $0x1f80] sm:$0xff]  ;;  %v9186_v22 = vcombine.high %v788_v14, %v796_v15  ;;  %6401 = vmatprep.subr.bf16.mxu1 %v9202_v13  ;;  %v9185_v29 = vcombine.low %v788_v14, %v796_v15 }
  0x65   :  { %v1052_v18 = vld [vmem:[%s13887_s1 + $0x1fc0] sm:$0xff]  ;;  %6361 = vmatpush1.bf16.msra.mxu0 %v8945_v19  ;;  %6402 = vmatpush1.bf16.msra.mxu1 %v9201_v21 }
  0x66   :  { %v9442_v23 = vcombine.high %v1044_v17, %v1052_v18  ;;  %v772_v24 = vld [vmem:[%s13887_s1 + $0x1700] sm:$0xff]  ;;  %6362 = vmatprep.subr.bf16.mxu0 %v9186_v22  ;;  %v9441_v30 = vcombine.low %v1044_v17, %v1052_v18  ;;  %v149_v22 = vld [vmem:[%s13887_s1 + $0x388] sm:$0xff] }
  0x67   :  { %v780_v25 = vld [vmem:[%s13887_s1 + $0x1740] sm:$0xff] }
  0x68   :  { %v1028_v26 = vld [vmem:[%s13887_s1 + $0x1f00] sm:$0xff]  ;;  %v9170_v32 = vcombine.high %v772_v24, %v780_v25  ;;  %6403 = vmatprep.subr.bf16.mxu1 %v9442_v23  ;;  %v9169_v38 = vcombine.low %v772_v24, %v780_v25  ;;  %v157_v23 = vld [vmem:[%s13887_s1 + $0x3c8] sm:$0xff] }
  0x69   :  { %v1036_v27 = vld [vmem:[%s13887_s1 + $0x1f40] sm:$0xff]  ;;  %6363 = vmatpush2.bf16.msra.mxu0 %v9185_v29  ;;  %6404 = vmatpush2.bf16.msra.mxu1 %v9441_v30  ;;  %v405_v24 = vld [vmem:[%s13887_s1 + $0xb88] sm:$0xff]  ;;  %v26_v30 = vld [vmem:[%s13888_s0 + $0x30] sm:$0xff] }
  0x6a   :  { %v9426_v33 = vcombine.high %v1028_v26, %v1036_v27  ;;  %v756_v34 = vld [vmem:[%s13887_s1 + $0x1680] sm:$0xff]  ;;  %6364 = vmatprep.subr.bf16.mxu0 %v9170_v32  ;;  %v9425_v39 = vcombine.low %v1028_v26, %v1036_v27  ;;  %v413_v25 = vld [vmem:[%s13887_s1 + $0xbc8] sm:$0xff]  ;;  %v8548_v32 = vcombine.high %v149_v22, %v157_v23 }
  0x6b   :  { %v764_v35 = vld [vmem:[%s13887_s1 + $0x16c0] sm:$0xff] }
  0x6c   :  { %v1012_v36 = vld [vmem:[%s13887_s1 + $0x1e80] sm:$0xff]  ;;  %v9154_v40 = vcombine.high %v756_v34, %v764_v35  ;;  %6405 = vmatprep.subr.bf16.mxu1 %v9426_v33  ;;  %v9153_v46 = vcombine.low %v756_v34, %v764_v35  ;;  %v8804_v33 = vcombine.high %v405_v24, %v413_v25  ;;  %v133_v34 = vld [vmem:[%s13887_s1 + $0x308] sm:$0xff] }
  0x6d   :  { %v1020_v37 = vld [vmem:[%s13887_s1 + $0x1ec0] sm:$0xff]  ;;  %6365 = vmatpush2.bf16.msra.mxu0 %v9169_v38  ;;  %6406 = vmatpush2.bf16.msra.mxu1 %v9425_v39  ;;  %v141_v35 = vld [vmem:[%s13887_s1 + $0x348] sm:$0xff]  ;;  %v10225_v39 = vpack.c.bf16 %v26_v30, %v26_v30 }
  0x6e   :  { %v9410_v41 = vcombine.high %v1012_v36, %v1020_v37  ;;  %v740_v42 = vld [vmem:[%s13887_s1 + $0x1600] sm:$0xff]  ;;  %6366 = vmatprep.subr.bf16.mxu0 %v9154_v40  ;;  %v9409_v47 = vcombine.low %v1012_v36, %v1020_v37  ;;  %v389_v37 = vld [vmem:[%s13887_s1 + $0xb08] sm:$0xff]  ;;  %v8547_v40 = vcombine.low %v149_v22, %v157_v23 }
  0x6f   :  { %v748_v43 = vld [vmem:[%s13887_s1 + $0x1640] sm:$0xff]  ;;  %v397_v38 = vld [vmem:[%s13887_s1 + $0xb48] sm:$0xff] }
  0x70   :  { %v996_v44 = vld [vmem:[%s13887_s1 + $0x1e00] sm:$0xff]  ;;  %v9138_v48 = vcombine.high %v740_v42, %v748_v43  ;;  %6407 = vmatprep.subr.bf16.mxu1 %v9410_v41  ;;  %v9137_v54 = vcombine.low %v740_v42, %v748_v43  ;;  %v8803_v41 = vcombine.low %v405_v24, %v413_v25  ;;  %v8532_v42 = vcombine.high %v133_v34, %v141_v35  ;;  %v37_v24 = vld [vmem:[%s13887_s1 + $0x8] sm:$0xff] }
  0x71   :  { %v1004_v45 = vld [vmem:[%s13887_s1 + $0x1e40] sm:$0xff]  ;;  %6367 = vmatpush2.bf16.msra.mxu0 %v9153_v46  ;;  %6408 = vmatpush2.bf16.msra.mxu1 %v9409_v47  ;;  %v8788_v43 = vcombine.high %v389_v37, %v397_v38  ;;  %v373_v46 = vld [vmem:[%s13887_s1 + $0xa88] sm:$0xff] }
  0x72   :  { %v9394_v49 = vcombine.high %v996_v44, %v1004_v45  ;;  %v724_v50 = vld [vmem:[%s13887_s1 + $0x1580] sm:$0xff]  ;;  %6368 = vmatprep.subr.bf16.mxu0 %v9138_v48  ;;  %v9393_v55 = vcombine.low %v996_v44, %v1004_v45  ;;  %v117_v44 = vld [vmem:[%s13887_s1 + $0x288] sm:$0xff]  ;;  %v8531_v48 = vcombine.low %v133_v34, %v141_v35 }
  0x73   :  { %v732_v51 = vld [vmem:[%s13887_s1 + $0x15c0] sm:$0xff]  ;;  %v125_v45 = vld [vmem:[%s13887_s1 + $0x2c8] sm:$0xff] }
  0x74   :  { %v980_v52 = vld [vmem:[%s13887_s1 + $0x1d80] sm:$0xff]  ;;  %v9122_v56 = vcombine.high %v724_v50, %v732_v51  ;;  %6409 = vmatprep.subr.bf16.mxu1 %v9394_v49  ;;  %v9121_v0 = vcombine.low %v724_v50, %v732_v51  ;;  %v381_v47 = vld [vmem:[%s13887_s1 + $0xac8] sm:$0xff]  ;;  %v8787_v49 = vcombine.low %v389_v37, %v397_v38  ;;  %v8516_v50 = vcombine.high %v117_v44, %v125_v45 }
  0x75   :  { %v988_v53 = vld [vmem:[%s13887_s1 + $0x1dc0] sm:$0xff]  ;;  %6369 = vmatpush2.bf16.msra.mxu0 %v9137_v54  ;;  %6410 = vmatpush2.bf16.msra.mxu1 %v9393_v55  ;;  %v8772_v51 = vcombine.high %v373_v46, %v381_v47  ;;  %v357_v54 = vld [vmem:[%s13887_s1 + $0xa08] sm:$0xff] }
  0x76   :  { %v9378_v57 = vcombine.high %v980_v52, %v988_v53  ;;  %v708_v60 = vld [vmem:[%s13887_s1 + $0x1500] sm:$0xff]  ;;  %6370 = vmatprep.subr.bf16.mxu0 %v9122_v56  ;;  %v9377_v1 = vcombine.low %v980_v52, %v988_v53  ;;  %v101_v52 = vld [vmem:[%s13887_s1 + $0x208] sm:$0xff]  ;;  %v8515_v56 = vcombine.low %v117_v44, %v125_v45 }
  0x77   :  { %v716_v61 = vld [vmem:[%s13887_s1 + $0x1540] sm:$0xff]  ;;  %v109_v53 = vld [vmem:[%s13887_s1 + $0x248] sm:$0xff] }
  0x78   :  { %v964_v62 = vld [vmem:[%s13887_s1 + $0x1d00] sm:$0xff]  ;;  %v9106_v2 = vcombine.high %v708_v60, %v716_v61  ;;  %6411 = vmatprep.subr.bf16.mxu1 %v9378_v57  ;;  %v9105_v8 = vcombine.low %v708_v60, %v716_v61  ;;  %v365_v55 = vld [vmem:[%s13887_s1 + $0xa48] sm:$0xff]  ;;  %v8771_v57 = vcombine.low %v373_v46, %v381_v47  ;;  %v8500_v60 = vcombine.high %v101_v52, %v109_v53 }
  0x79   :  { %v972_v63 = vld [vmem:[%s13887_s1 + $0x1d40] sm:$0xff]  ;;  %6371 = vmatpush2.bf16.msra.mxu0 %v9121_v0  ;;  %6412 = vmatpush2.bf16.msra.mxu1 %v9377_v1  ;;  %v8756_v61 = vcombine.high %v357_v54, %v365_v55  ;;  %v341_v0 = vld [vmem:[%s13887_s1 + $0x988] sm:$0xff] }
  0x7a   :  { %v9362_v3 = vcombine.high %v964_v62, %v972_v63  ;;  %v692_v4 = vld [vmem:[%s13887_s1 + $0x1480] sm:$0xff]  ;;  %6372 = vmatprep.subr.bf16.mxu0 %v9106_v2  ;;  %v9361_v9 = vcombine.low %v964_v62, %v972_v63  ;;  %v85_v62 = vld [vmem:[%s13887_s1 + $0x188] sm:$0xff]  ;;  %v8499_v2 = vcombine.low %v101_v52, %v109_v53 }
  0x7b   :  { %v700_v5 = vld [vmem:[%s13887_s1 + $0x14c0] sm:$0xff]  ;;  %v93_v63 = vld [vmem:[%s13887_s1 + $0x1c8] sm:$0xff] }
  0x7c   :  { %v948_v6 = vld [vmem:[%s13887_s1 + $0x1c80] sm:$0xff]  ;;  %v9090_v10 = vcombine.high %v692_v4, %v700_v5  ;;  %6413 = vmatprep.subr.bf16.mxu1 %v9362_v3  ;;  %v9089_v17 = vcombine.low %v692_v4, %v700_v5  ;;  %v349_v1 = vld [vmem:[%s13887_s1 + $0x9c8] sm:$0xff]  ;;  %v8755_v3 = vcombine.low %v357_v54, %v365_v55  ;;  %v8484_v4 = vcombine.high %v85_v62, %v93_v63 }
  0x7d   :  { %v956_v7 = vld [vmem:[%s13887_s1 + $0x1cc0] sm:$0xff]  ;;  %6373 = vmatpush2.bf16.msra.mxu0 %v9105_v8  ;;  %6414 = vmatpush2.bf16.msra.mxu1 %v9361_v9  ;;  %v8740_v5 = vcombine.high %v341_v0, %v349_v1  ;;  %v325_v8 = vld [vmem:[%s13887_s1 + $0x908] sm:$0xff] }
  0x7e   :  { %v9346_v11 = vcombine.high %v948_v6, %v956_v7  ;;  %v676_v12 = vld [vmem:[%s13887_s1 + $0x1400] sm:$0xff]  ;;  %6374 = vmatprep.subr.bf16.mxu0 %v9090_v10  ;;  %v9345_v18 = vcombine.low %v948_v6, %v956_v7  ;;  %v69_v6 = vld [vmem:[%s13887_s1 + $0x108] sm:$0xff]  ;;  %v8483_v10 = vcombine.low %v85_v62, %v93_v63 }
  0x7f   :  { %v684_v13 = vld [vmem:[%s13887_s1 + $0x1440] sm:$0xff]  ;;  %v77_v7 = vld [vmem:[%s13887_s1 + $0x148] sm:$0xff] }
  0x80   :  { %v932_v14 = vld [vmem:[%s13887_s1 + $0x1c00] sm:$0xff]  ;;  %v9074_v19 = vcombine.high %v676_v12, %v684_v13  ;;  %6415 = vmatprep.subr.bf16.mxu1 %v9346_v11  ;;  %v9073_v26 = vcombine.low %v676_v12, %v684_v13  ;;  %v333_v9 = vld [vmem:[%s13887_s1 + $0x948] sm:$0xff]  ;;  %v8739_v11 = vcombine.low %v341_v0, %v349_v1  ;;  %v8468_v12 = vcombine.high %v69_v6, %v77_v7 }
  0x81   :  { %v940_v15 = vld [vmem:[%s13887_s1 + $0x1c40] sm:$0xff]  ;;  %6375 = vmatpush2.bf16.msra.mxu0 %v9089_v17  ;;  %6416 = vmatpush2.bf16.msra.mxu1 %v9345_v18  ;;  %v8724_v13 = vcombine.high %v325_v8, %v333_v9  ;;  %v309_v17 = vld [vmem:[%s13887_s1 + $0x888] sm:$0xff] }
  0x82   :  { %v9330_v21 = vcombine.high %v932_v14, %v940_v15  ;;  %v24_v27 = vld [vmem:[%s13888_s0 + $0x20] sm:$0xff]  ;;  %6376 = vmatprep.subr.bf16.mxu0 %v9074_v19  ;;  %v9329_v29 = vcombine.low %v932_v14, %v940_v15  ;;  %v53_v14 = vld [vmem:[%s13887_s1 + $0x88] sm:$0xff]  ;;  %v8467_v19 = vcombine.low %v69_v6, %v77_v7 }
  0x83   :  { %v10217_v36 = vpack.c.bf16 %v24_v27, %v24_v27  ;;  %v61_v15 = vld [vmem:[%s13887_s1 + $0xc8] sm:$0xff] }
  0x84   :  { %6417 = vmatprep.subr.bf16.mxu1 %v9330_v21  ;;  %v317_v18 = vld [vmem:[%s13887_s1 + $0x8c8] sm:$0xff]  ;;  %v8723_v21 = vcombine.low %v325_v8, %v333_v9  ;;  %v8452_v22 = vcombine.high %v53_v14, %v61_v15 }
  0x85   :  { %6377 = vmatpush2.bf16.msra.mxu0 %v9073_v26  ;;  %6418 = vmatpush2.bf16.msra.mxu1 %v9329_v29  ;;  %v8708_v23 = vcombine.high %v309_v17, %v317_v18  ;;  %v45_v25 = vld [vmem:[%s13887_s1 + $0x48] sm:$0xff]  ;;  %v8451_v29 = vcombine.low %v53_v14, %v61_v15  ;;  %v8707_v30 = vcombine.low %v309_v17, %v317_v18 }
  0x86   :  { %6428 = vmatprep.subr.bf16.mxu0 %v8548_v32  ;;  %6469 = vmatprep.subr.bf16.mxu1 %v8804_v33  ;;  %v293_v26 = vld [vmem:[%s13887_s1 + $0x808] sm:$0xff]  ;;  %v8436_v32 = vcombine.high %v37_v24, %v45_v25 }
  0x87   :  { %v301_v27 = vld [vmem:[%s13887_s1 + $0x848] sm:$0xff] }
  0x88   :  { %6379 = vmatmul.mubr.bf16.vlgmr.msra.gmra.mxu0 %v10217_v36  ;;  %6420 = vmatmul.mubr.bf16.vlgmr.msra.gmra.mxu1 %v10225_v39  ;;  %v8692_v33 = vcombine.high %v293_v26, %v301_v27  ;;  %v277_v34 = vld [vmem:[%s13887_s1 + $0x788] sm:$0xff] }
  0x89   :  { %6429 = vmatpush1.bf16.msra.mxu0 %v8547_v40  ;;  %6470 = vmatpush1.bf16.msra.mxu1 %v8803_v41  ;;  %v285_v35 = vld [vmem:[%s13887_s1 + $0x7c8] sm:$0xff]  ;;  %v8435_v40 = vcombine.low %v37_v24, %v45_v25  ;;  %v8691_v41 = vcombine.low %v293_v26, %v301_v27 }
  0x8a   :  { %6430 = vmatprep.subr.bf16.mxu0 %v8532_v42  ;;  %6471 = vmatprep.subr.bf16.mxu1 %v8788_v43  ;;  %v533_v37 = vld [vmem:[%s13887_s1 + $0xf88] sm:$0xff]  ;;  %v8676_v42 = vcombine.high %v277_v34, %v285_v35 }
  0x8b   :  { %6460 = vmatprep.mubr.bf16.mxu0 %v9869_v58  ;;  %6501 = vmatprep.mubr.bf16.mxu1 %v9871_v59  ;;  %v541_v38 = vld [vmem:[%s13887_s1 + $0xfc8] sm:$0xff] }
  0x8c   :  { %v8932_v43 = vcombine.high %v533_v37, %v541_v38  ;;  %v261_v44 = vld [vmem:[%s13887_s1 + $0x708] sm:$0xff] }
  0x8d   :  { %6431 = vmatpush1.bf16.msra.mxu0 %v8531_v48  ;;  %6472 = vmatpush1.bf16.msra.mxu1 %v8787_v49  ;;  %v269_v45 = vld [vmem:[%s13887_s1 + $0x748] sm:$0xff]  ;;  %v8675_v48 = vcombine.low %v277_v34, %v285_v35  ;;  %v8931_v49 = vcombine.low %v533_v37, %v541_v38 }
  0x8e   :  { %6432 = vmatprep.subr.bf16.mxu0 %v8516_v50  ;;  %6473 = vmatprep.subr.bf16.mxu1 %v8772_v51  ;;  %v517_v46 = vld [vmem:[%s13887_s1 + $0xf08] sm:$0xff]  ;;  %v8660_v50 = vcombine.high %v261_v44, %v269_v45 }
  0x8f   :  { %v525_v47 = vld [vmem:[%s13887_s1 + $0xf48] sm:$0xff] }
  0x90   :  { %v8916_v51 = vcombine.high %v517_v46, %v525_v47  ;;  %v245_v52 = vld [vmem:[%s13887_s1 + $0x688] sm:$0xff] }
  0x91   :  { %6433 = vmatpush1.bf16.msra.mxu0 %v8515_v56  ;;  %6474 = vmatpush1.bf16.msra.mxu1 %v8771_v57  ;;  %v253_v53 = vld [vmem:[%s13887_s1 + $0x6c8] sm:$0xff]  ;;  %v8659_v56 = vcombine.low %v261_v44, %v269_v45  ;;  %v8915_v57 = vcombine.low %v517_v46, %v525_v47 }
  0x92   :  { %6434 = vmatprep.subr.bf16.mxu0 %v8500_v60  ;;  %6475 = vmatprep.subr.bf16.mxu1 %v8756_v61  ;;  %v501_v54 = vld [vmem:[%s13887_s1 + $0xe88] sm:$0xff]  ;;  %v8644_v60 = vcombine.high %v245_v52, %v253_v53 }
  0x93   :  { %v509_v55 = vld [vmem:[%s13887_s1 + $0xec8] sm:$0xff] }
  0x94   :  { %v8900_v61 = vcombine.high %v501_v54, %v509_v55  ;;  %v229_v62 = vld [vmem:[%s13887_s1 + $0x608] sm:$0xff] }
  0x95   :  { %6435 = vmatpush1.bf16.msra.mxu0 %v8499_v2  ;;  %6476 = vmatpush1.bf16.msra.mxu1 %v8755_v3  ;;  %v237_v63 = vld [vmem:[%s13887_s1 + $0x648] sm:$0xff]  ;;  %v8643_v2 = vcombine.low %v245_v52, %v253_v53  ;;  %v8899_v3 = vcombine.low %v501_v54, %v509_v55 }
  0x96   :  { %6436 = vmatprep.subr.bf16.mxu0 %v8484_v4  ;;  %6477 = vmatprep.subr.bf16.mxu1 %v8740_v5  ;;  %v485_v0 = vld [vmem:[%s13887_s1 + $0xe08] sm:$0xff]  ;;  %v8628_v4 = vcombine.high %v229_v62, %v237_v63 }
  0x97   :  { %v493_v1 = vld [vmem:[%s13887_s1 + $0xe48] sm:$0xff] }
  0x98   :  { %v8884_v5 = vcombine.high %v485_v0, %v493_v1  ;;  %v213_v6 = vld [vmem:[%s13887_s1 + $0x588] sm:$0xff] }
  0x99   :  { %6437 = vmatpush1.bf16.msra.mxu0 %v8483_v10  ;;  %6478 = vmatpush1.bf16.msra.mxu1 %v8739_v11  ;;  %v221_v7 = vld [vmem:[%s13887_s1 + $0x5c8] sm:$0xff]  ;;  %v8627_v10 = vcombine.low %v229_v62, %v237_v63  ;;  %v8883_v11 = vcombine.low %v485_v0, %v493_v1 }
  0x9a   :  { %6438 = vmatprep.subr.bf16.mxu0 %v8468_v12  ;;  %6479 = vmatprep.subr.bf16.mxu1 %v8724_v13  ;;  %v469_v8 = vld [vmem:[%s13887_s1 + $0xd88] sm:$0xff]  ;;  %v8612_v12 = vcombine.high %v213_v6, %v221_v7 }
  0x9b   :  { %v477_v9 = vld [vmem:[%s13887_s1 + $0xdc8] sm:$0xff] }
  0x9c   :  { %v8868_v13 = vcombine.high %v469_v8, %v477_v9  ;;  %v197_v14 = vld [vmem:[%s13887_s1 + $0x508] sm:$0xff] }
  0x9d   :  { %6439 = vmatpush1.bf16.msra.mxu0 %v8467_v19  ;;  %6480 = vmatpush1.bf16.msra.mxu1 %v8723_v21  ;;  %v205_v15 = vld [vmem:[%s13887_s1 + $0x548] sm:$0xff]  ;;  %v8611_v19 = vcombine.low %v213_v6, %v221_v7  ;;  %v8867_v21 = vcombine.low %v469_v8, %v477_v9 }
  0x9e   :  { %6440 = vmatprep.subr.bf16.mxu0 %v8452_v22  ;;  %6481 = vmatprep.subr.bf16.mxu1 %v8708_v23  ;;  %v453_v17 = vld [vmem:[%s13887_s1 + $0xd08] sm:$0xff]  ;;  %v8596_v22 = vcombine.high %v197_v14, %v205_v15 }
  0x9f   :  { %v461_v18 = vld [vmem:[%s13887_s1 + $0xd48] sm:$0xff] }
  0xa0   :  { %v8852_v23 = vcombine.high %v453_v17, %v461_v18  ;;  %v181_v24 = vld [vmem:[%s13887_s1 + $0x488] sm:$0xff] }
  0xa1   :  { %6441 = vmatpush1.bf16.msra.mxu0 %v8451_v29  ;;  %6482 = vmatpush1.bf16.msra.mxu1 %v8707_v30  ;;  %v189_v25 = vld [vmem:[%s13887_s1 + $0x4c8] sm:$0xff]  ;;  %v8595_v29 = vcombine.low %v197_v14, %v205_v15  ;;  %v8851_v30 = vcombine.low %v453_v17, %v461_v18 }
  0xa2   :  { %6442 = vmatprep.subr.bf16.mxu0 %v8436_v32  ;;  %6483 = vmatprep.subr.bf16.mxu1 %v8692_v33  ;;  %v437_v26 = vld [vmem:[%s13887_s1 + $0xc88] sm:$0xff]  ;;  %v8580_v32 = vcombine.high %v181_v24, %v189_v25 }
  0xa3   :  { %v445_v27 = vld [vmem:[%s13887_s1 + $0xcc8] sm:$0xff] }
  0xa4   :  { %v8836_v33 = vcombine.high %v437_v26, %v445_v27  ;;  %v165_v34 = vld [vmem:[%s13887_s1 + $0x408] sm:$0xff] }
  0xa5   :  { %6443 = vmatpush1.bf16.msra.mxu0 %v8435_v40  ;;  %6484 = vmatpush1.bf16.msra.mxu1 %v8691_v41  ;;  %v173_v35 = vld [vmem:[%s13887_s1 + $0x448] sm:$0xff]  ;;  %v8579_v40 = vcombine.low %v181_v24, %v189_v25  ;;  %v8835_v41 = vcombine.low %v437_v26, %v445_v27 }
  0xa6   :  { %6444 = vmatprep.subr.bf16.mxu0 %v8676_v42  ;;  %6485 = vmatprep.subr.bf16.mxu1 %v8932_v43  ;;  %v421_v37 = vld [vmem:[%s13887_s1 + $0xc08] sm:$0xff]  ;;  %v8564_v42 = vcombine.high %v165_v34, %v173_v35 }
  0xa7   :  { %v429_v38 = vld [vmem:[%s13887_s1 + $0xc48] sm:$0xff] }
  0xa8   :  { %v8820_v43 = vcombine.high %v421_v37, %v429_v38  ;;  %v661_v44 = vld [vmem:[%s13887_s1 + $0x1388] sm:$0xff] }
  0xa9   :  { %6445 = vmatpush2.bf16.msra.mxu0 %v8675_v48  ;;  %6486 = vmatpush2.bf16.msra.mxu1 %v8931_v49  ;;  %v669_v45 = vld [vmem:[%s13887_s1 + $0x13c8] sm:$0xff]  ;;  %v8563_v48 = vcombine.low %v165_v34, %v173_v35  ;;  %v8819_v49 = vcombine.low %v421_v37, %v429_v38 }
  0xaa   :  { %6446 = vmatprep.subr.bf16.mxu0 %v8660_v50  ;;  %6487 = vmatprep.subr.bf16.mxu1 %v8916_v51  ;;  %v917_v46 = vld [vmem:[%s13887_s1 + $0x1b88] sm:$0xff]  ;;  %v9060_v50 = vcombine.high %v661_v44, %v669_v45 }
  0xab   :  { %v925_v47 = vld [vmem:[%s13887_s1 + $0x1bc8] sm:$0xff] }
  0xac   :  { %v9316_v51 = vcombine.high %v917_v46, %v925_v47  ;;  %v645_v52 = vld [vmem:[%s13887_s1 + $0x1308] sm:$0xff] }
  0xad   :  { %6447 = vmatpush2.bf16.msra.mxu0 %v8659_v56  ;;  %6488 = vmatpush2.bf16.msra.mxu1 %v8915_v57  ;;  %v653_v53 = vld [vmem:[%s13887_s1 + $0x1348] sm:$0xff]  ;;  %v9059_v56 = vcombine.low %v661_v44, %v669_v45  ;;  %v9315_v57 = vcombine.low %v917_v46, %v925_v47 }
  0xae   :  { %6448 = vmatprep.subr.bf16.mxu0 %v8644_v60  ;;  %6489 = vmatprep.subr.bf16.mxu1 %v8900_v61  ;;  %v901_v54 = vld [vmem:[%s13887_s1 + $0x1b08] sm:$0xff]  ;;  %v9044_v60 = vcombine.high %v645_v52, %v653_v53 }
  0xaf   :  { %v909_v55 = vld [vmem:[%s13887_s1 + $0x1b48] sm:$0xff] }
  0xb0   :  { %v9300_v61 = vcombine.high %v901_v54, %v909_v55  ;;  %v629_v62 = vld [vmem:[%s13887_s1 + $0x1288] sm:$0xff] }
  0xb1   :  { %6449 = vmatpush2.bf16.msra.mxu0 %v8643_v2  ;;  %6490 = vmatpush2.bf16.msra.mxu1 %v8899_v3  ;;  %v637_v63 = vld [vmem:[%s13887_s1 + $0x12c8] sm:$0xff]  ;;  %v9043_v2 = vcombine.low %v645_v52, %v653_v53  ;;  %v9299_v3 = vcombine.low %v901_v54, %v909_v55 }
  0xb2   :  { %6450 = vmatprep.subr.bf16.mxu0 %v8628_v4  ;;  %6491 = vmatprep.subr.bf16.mxu1 %v8884_v5  ;;  %v885_v0 = vld [vmem:[%s13887_s1 + $0x1a88] sm:$0xff]  ;;  %v9028_v4 = vcombine.high %v629_v62, %v637_v63 }
  0xb3   :  { %v893_v1 = vld [vmem:[%s13887_s1 + $0x1ac8] sm:$0xff] }
  0xb4   :  { %v9284_v5 = vcombine.high %v885_v0, %v893_v1  ;;  %v613_v6 = vld [vmem:[%s13887_s1 + $0x1208] sm:$0xff] }
  0xb5   :  { %6451 = vmatpush2.bf16.msra.mxu0 %v8627_v10  ;;  %6492 = vmatpush2.bf16.msra.mxu1 %v8883_v11  ;;  %v621_v7 = vld [vmem:[%s13887_s1 + $0x1248] sm:$0xff]  ;;  %v9027_v10 = vcombine.low %v629_v62, %v637_v63  ;;  %v9283_v11 = vcombine.low %v885_v0, %v893_v1 }
  0xb6   :  { %6452 = vmatprep.subr.bf16.mxu0 %v8612_v12  ;;  %6493 = vmatprep.subr.bf16.mxu1 %v8868_v13  ;;  %v869_v8 = vld [vmem:[%s13887_s1 + $0x1a08] sm:$0xff]  ;;  %v9012_v12 = vcombine.high %v613_v6, %v621_v7 }
  0xb7   :  { %v877_v9 = vld [vmem:[%s13887_s1 + $0x1a48] sm:$0xff] }
  0xb8   :  { %v9268_v13 = vcombine.high %v869_v8, %v877_v9  ;;  %v597_v14 = vld [vmem:[%s13887_s1 + $0x1188] sm:$0xff] }
  0xb9   :  { %6453 = vmatpush2.bf16.msra.mxu0 %v8611_v19  ;;  %6494 = vmatpush2.bf16.msra.mxu1 %v8867_v21  ;;  %v605_v15 = vld [vmem:[%s13887_s1 + $0x11c8] sm:$0xff]  ;;  %v9011_v19 = vcombine.low %v613_v6, %v621_v7  ;;  %v9267_v21 = vcombine.low %v869_v8, %v877_v9 }
  0xba   :  { %6454 = vmatprep.subr.bf16.mxu0 %v8596_v22  ;;  %6495 = vmatprep.subr.bf16.mxu1 %v8852_v23  ;;  %v853_v17 = vld [vmem:[%s13887_s1 + $0x1988] sm:$0xff]  ;;  %v8996_v22 = vcombine.high %v597_v14, %v605_v15 }
  0xbb   :  { %v861_v18 = vld [vmem:[%s13887_s1 + $0x19c8] sm:$0xff] }
  0xbc   :  { %v9252_v23 = vcombine.high %v853_v17, %v861_v18  ;;  %v581_v24 = vld [vmem:[%s13887_s1 + $0x1108] sm:$0xff] }
  0xbd   :  { %6455 = vmatpush2.bf16.msra.mxu0 %v8595_v29  ;;  %6496 = vmatpush2.bf16.msra.mxu1 %v8851_v30  ;;  %v589_v25 = vld [vmem:[%s13887_s1 + $0x1148] sm:$0xff]  ;;  %v8995_v29 = vcombine.low %v597_v14, %v605_v15  ;;  %v9251_v30 = vcombine.low %v853_v17, %v861_v18 }
  0xbe   :  { %6456 = vmatprep.subr.bf16.mxu0 %v8580_v32  ;;  %6497 = vmatprep.subr.bf16.mxu1 %v8836_v33  ;;  %v837_v26 = vld [vmem:[%s13887_s1 + $0x1908] sm:$0xff]  ;;  %v8980_v32 = vcombine.high %v581_v24, %v589_v25 }
  0xbf   :  { %v845_v27 = vld [vmem:[%s13887_s1 + $0x1948] sm:$0xff] }
  0xc0   :  { %v9236_v33 = vcombine.high %v837_v26, %v845_v27  ;;  %v565_v34 = vld [vmem:[%s13887_s1 + $0x1088] sm:$0xff] }
  0xc1   :  { %6457 = vmatpush2.bf16.msra.mxu0 %v8579_v40  ;;  %6498 = vmatpush2.bf16.msra.mxu1 %v8835_v41  ;;  %v573_v35 = vld [vmem:[%s13887_s1 + $0x10c8] sm:$0xff]  ;;  %v8979_v40 = vcombine.low %v581_v24, %v589_v25  ;;  %v9235_v41 = vcombine.low %v837_v26, %v845_v27 }
  0xc2   :  { %6458 = vmatprep.subr.bf16.mxu0 %v8564_v42  ;;  %6499 = vmatprep.subr.bf16.mxu1 %v8820_v43  ;;  %v821_v37 = vld [vmem:[%s13887_s1 + $0x1888] sm:$0xff]  ;;  %v8964_v42 = vcombine.high %v565_v34, %v573_v35 }
  0xc3   :  { %v829_v38 = vld [vmem:[%s13887_s1 + $0x18c8] sm:$0xff] }
  0xc4   :  { %v9220_v43 = vcombine.high %v821_v37, %v829_v38  ;;  %v549_v44 = vld [vmem:[%s13887_s1 + $0x1008] sm:$0xff] }
  0xc5   :  { %6459 = vmatpush2.bf16.msra.mxu0 %v8563_v48  ;;  %6500 = vmatpush2.bf16.msra.mxu1 %v8819_v49  ;;  %v557_v45 = vld [vmem:[%s13887_s1 + $0x1048] sm:$0xff]  ;;  %v8963_v48 = vcombine.low %v565_v34, %v573_v35  ;;  %v9219_v49 = vcombine.low %v821_v37, %v829_v38 }
  0xc6   :  { %6510 = vmatprep.subr.bf16.mxu0 %v9060_v50  ;;  %6551 = vmatprep.subr.bf16.mxu1 %v9316_v51  ;;  %v805_v46 = vld [vmem:[%s13887_s1 + $0x1808] sm:$0xff]  ;;  %v8948_v50 = vcombine.high %v549_v44, %v557_v45 }
  0xc7   :  { %v813_v47 = vld [vmem:[%s13887_s1 + $0x1848] sm:$0xff] }
  0xc8   :  { %6461 = vmatmul.mubr.bf16.vlgmr.msra.gmra.mxu0 %v10001_v16  ;;  %6502 = vmatmul.mubr.bf16.vlgmr.msra.gmra.mxu1 %v10012_v20  ;;  %v9204_v51 = vcombine.high %v805_v46, %v813_v47  ;;  %v789_v52 = vld [vmem:[%s13887_s1 + $0x1788] sm:$0xff] }
  0xc9   :  { %6511 = vmatpush1.bf16.msra.mxu0 %v9059_v56  ;;  %6552 = vmatpush1.bf16.msra.mxu1 %v9315_v57  ;;  %v797_v53 = vld [vmem:[%s13887_s1 + $0x17c8] sm:$0xff]  ;;  %v8947_v56 = vcombine.low %v549_v44, %v557_v45  ;;  %v9203_v57 = vcombine.low %v805_v46, %v813_v47 }
  0xca   :  { %6512 = vmatprep.subr.bf16.mxu0 %v9044_v60  ;;  %6553 = vmatprep.subr.bf16.mxu1 %v9300_v61  ;;  %v1045_v54 = vld [vmem:[%s13887_s1 + $0x1f88] sm:$0xff]  ;;  %v9188_v60 = vcombine.high %v789_v52, %v797_v53 }
  0xcb   :  { %6542 = vmatprep.mubr.bf16.mxu0 %v10023_v28  ;;  %6583 = vmatprep.mubr.bf16.mxu1 %v10032_v31  ;;  %v1053_v55 = vld [vmem:[%s13887_s1 + $0x1fc8] sm:$0xff] }
  0xcc   :  { %v9444_v61 = vcombine.high %v1045_v54, %v1053_v55  ;;  %v773_v62 = vld [vmem:[%s13887_s1 + $0x1708] sm:$0xff] }
  0xcd   :  { %6513 = vmatpush1.bf16.msra.mxu0 %v9043_v2  ;;  %6554 = vmatpush1.bf16.msra.mxu1 %v9299_v3  ;;  %v781_v63 = vld [vmem:[%s13887_s1 + $0x1748] sm:$0xff]  ;;  %v9187_v2 = vcombine.low %v789_v52, %v797_v53  ;;  %v9443_v3 = vcombine.low %v1045_v54, %v1053_v55 }
  0xce   :  { %6514 = vmatprep.subr.bf16.mxu0 %v9028_v4  ;;  %6555 = vmatprep.subr.bf16.mxu1 %v9284_v5  ;;  %v1029_v0 = vld [vmem:[%s13887_s1 + $0x1f08] sm:$0xff]  ;;  %v9172_v4 = vcombine.high %v773_v62, %v781_v63 }
  0xcf   :  { %v1037_v1 = vld [vmem:[%s13887_s1 + $0x1f48] sm:$0xff] }
  0xd0   :  { %v9428_v5 = vcombine.high %v1029_v0, %v1037_v1  ;;  %v757_v6 = vld [vmem:[%s13887_s1 + $0x1688] sm:$0xff] }
  0xd1   :  { %6515 = vmatpush1.bf16.msra.mxu0 %v9027_v10  ;;  %6556 = vmatpush1.bf16.msra.mxu1 %v9283_v11  ;;  %v765_v7 = vld [vmem:[%s13887_s1 + $0x16c8] sm:$0xff]  ;;  %v9171_v10 = vcombine.low %v773_v62, %v781_v63  ;;  %v9427_v11 = vcombine.low %v1029_v0, %v1037_v1  ;;  %v150_v0 = vld [vmem:[%s13887_s1 + $0x390] sm:$0xff] }
  0xd2   :  { %6516 = vmatprep.subr.bf16.mxu0 %v9012_v12  ;;  %6557 = vmatprep.subr.bf16.mxu1 %v9268_v13  ;;  %v1013_v8 = vld [vmem:[%s13887_s1 + $0x1e88] sm:$0xff]  ;;  %v9156_v12 = vcombine.high %v757_v6, %v765_v7  ;;  %v158_v1 = vld [vmem:[%s13887_s1 + $0x3d0] sm:$0xff] }
  0xd3   :  { %v1021_v9 = vld [vmem:[%s13887_s1 + $0x1ec8] sm:$0xff] }
  0xd4   :  { %v9412_v13 = vcombine.high %v1013_v8, %v1021_v9  ;;  %v741_v14 = vld [vmem:[%s13887_s1 + $0x1608] sm:$0xff] }
  0xd5   :  { %6517 = vmatpush1.bf16.msra.mxu0 %v9011_v19  ;;  %6558 = vmatpush1.bf16.msra.mxu1 %v9267_v21  ;;  %v749_v15 = vld [vmem:[%s13887_s1 + $0x1648] sm:$0xff]  ;;  %v9155_v19 = vcombine.low %v757_v6, %v765_v7  ;;  %v9411_v21 = vcombine.low %v1013_v8, %v1021_v9  ;;  %v10614_v7 = vld [vmem:[%s13889_s2] sm:$0xff]  ;;  %v8550_v8 = vcombine.high %v150_v0, %v158_v1 }
  0xd6   :  { %6518 = vmatprep.subr.bf16.mxu0 %v8996_v22  ;;  %6559 = vmatprep.subr.bf16.mxu1 %v9252_v23  ;;  %v997_v17 = vld [vmem:[%s13887_s1 + $0x1e08] sm:$0xff]  ;;  %v9140_v22 = vcombine.high %v741_v14, %v749_v15 }
  0xd7   :  { %v1005_v18 = vld [vmem:[%s13887_s1 + $0x1e48] sm:$0xff] }
  0xd8   :  { %v9396_v23 = vcombine.high %v997_v17, %v1005_v18  ;;  %v725_v24 = vld [vmem:[%s13887_s1 + $0x1588] sm:$0xff] }
  0xd9   :  { %6519 = vmatpush1.bf16.msra.mxu0 %v8995_v29  ;;  %6560 = vmatpush1.bf16.msra.mxu1 %v9251_v30  ;;  %v733_v25 = vld [vmem:[%s13887_s1 + $0x15c8] sm:$0xff]  ;;  %v9139_v29 = vcombine.low %v741_v14, %v749_v15  ;;  %v9395_v30 = vcombine.low %v997_v17, %v1005_v18  ;;  %v398_v14 = vld [vmem:[%s13887_s1 + $0xb50] sm:$0xff]  ;;  %v8549_v17 = vcombine.low %v150_v0, %v158_v1 }
  0xda   :  { %6520 = vmatprep.subr.bf16.mxu0 %v8980_v32  ;;  %6561 = vmatprep.subr.bf16.mxu1 %v9236_v33  ;;  %v981_v26 = vld [vmem:[%s13887_s1 + $0x1d88] sm:$0xff]  ;;  %v9124_v32 = vcombine.high %v725_v24, %v733_v25 }
  0xdb   :  { %v989_v27 = vld [vmem:[%s13887_s1 + $0x1dc8] sm:$0xff] }
  0xdc   :  { %v9380_v33 = vcombine.high %v981_v26, %v989_v27  ;;  %v709_v34 = vld [vmem:[%s13887_s1 + $0x1508] sm:$0xff] }
  0xdd   :  { %6521 = vmatpush1.bf16.msra.mxu0 %v8979_v40  ;;  %6562 = vmatpush1.bf16.msra.mxu1 %v9235_v41  ;;  %v717_v35 = vld [vmem:[%s13887_s1 + $0x1548] sm:$0xff]  ;;  %v9123_v40 = vcombine.low %v725_v24, %v733_v25  ;;  %v9379_v41 = vcombine.low %v981_v26, %v989_v27  ;;  %v126_v24 = vld [vmem:[%s13887_s1 + $0x2d0] sm:$0xff] }
  0xde   :  { %6522 = vmatprep.subr.bf16.mxu0 %v8964_v42  ;;  %6563 = vmatprep.subr.bf16.mxu1 %v9220_v43  ;;  %v965_v37 = vld [vmem:[%s13887_s1 + $0x1d08] sm:$0xff]  ;;  %v9108_v42 = vcombine.high %v709_v34, %v717_v35  ;;  %v374_v26 = vld [vmem:[%s13887_s1 + $0xa90] sm:$0xff] }
  0xdf   :  { %v973_v38 = vld [vmem:[%s13887_s1 + $0x1d48] sm:$0xff]  ;;  %v382_v27 = vld [vmem:[%s13887_s1 + $0xad0] sm:$0xff] }
  0xe0   :  { %v9364_v43 = vcombine.high %v965_v37, %v973_v38  ;;  %v693_v44 = vld [vmem:[%s13887_s1 + $0x1488] sm:$0xff] }
  0xe1   :  { %6523 = vmatpush1.bf16.msra.mxu0 %v8963_v48  ;;  %6564 = vmatpush1.bf16.msra.mxu1 %v9219_v49  ;;  %v701_v45 = vld [vmem:[%s13887_s1 + $0x14c8] sm:$0xff]  ;;  %v9107_v48 = vcombine.low %v709_v34, %v717_v35  ;;  %v1064_v49 = vlaneseq }
  0xe2   :  { %6524 = vmatprep.subr.bf16.mxu0 %v8948_v50  ;;  %6565 = vmatprep.subr.bf16.mxu1 %v9204_v51  ;;  %v949_v46 = vld [vmem:[%s13887_s1 + $0x1c88] sm:$0xff]  ;;  %v9363_v50 = vcombine.low %v965_v37, %v973_v38  ;;  %v9092_v51 = vcombine.high %v693_v44, %v701_v45 }
  0xe3   :  { %v957_v47 = vld [vmem:[%s13887_s1 + $0x1cc8] sm:$0xff] }
  0xe4   :  { %v9348_v52 = vcombine.high %v949_v46, %v957_v47  ;;  %v677_v53 = vld [vmem:[%s13887_s1 + $0x1408] sm:$0xff] }
  0xe5   :  { %6525 = vmatpush1.bf16.msra.mxu0 %v8947_v56  ;;  %6566 = vmatpush1.bf16.msra.mxu1 %v9203_v57  ;;  %v685_v54 = vld [vmem:[%s13887_s1 + $0x1448] sm:$0xff]  ;;  %v9091_v57 = vcombine.low %v693_v44, %v701_v45  ;;  %v358_v45 = vld [vmem:[%s13887_s1 + $0xa10] sm:$0xff] }
  0xe6   :  { %6526 = vmatprep.subr.bf16.mxu0 %v9188_v60  ;;  %6567 = vmatprep.subr.bf16.mxu1 %v9444_v61  ;;  %v933_v55 = vld [vmem:[%s13887_s1 + $0x1c08] sm:$0xff]  ;;  %v10596_v60 = vshrl.u32 %v1064_v49, 7  ;;  %v9347_v61 = vcombine.low %v949_v46, %v957_v47  ;;  %v9076_v62 = vcombine.high %v677_v53, %v685_v54  ;;  %v366_v46 = vld [vmem:[%s13887_s1 + $0xa50] sm:$0xff] }
  0xe7   :  { %v941_v56 = vld [vmem:[%s13887_s1 + $0x1c48] sm:$0xff]  ;;  %v8757_v0 = vcombine.low %v358_v45, %v366_v46 }
  0xe8   :  { %v9332_v63 = vcombine.high %v933_v55, %v941_v56  ;;  %v9331_v6 = vcombine.low %v933_v55, %v941_v56  ;;  %v8758_v55 = vcombine.high %v358_v45, %v366_v46  ;;  %v86_v56 = vld [vmem:[%s13887_s1 + $0x190] sm:$0xff] }
  0xe9   :  { %6527 = vmatpush2.bf16.msra.mxu0 %v9187_v2  ;;  %6568 = vmatpush2.bf16.msra.mxu1 %v9443_v3  ;;  %v406_v2 = vld [vmem:[%s13887_s1 + $0xb90] sm:$0xff] }
  0xea   :  { %6528 = vmatprep.subr.bf16.mxu0 %v9172_v4  ;;  %6569 = vmatprep.subr.bf16.mxu1 %v9428_v5  ;;  %v414_v3 = vld [vmem:[%s13887_s1 + $0xbd0] sm:$0xff]  ;;  %v9075_v4 = vcombine.low %v677_v53, %v685_v54  ;;  %v1066_v5 = vsub.s32 0, %v10596_v60 }
  0xeb   :  { %v8806_v9 = vcombine.high %v406_v2, %v414_v3  ;;  %v8805_v18 = vcombine.low %v406_v2, %v414_v3  ;;  %v70_v3 = vld [vmem:[%s13887_s1 + $0x110] sm:$0xff] }
  0xec   :  { %v1067_v15 = vrot.slane %v10614_v7, %v1066_v5  ;;  %v262_v45 = vld [vmem:[%s13887_s1 + $0x710] sm:$0xff] }
  0xed   :  { %6529 = vmatpush2.bf16.msra.mxu0 %v9171_v10  ;;  %6570 = vmatpush2.bf16.msra.mxu1 %v9427_v11  ;;  %v1070_v10 = vsub.s32 1, %v10596_v60  ;;  %v134_v11 = vld [vmem:[%s13887_s1 + $0x310] sm:$0xff] }
  0xee   :  { %6530 = vmatprep.subr.bf16.mxu0 %v9156_v12  ;;  %6571 = vmatprep.subr.bf16.mxu1 %v9412_v13  ;;  %v142_v12 = vld [vmem:[%s13887_s1 + $0x350] sm:$0xff] }
  0xef   :  { %v390_v13 = vld [vmem:[%s13887_s1 + $0xb10] sm:$0xff] }
  0xf0   :  { %v8789_v34 = vcombine.low %v390_v13, %v398_v14  ;;  %v270_v46 = vld [vmem:[%s13887_s1 + $0x750] sm:$0xff] }
  0xf1   :  { %6531 = vmatpush2.bf16.msra.mxu0 %v9155_v19  ;;  %6572 = vmatpush2.bf16.msra.mxu1 %v9411_v21  ;;  %v8534_v19 = vcombine.high %v134_v11, %v142_v12  ;;  %v1071_v21 = vrot.slane %v10614_v7, %v1070_v10 }
  0xf2   :  { %6532 = vmatprep.subr.bf16.mxu0 %v9140_v22  ;;  %6573 = vmatprep.subr.bf16.mxu1 %v9396_v23  ;;  %v8790_v22 = vcombine.high %v390_v13, %v398_v14  ;;  %v118_v23 = vld [vmem:[%s13887_s1 + $0x290] sm:$0xff] }
  0xf3   :  { %v8518_v35 = vcombine.high %v118_v23, %v126_v24  ;;  %v54_v14 = vld [vmem:[%s13887_s1 + $0x90] sm:$0xff] }
  0xf5   :  { %6533 = vmatpush2.bf16.msra.mxu0 %v9139_v29  ;;  %6574 = vmatpush2.bf16.msra.mxu1 %v9395_v30 }
  0xf6   :  { %6534 = vmatprep.subr.bf16.mxu0 %v9124_v32  ;;  %6575 = vmatprep.subr.bf16.mxu1 %v9380_v33  ;;  %v8533_v32 = vcombine.low %v134_v11, %v142_v12 }
  0xf9   :  { %6535 = vmatpush2.bf16.msra.mxu0 %v9123_v40  ;;  %6576 = vmatpush2.bf16.msra.mxu1 %v9379_v41  ;;  %v8774_v41 = vcombine.high %v374_v26, %v382_v27 }
  0xfa   :  { %6536 = vmatprep.subr.bf16.mxu0 %v9108_v42  ;;  %6577 = vmatprep.subr.bf16.mxu1 %v9364_v43  ;;  %v102_v42 = vld [vmem:[%s13887_s1 + $0x210] sm:$0xff] }
  0xfb   :  { %v110_v43 = vld [vmem:[%s13887_s1 + $0x250] sm:$0xff] }
  0xfc   :  { %v8502_v53 = vcombine.high %v102_v42, %v110_v43 }
  0xfd   :  { %6537 = vmatpush2.bf16.msra.mxu0 %v9107_v48  ;;  %6578 = vmatpush2.bf16.msra.mxu1 %v9363_v50  ;;  %v8517_v50 = vcombine.low %v118_v23, %v126_v24  ;;  %v38_v24 = vld [vmem:[%s13887_s1 + $0x10] sm:$0xff] }
  0xfe   :  { %6538 = vmatprep.subr.bf16.mxu0 %v9092_v51  ;;  %6579 = vmatprep.subr.bf16.mxu1 %v9348_v52  ;;  %v8773_v52 = vcombine.low %v374_v26, %v382_v27  ;;  %v294_v26 = vld [vmem:[%s13887_s1 + $0x810] sm:$0xff] }
  0xff   :  { %v302_v27 = vld [vmem:[%s13887_s1 + $0x850] sm:$0xff] }
 0x101   :  { %6539 = vmatpush2.bf16.msra.mxu0 %v9091_v57  ;;  %6580 = vmatpush2.bf16.msra.mxu1 %v9347_v61  ;;  %v94_v57 = vld [vmem:[%s13887_s1 + $0x1d0] sm:$0xff] }
 0x102   :  { %6540 = vmatprep.subr.bf16.mxu0 %v9076_v62  ;;  %6581 = vmatprep.subr.bf16.mxu1 %v9332_v63  ;;  %v342_v61 = vld [vmem:[%s13887_s1 + $0x990] sm:$0xff]  ;;  %v8501_v63 = vcombine.low %v102_v42, %v110_v43  ;;  %v8486_v1 = vcombine.high %v86_v56, %v94_v57  ;;  %v8693_v42 = vcombine.low %v294_v26, %v302_v27 }
 0x103   :  { %v350_v62 = vld [vmem:[%s13887_s1 + $0x9d0] sm:$0xff] }
 0x104   :  { %v8742_v2 = vcombine.high %v342_v61, %v350_v62  ;;  %v8741_v11 = vcombine.low %v342_v61, %v350_v62  ;;  %v510_v61 = vld [vmem:[%s13887_s1 + $0xed0] sm:$0xff]  ;;  %v8661_v62 = vcombine.low %v262_v45, %v270_v46 }
 0x105   :  { %6541 = vmatpush2.bf16.msra.mxu0 %v9075_v4  ;;  %6582 = vmatpush2.bf16.msra.mxu1 %v9331_v6  ;;  %v78_v4 = vld [vmem:[%s13887_s1 + $0x150] sm:$0xff] }
 0x106   :  { %6592 = vmatprep.subr.bf16.mxu0 %v8550_v8  ;;  %6633 = vmatprep.subr.bf16.mxu1 %v8806_v9  ;;  %v326_v6 = vld [vmem:[%s13887_s1 + $0x910] sm:$0xff]  ;;  %v8485_v9 = vcombine.low %v86_v56, %v94_v57  ;;  %v8470_v12 = vcombine.high %v70_v3, %v78_v4 }
 0x107   :  { %v6339_v30 = vpop.f32.mrf.mxu1  ;;  %v334_v8 = vld [vmem:[%s13887_s1 + $0x950] sm:$0xff] }
 0x108   :  { %v6298_v25 = vpop.f32.mrf.mxu0  ;;  %6543 = vmatmul.mubr.bf16.vlgmr.msra.gmra.mxu0 %v10217_v36  ;;  %6584 = vmatmul.mubr.bf16.vlgmr.msra.gmra.mxu1 %v10225_v39  ;;  %v8726_v13 = vcombine.high %v326_v6, %v334_v8  ;;  %v254_v56 = vld [vmem:[%s13887_s1 + $0x6d0] sm:$0xff] }
 0x109   :  { %v6299_v29 = vadd.f32 %v6298_v25, %v1067_v15  ;;  %6593 = vmatpush1.bf16.msra.mxu0 %v8549_v17  ;;  %6634 = vmatpush1.bf16.msra.mxu1 %v8805_v18  ;;  %v6341_v40 = vpop.f32.mrf.mxu1  ;;  %v62_v15 = vld [vmem:[%s13887_s1 + $0xd0] sm:$0xff] }
 0x10a   :  { %v6300_v33 = vpop.f32.mrf.mxu0  ;;  %6594 = vmatprep.subr.bf16.mxu0 %v8534_v19  ;;  %6635 = vmatprep.subr.bf16.mxu1 %v8790_v22  ;;  %v310_v17 = vld [vmem:[%s13887_s1 + $0x890] sm:$0xff]  ;;  %v8469_v19 = vcombine.low %v70_v3, %v78_v4  ;;  %v8454_v22 = vcombine.high %v54_v14, %v62_v15 }
 0x10b   :  { %v10649_v37 = vadd.f32 %v6339_v30, %v6299_v29  ;;  %v6301_v38 = vadd.f32 %v6300_v33, %v1071_v21  ;;  %6624 = vmatprep.mubr.bf16.mxu0 %v9869_v58  ;;  %6665 = vmatprep.mubr.bf16.mxu1 %v9871_v59  ;;  %v6343_v48 = vpop.f32.mrf.mxu1  ;;  %v318_v18 = vld [vmem:[%s13887_s1 + $0x8d0] sm:$0xff]  ;;  %v8725_v21 = vcombine.low %v326_v6, %v334_v8 }
 0x10c   :  { %v6302_v44 = vpop.f32.mrf.mxu0  ;;  %v8710_v23 = vcombine.high %v310_v17, %v318_v18  ;;  %v46_v25 = vld [vmem:[%s13887_s1 + $0x50] sm:$0xff]  ;;  %v8453_v29 = vcombine.low %v54_v14, %v62_v15  ;;  %v8709_v30 = vcombine.low %v310_v17, %v318_v18  ;;  %v8694_v33 = vcombine.high %v294_v26, %v302_v27 }
 0x10d   :  { %v10665_v47 = vadd.f32 %v6341_v40, %v6301_v38  ;;  %6595 = vmatpush1.bf16.msra.mxu0 %v8533_v32  ;;  %6636 = vmatpush1.bf16.msra.mxu1 %v8789_v34  ;;  %v6344_v54 = vpop.f32.mrf.mxu1  ;;  %v8438_v32 = vcombine.high %v38_v24, %v46_v25  ;;  %v278_v34 = vld [vmem:[%s13887_s1 + $0x790] sm:$0xff] }
 0x10e   :  { %v6303_v51 = vpop.f32.mrf.mxu0  ;;  %6596 = vmatprep.subr.bf16.mxu0 %v8518_v35  ;;  %6637 = vmatprep.subr.bf16.mxu1 %v8774_v41  ;;  %v286_v35 = vld [vmem:[%s13887_s1 + $0x7d0] sm:$0xff]  ;;  %v8437_v41 = vcombine.low %v38_v24, %v46_v25 }
 0x10f   :  { %v534_v38 = vld [vmem:[%s13887_s1 + $0xf90] sm:$0xff]  ;;  %v8678_v43 = vcombine.high %v278_v34, %v286_v35  ;;  %v8677_v51 = vcombine.low %v278_v34, %v286_v35 }
 0x110   :  { %v542_v40 = vld [vmem:[%s13887_s1 + $0xfd0] sm:$0xff] }
 0x111   :  { %6597 = vmatpush1.bf16.msra.mxu0 %v8517_v50  ;;  %6638 = vmatpush1.bf16.msra.mxu1 %v8773_v52  ;;  %v8934_v44 = vcombine.high %v534_v38, %v542_v40  ;;  %v518_v48 = vld [vmem:[%s13887_s1 + $0xf10] sm:$0xff]  ;;  %v8933_v52 = vcombine.low %v534_v38, %v542_v40 }
 0x112   :  { %6598 = vmatprep.subr.bf16.mxu0 %v8502_v53  ;;  %6639 = vmatprep.subr.bf16.mxu1 %v8758_v55  ;;  %v526_v50 = vld [vmem:[%s13887_s1 + $0xf50] sm:$0xff]  ;;  %v8662_v53 = vcombine.high %v262_v45, %v270_v46 }
 0x113   :  { %v8918_v54 = vcombine.high %v518_v48, %v526_v50  ;;  %v246_v55 = vld [vmem:[%s13887_s1 + $0x690] sm:$0xff] }
 0x114   :  { %v502_v57 = vld [vmem:[%s13887_s1 + $0xe90] sm:$0xff]  ;;  %v8645_v8 = vcombine.low %v246_v55, %v254_v56 }
 0x115   :  { %6599 = vmatpush1.bf16.msra.mxu0 %v8501_v63  ;;  %6640 = vmatpush1.bf16.msra.mxu1 %v8757_v0  ;;  %v8917_v63 = vcombine.low %v518_v48, %v526_v50  ;;  %v8646_v0 = vcombine.high %v246_v55, %v254_v56  ;;  %v238_v3 = vld [vmem:[%s13887_s1 + $0x650] sm:$0xff] }
 0x116   :  { %6600 = vmatprep.subr.bf16.mxu0 %v8486_v1  ;;  %6641 = vmatprep.subr.bf16.mxu1 %v8742_v2  ;;  %v8902_v1 = vcombine.high %v502_v57, %v510_v61  ;;  %v230_v2 = vld [vmem:[%s13887_s1 + $0x610] sm:$0xff] }
 0x117   :  { %v486_v4 = vld [vmem:[%s13887_s1 + $0xe10] sm:$0xff]  ;;  %v8629_v18 = vcombine.low %v230_v2, %v238_v3 }
 0x118   :  { %v494_v6 = vld [vmem:[%s13887_s1 + $0xe50] sm:$0xff] }
 0x119   :  { %6601 = vmatpush1.bf16.msra.mxu0 %v8485_v9  ;;  %6642 = vmatpush1.bf16.msra.mxu1 %v8741_v11  ;;  %v8901_v9 = vcombine.low %v502_v57, %v510_v61  ;;  %v8630_v11 = vcombine.high %v230_v2, %v238_v3  ;;  %v222_v14 = vld [vmem:[%s13887_s1 + $0x5d0] sm:$0xff] }
 0x11a   :  { %6602 = vmatprep.subr.bf16.mxu0 %v8470_v12  ;;  %6643 = vmatprep.subr.bf16.mxu1 %v8726_v13  ;;  %v8886_v12 = vcombine.high %v486_v4, %v494_v6  ;;  %v214_v13 = vld [vmem:[%s13887_s1 + $0x590] sm:$0xff] }
 0x11b   :  { %v470_v15 = vld [vmem:[%s13887_s1 + $0xd90] sm:$0xff]  ;;  %v8613_v27 = vcombine.low %v214_v13, %v222_v14 }
 0x11c   :  { %v478_v17 = vld [vmem:[%s13887_s1 + $0xdd0] sm:$0xff] }
 0x11d   :  { %6603 = vmatpush1.bf16.msra.mxu0 %v8469_v19  ;;  %6644 = vmatpush1.bf16.msra.mxu1 %v8725_v21  ;;  %v8885_v19 = vcombine.low %v486_v4, %v494_v6  ;;  %v8614_v21 = vcombine.high %v214_v13, %v222_v14  ;;  %v206_v24 = vld [vmem:[%s13887_s1 + $0x550] sm:$0xff] }
 0x11e   :  { %6604 = vmatprep.subr.bf16.mxu0 %v8454_v22  ;;  %6645 = vmatprep.subr.bf16.mxu1 %v8710_v23  ;;  %v8870_v22 = vcombine.high %v470_v15, %v478_v17  ;;  %v198_v23 = vld [vmem:[%s13887_s1 + $0x510] sm:$0xff] }
 0x11f   :  { %v454_v25 = vld [vmem:[%s13887_s1 + $0xd10] sm:$0xff]  ;;  %v8597_v40 = vcombine.low %v198_v23, %v206_v24 }
 0x120   :  { %v462_v26 = vld [vmem:[%s13887_s1 + $0xd50] sm:$0xff] }
 0x121   :  { %6605 = vmatpush1.bf16.msra.mxu0 %v8453_v29  ;;  %6646 = vmatpush1.bf16.msra.mxu1 %v8709_v30  ;;  %v8869_v29 = vcombine.low %v470_v15, %v478_v17  ;;  %v8598_v30 = vcombine.high %v198_v23, %v206_v24  ;;  %v190_v34 = vld [vmem:[%s13887_s1 + $0x4d0] sm:$0xff] }
 0x122   :  { %6606 = vmatprep.subr.bf16.mxu0 %v8438_v32  ;;  %6647 = vmatprep.subr.bf16.mxu1 %v8694_v33  ;;  %v8854_v32 = vcombine.high %v454_v25, %v462_v26  ;;  %v182_v33 = vld [vmem:[%s13887_s1 + $0x490] sm:$0xff] }
 0x123   :  { %v438_v35 = vld [vmem:[%s13887_s1 + $0xc90] sm:$0xff]  ;;  %v8581_v50 = vcombine.low %v182_v33, %v190_v34 }
 0x124   :  { %v446_v38 = vld [vmem:[%s13887_s1 + $0xcd0] sm:$0xff] }
 0x125   :  { %6607 = vmatpush1.bf16.msra.mxu0 %v8437_v41  ;;  %6648 = vmatpush1.bf16.msra.mxu1 %v8693_v42  ;;  %v8853_v41 = vcombine.low %v454_v25, %v462_v26  ;;  %v8582_v42 = vcombine.high %v182_v33, %v190_v34  ;;  %v174_v45 = vld [vmem:[%s13887_s1 + $0x450] sm:$0xff] }
 0x126   :  { %6608 = vmatprep.subr.bf16.mxu0 %v8678_v43  ;;  %6649 = vmatprep.subr.bf16.mxu1 %v8934_v44  ;;  %v8838_v43 = vcombine.high %v438_v35, %v446_v38  ;;  %v166_v44 = vld [vmem:[%s13887_s1 + $0x410] sm:$0xff] }
 0x127   :  { %v422_v46 = vld [vmem:[%s13887_s1 + $0xc10] sm:$0xff]  ;;  %v8565_v61 = vcombine.low %v166_v44, %v174_v45 }
 0x128   :  { %v430_v48 = vld [vmem:[%s13887_s1 + $0xc50] sm:$0xff] }
 0x129   :  { %6609 = vmatpush2.bf16.msra.mxu0 %v8677_v51  ;;  %6650 = vmatpush2.bf16.msra.mxu1 %v8933_v52  ;;  %v8837_v51 = vcombine.low %v438_v35, %v446_v38  ;;  %v8566_v52 = vcombine.high %v166_v44, %v174_v45  ;;  %v670_v55 = vld [vmem:[%s13887_s1 + $0x13d0] sm:$0xff] }
 0x12a   :  { %6610 = vmatprep.subr.bf16.mxu0 %v8662_v53  ;;  %6651 = vmatprep.subr.bf16.mxu1 %v8918_v54  ;;  %v8822_v53 = vcombine.high %v422_v46, %v430_v48  ;;  %v662_v54 = vld [vmem:[%s13887_s1 + $0x1390] sm:$0xff] }
 0x12b   :  { %v918_v56 = vld [vmem:[%s13887_s1 + $0x1b90] sm:$0xff]  ;;  %v9061_v6 = vcombine.low %v662_v54, %v670_v55 }
 0x12c   :  { %v926_v57 = vld [vmem:[%s13887_s1 + $0x1bd0] sm:$0xff] }
 0x12d   :  { %6611 = vmatpush2.bf16.msra.mxu0 %v8661_v62  ;;  %6652 = vmatpush2.bf16.msra.mxu1 %v8917_v63  ;;  %v8821_v62 = vcombine.low %v422_v46, %v430_v48  ;;  %v9062_v63 = vcombine.high %v662_v54, %v670_v55  ;;  %v654_v2 = vld [vmem:[%s13887_s1 + $0x1350] sm:$0xff] }
 0x12e   :  { %6612 = vmatprep.subr.bf16.mxu0 %v8646_v0  ;;  %6653 = vmatprep.subr.bf16.mxu1 %v8902_v1  ;;  %v9318_v0 = vcombine.high %v918_v56, %v926_v57  ;;  %v646_v1 = vld [vmem:[%s13887_s1 + $0x1310] sm:$0xff] }
 0x12f   :  { %v902_v3 = vld [vmem:[%s13887_s1 + $0x1b10] sm:$0xff] }
 0x130   :  { %v910_v4 = vld [vmem:[%s13887_s1 + $0x1b50] sm:$0xff] }
 0x131   :  { %6613 = vmatpush2.bf16.msra.mxu0 %v8645_v8  ;;  %6654 = vmatpush2.bf16.msra.mxu1 %v8901_v9  ;;  %v9317_v8 = vcombine.low %v918_v56, %v926_v57  ;;  %v9046_v9 = vcombine.high %v646_v1, %v654_v2  ;;  %v638_v13 = vld [vmem:[%s13887_s1 + $0x12d0] sm:$0xff]  ;;  %v9301_v23 = vcombine.low %v902_v3, %v910_v4 }
 0x132   :  { %6614 = vmatprep.subr.bf16.mxu0 %v8630_v11  ;;  %6655 = vmatprep.subr.bf16.mxu1 %v8886_v12  ;;  %v9302_v11 = vcombine.high %v902_v3, %v910_v4  ;;  %v630_v12 = vld [vmem:[%s13887_s1 + $0x1290] sm:$0xff] }
 0x133   :  { %v886_v15 = vld [vmem:[%s13887_s1 + $0x1a90] sm:$0xff]  ;;  %v9030_v24 = vcombine.high %v630_v12, %v638_v13  ;;  %v9029_v38 = vcombine.low %v630_v12, %v638_v13 }
 0x134   :  { %v894_v17 = vld [vmem:[%s13887_s1 + $0x1ad0] sm:$0xff] }
 0x135   :  { %6615 = vmatpush2.bf16.msra.mxu0 %v8629_v18  ;;  %6656 = vmatpush2.bf16.msra.mxu1 %v8885_v19  ;;  %v870_v33 = vld [vmem:[%s13887_s1 + $0x1a10] sm:$0xff] }
 0x136   :  { %6616 = vmatprep.subr.bf16.mxu0 %v8614_v21  ;;  %6657 = vmatprep.subr.bf16.mxu1 %v8870_v22  ;;  %v9045_v21 = vcombine.low %v646_v1, %v654_v2  ;;  %v598_v45 = vld [vmem:[%s13887_s1 + $0x1190] sm:$0xff] }
 0x137   :  { %v606_v46 = vld [vmem:[%s13887_s1 + $0x11d0] sm:$0xff] }
 0x138   :  { %v854_v48 = vld [vmem:[%s13887_s1 + $0x1990] sm:$0xff] }
 0x139   :  { %6617 = vmatpush2.bf16.msra.mxu0 %v8613_v27  ;;  %6658 = vmatpush2.bf16.msra.mxu1 %v8869_v29  ;;  %v9286_v29 = vcombine.high %v886_v15, %v894_v17  ;;  %v582_v55 = vld [vmem:[%s13887_s1 + $0x1110] sm:$0xff] }
 0x13a   :  { %6618 = vmatprep.subr.bf16.mxu0 %v8598_v30  ;;  %6659 = vmatprep.subr.bf16.mxu1 %v8854_v32  ;;  %v622_v30 = vld [vmem:[%s13887_s1 + $0x1250] sm:$0xff] }
 0x13b   :  { %v590_v56 = vld [vmem:[%s13887_s1 + $0x1150] sm:$0xff] }
 0x13c   :  { %v838_v57 = vld [vmem:[%s13887_s1 + $0x1910] sm:$0xff] }
 0x13d   :  { %6619 = vmatpush2.bf16.msra.mxu0 %v8597_v40  ;;  %6660 = vmatpush2.bf16.msra.mxu1 %v8853_v41  ;;  %v9285_v41 = vcombine.low %v886_v15, %v894_v17  ;;  %v566_v2 = vld [vmem:[%s13887_s1 + $0x1090] sm:$0xff] }
 0x13e   :  { %6620 = vmatprep.subr.bf16.mxu0 %v8582_v42  ;;  %6661 = vmatprep.subr.bf16.mxu1 %v8838_v43  ;;  %v574_v3 = vld [vmem:[%s13887_s1 + $0x10d0] sm:$0xff] }
 0x13f   :  { %v822_v4 = vld [vmem:[%s13887_s1 + $0x1890] sm:$0xff] }
 0x140   :  { %v550_v13 = vld [vmem:[%s13887_s1 + $0x1010] sm:$0xff] }
 0x141   :  { %6621 = vmatpush2.bf16.msra.mxu0 %v8581_v50  ;;  %6662 = vmatpush2.bf16.msra.mxu1 %v8837_v51  ;;  %v862_v50 = vld [vmem:[%s13887_s1 + $0x19d0] sm:$0xff] }
 0x142   :  { %6622 = vmatprep.subr.bf16.mxu0 %v8566_v52  ;;  %6663 = vmatprep.subr.bf16.mxu1 %v8822_v53  ;;  %v8998_v53 = vcombine.high %v598_v45, %v606_v46  ;;  %v9254_v54 = vcombine.high %v854_v48, %v862_v50  ;;  %v806_v15 = vld [vmem:[%s13887_s1 + $0x1810] sm:$0xff] }
 0x143   :  { %v814_v17 = vld [vmem:[%s13887_s1 + $0x1850] sm:$0xff] }
 0x145   :  { %6623 = vmatpush2.bf16.msra.mxu0 %v8565_v61  ;;  %6664 = vmatpush2.bf16.msra.mxu1 %v8821_v62  ;;  %v846_v61 = vld [vmem:[%s13887_s1 + $0x1950] sm:$0xff]  ;;  %v8997_v62 = vcombine.low %v598_v45, %v606_v46 }
 0x146   :  { %6674 = vmatprep.subr.bf16.mxu0 %v9062_v63  ;;  %6715 = vmatprep.subr.bf16.mxu1 %v9318_v0  ;;  %v9253_v63 = vcombine.low %v854_v48, %v862_v50  ;;  %v8982_v0 = vcombine.high %v582_v55, %v590_v56  ;;  %v9238_v1 = vcombine.high %v838_v57, %v846_v61  ;;  %v766_v45 = vld [vmem:[%s13887_s1 + $0x16d0] sm:$0xff] }
 0x147   :  { %v1014_v46 = vld [vmem:[%s13887_s1 + $0x1e90] sm:$0xff] }
 0x148   :  { %v6380_v14 = vpop.f32.mrf.mxu0  ;;  %6625 = vmatmul.mubr.bf16.vlgmr.msra.gmra.mxu0 %v10001_v16  ;;  %v6421_v19 = vpop.f32.mrf.mxu1  ;;  %6666 = vmatmul.mubr.bf16.vlgmr.msra.gmra.mxu1 %v10012_v20  ;;  %v1022_v48 = vld [vmem:[%s13887_s1 + $0x1ed0] sm:$0xff] }
 0x149   :  { %v6381_v18 = vadd.f32 %v6380_v14, %v10649_v37  ;;  %6675 = vmatpush1.bf16.msra.mxu0 %v9061_v6  ;;  %6716 = vmatpush1.bf16.msra.mxu1 %v9317_v8  ;;  %v614_v37 = vld [vmem:[%s13887_s1 + $0x1210] sm:$0xff]  ;;  %v8981_v8 = vcombine.low %v582_v55, %v590_v56 }
 0x14a   :  { %v6382_v22 = vpop.f32.mrf.mxu0  ;;  %6676 = vmatprep.subr.bf16.mxu0 %v9046_v9  ;;  %v6423_v27 = vpop.f32.mrf.mxu1  ;;  %6717 = vmatprep.subr.bf16.mxu1 %v9302_v11  ;;  %v9014_v42 = vcombine.high %v614_v37, %v622_v30  ;;  %v9013_v51 = vcombine.low %v614_v37, %v622_v30  ;;  %v830_v6 = vld [vmem:[%s13887_s1 + $0x18d0] sm:$0xff]  ;;  %v9237_v9 = vcombine.low %v838_v57, %v846_v61 }
 0x14b   :  { %v10850_v25 = vadd.f32 %v6421_v19, %v6381_v18  ;;  %v6383_v26 = vadd.f32 %v6382_v22, %v10665_v47  ;;  %6706 = vmatprep.mubr.bf16.mxu0 %v10023_v28  ;;  %v878_v47 = vld [vmem:[%s13887_s1 + $0x1a50] sm:$0xff]  ;;  %6747 = vmatprep.mubr.bf16.mxu1 %v10032_v31  ;;  %v8966_v11 = vcombine.high %v566_v2, %v574_v3 }
 0x14c   :  { %v6384_v32 = vpop.f32.mrf.mxu0  ;;  %v6425_v35 = vpop.f32.mrf.mxu1  ;;  %v9270_v44 = vcombine.high %v870_v33, %v878_v47  ;;  %v9269_v52 = vcombine.low %v870_v33, %v878_v47  ;;  %v9222_v12 = vcombine.high %v822_v4, %v830_v6  ;;  %v558_v14 = vld [vmem:[%s13887_s1 + $0x1050] sm:$0xff]  ;;  %v8965_v18 = vcombine.low %v566_v2, %v574_v3 }
 0x14d   :  { %v10867_v34 = vadd.f32 %v6423_v27, %v6383_v26  ;;  %6677 = vmatpush1.bf16.msra.mxu0 %v9045_v21  ;;  %6718 = vmatpush1.bf16.msra.mxu1 %v9301_v23  ;;  %v9221_v19 = vcombine.low %v822_v4, %v830_v6  ;;  %v8950_v21 = vcombine.high %v550_v13, %v558_v14  ;;  %v790_v23 = vld [vmem:[%s13887_s1 + $0x1790] sm:$0xff] }
 0x14e   :  { %v6385_v40 = vpop.f32.mrf.mxu0  ;;  %6678 = vmatprep.subr.bf16.mxu0 %v9030_v24  ;;  %v6426_v43 = vpop.f32.mrf.mxu1  ;;  %6719 = vmatprep.subr.bf16.mxu1 %v9286_v29  ;;  %v9206_v22 = vcombine.high %v806_v15, %v814_v17  ;;  %v798_v24 = vld [vmem:[%s13887_s1 + $0x17d0] sm:$0xff]  ;;  %v8949_v29 = vcombine.low %v550_v13, %v558_v14  ;;  %v9205_v37 = vcombine.low %v806_v15, %v814_v17 }
 0x14f   :  { %v1046_v26 = vld [vmem:[%s13887_s1 + $0x1f90] sm:$0xff]  ;;  %v9190_v30 = vcombine.high %v790_v23, %v798_v24  ;;  %v9189_v40 = vcombine.low %v790_v23, %v798_v24 }
 0x150   :  { %v1054_v27 = vld [vmem:[%s13887_s1 + $0x1fd0] sm:$0xff] }
 0x151   :  { %6679 = vmatpush1.bf16.msra.mxu0 %v9029_v38  ;;  %6720 = vmatpush1.bf16.msra.mxu1 %v9285_v41  ;;  %v9446_v32 = vcombine.high %v1046_v26, %v1054_v27  ;;  %v774_v33 = vld [vmem:[%s13887_s1 + $0x1710] sm:$0xff]  ;;  %v9445_v41 = vcombine.low %v1046_v26, %v1054_v27 }
 0x152   :  { %6680 = vmatprep.subr.bf16.mxu0 %v9014_v42  ;;  %6721 = vmatprep.subr.bf16.mxu1 %v9270_v44  ;;  %v782_v47 = vld [vmem:[%s13887_s1 + $0x1750] sm:$0xff] }
 0x153   :  { %v1030_v35 = vld [vmem:[%s13887_s1 + $0x1f10] sm:$0xff]  ;;  %v9174_v42 = vcombine.high %v774_v33, %v782_v47  ;;  %v9173_v50 = vcombine.low %v774_v33, %v782_v47 }
 0x154   :  { %v1038_v38 = vld [vmem:[%s13887_s1 + $0x1f50] sm:$0xff] }
 0x155   :  { %6681 = vmatpush1.bf16.msra.mxu0 %v9013_v51  ;;  %6722 = vmatpush1.bf16.msra.mxu1 %v9269_v52  ;;  %v9430_v43 = vcombine.high %v1030_v35, %v1038_v38  ;;  %v758_v44 = vld [vmem:[%s13887_s1 + $0x1690] sm:$0xff]  ;;  %v9429_v51 = vcombine.low %v1030_v35, %v1038_v38 }
 0x156   :  { %6682 = vmatprep.subr.bf16.mxu0 %v8998_v53  ;;  %6723 = vmatprep.subr.bf16.mxu1 %v9254_v54  ;;  %v9158_v52 = vcombine.high %v758_v44, %v766_v45  ;;  %v9414_v53 = vcombine.high %v1014_v46, %v1022_v48  ;;  %v742_v54 = vld [vmem:[%s13887_s1 + $0x1610] sm:$0xff]  ;;  %v9157_v61 = vcombine.low %v758_v44, %v766_v45  ;;  %v159_v44 = vld [vmem:[%s13887_s1 + $0x3d8] sm:$0xff] }
 0x157   :  { %v750_v55 = vld [vmem:[%s13887_s1 + $0x1650] sm:$0xff]  ;;  %v407_v45 = vld [vmem:[%s13887_s1 + $0xb98] sm:$0xff] }
 0x158   :  { %v998_v56 = vld [vmem:[%s13887_s1 + $0x1e10] sm:$0xff]  ;;  %v9141_v6 = vcombine.low %v742_v54, %v750_v55 }
 0x159   :  { %6683 = vmatpush1.bf16.msra.mxu0 %v8997_v62  ;;  %6724 = vmatpush1.bf16.msra.mxu1 %v9253_v63  ;;  %v1006_v57 = vld [vmem:[%s13887_s1 + $0x1e50] sm:$0xff]  ;;  %v9413_v62 = vcombine.low %v1014_v46, %v1022_v48  ;;  %v9142_v63 = vcombine.high %v742_v54, %v750_v55  ;;  %v415_v46 = vld [vmem:[%s13887_s1 + $0xbd8] sm:$0xff]  ;;  %v1078_v54 = vsub.s32 3, %v10596_v60 }
 0x15a   :  { %6684 = vmatprep.subr.bf16.mxu0 %v8982_v0  ;;  %6725 = vmatprep.subr.bf16.mxu1 %v9238_v1  ;;  %v9398_v0 = vcombine.high %v998_v56, %v1006_v57  ;;  %v726_v1 = vld [vmem:[%s13887_s1 + $0x1590] sm:$0xff]  ;;  %v135_v55 = vld [vmem:[%s13887_s1 + $0x318] sm:$0xff] }
 0x15b   :  { %v734_v2 = vld [vmem:[%s13887_s1 + $0x15d0] sm:$0xff] }
 0x15c   :  { %v982_v3 = vld [vmem:[%s13887_s1 + $0x1d90] sm:$0xff]  ;;  %v9125_v17 = vcombine.low %v726_v1, %v734_v2 }
 0x15d   :  { %6685 = vmatpush1.bf16.msra.mxu0 %v8981_v8  ;;  %6726 = vmatpush1.bf16.msra.mxu1 %v9237_v9  ;;  %v990_v4 = vld [vmem:[%s13887_s1 + $0x1dd0] sm:$0xff]  ;;  %v9397_v8 = vcombine.low %v998_v56, %v1006_v57  ;;  %v9126_v9 = vcombine.high %v726_v1, %v734_v2  ;;  %v143_v56 = vld [vmem:[%s13887_s1 + $0x358] sm:$0xff]  ;;  %v1079_v2 = vrot.slane %v10614_v7, %v1078_v54 }
 0x15e   :  { %6686 = vmatprep.subr.bf16.mxu0 %v8966_v11  ;;  %6727 = vmatprep.subr.bf16.mxu1 %v9222_v12  ;;  %v9382_v11 = vcombine.high %v982_v3, %v990_v4  ;;  %v710_v12 = vld [vmem:[%s13887_s1 + $0x1510] sm:$0xff]  ;;  %v391_v57 = vld [vmem:[%s13887_s1 + $0xb18] sm:$0xff]  ;;  %v8536_v1 = vcombine.high %v135_v55, %v143_v56 }
 0x15f   :  { %v718_v13 = vld [vmem:[%s13887_s1 + $0x1550] sm:$0xff] }
 0x160   :  { %v966_v14 = vld [vmem:[%s13887_s1 + $0x1d10] sm:$0xff]  ;;  %v9109_v27 = vcombine.low %v710_v12, %v718_v13 }
 0x161   :  { %6687 = vmatpush1.bf16.msra.mxu0 %v8965_v18  ;;  %6728 = vmatpush1.bf16.msra.mxu1 %v9221_v19  ;;  %v974_v15 = vld [vmem:[%s13887_s1 + $0x1d50] sm:$0xff]  ;;  %v9381_v18 = vcombine.low %v982_v3, %v990_v4  ;;  %v9110_v19 = vcombine.high %v710_v12, %v718_v13  ;;  %v119_v4 = vld [vmem:[%s13887_s1 + $0x298] sm:$0xff]  ;;  %v8535_v13 = vcombine.low %v135_v55, %v143_v56 }
 0x162   :  { %6688 = vmatprep.subr.bf16.mxu0 %v8950_v21  ;;  %6729 = vmatprep.subr.bf16.mxu1 %v9206_v22  ;;  %v9366_v21 = vcombine.high %v966_v14, %v974_v15  ;;  %v694_v22 = vld [vmem:[%s13887_s1 + $0x1490] sm:$0xff]  ;;  %v327_v55 = vld [vmem:[%s13887_s1 + $0x918] sm:$0xff] }
 0x163   :  { %v702_v23 = vld [vmem:[%s13887_s1 + $0x14d0] sm:$0xff]  ;;  %v335_v56 = vld [vmem:[%s13887_s1 + $0x958] sm:$0xff] }
 0x164   :  { %v950_v24 = vld [vmem:[%s13887_s1 + $0x1c90] sm:$0xff]  ;;  %v9093_v38 = vcombine.low %v694_v22, %v702_v23 }
 0x165   :  { %6689 = vmatpush1.bf16.msra.mxu0 %v8949_v29  ;;  %6730 = vmatpush1.bf16.msra.mxu1 %v9205_v37  ;;  %v958_v26 = vld [vmem:[%s13887_s1 + $0x1cd0] sm:$0xff]  ;;  %v9365_v29 = vcombine.low %v966_v14, %v974_v15  ;;  %v9094_v37 = vcombine.high %v694_v22, %v702_v23  ;;  %v103_v23 = vld [vmem:[%s13887_s1 + $0x218] sm:$0xff] }
 0x166   :  { %6690 = vmatprep.subr.bf16.mxu0 %v9190_v30  ;;  %6731 = vmatprep.subr.bf16.mxu1 %v9446_v32  ;;  %v9350_v30 = vcombine.high %v950_v24, %v958_v26  ;;  %v678_v32 = vld [vmem:[%s13887_s1 + $0x1410] sm:$0xff] }
 0x167   :  { %v686_v33 = vld [vmem:[%s13887_s1 + $0x1450] sm:$0xff] }
 0x168   :  { %v934_v47 = vld [vmem:[%s13887_s1 + $0x1c10] sm:$0xff]  ;;  %v9077_v48 = vcombine.low %v678_v32, %v686_v33 }
 0x169   :  { %6691 = vmatpush2.bf16.msra.mxu0 %v9189_v40  ;;  %6732 = vmatpush2.bf16.msra.mxu1 %v9445_v41  ;;  %v942_v35 = vld [vmem:[%s13887_s1 + $0x1c50] sm:$0xff]  ;;  %v9349_v40 = vcombine.low %v950_v24, %v958_v26  ;;  %v9078_v41 = vcombine.high %v678_v32, %v686_v33  ;;  %v111_v24 = vld [vmem:[%s13887_s1 + $0x258] sm:$0xff] }
 0x16a   :  { %6692 = vmatprep.subr.bf16.mxu0 %v9174_v42  ;;  %6733 = vmatprep.subr.bf16.mxu1 %v9430_v43  ;;  %v9334_v42 = vcombine.high %v934_v47, %v942_v35  ;;  %v151_v43 = vld [vmem:[%s13887_s1 + $0x398] sm:$0xff] }
 0x16d   :  { %6693 = vmatpush2.bf16.msra.mxu0 %v9173_v50  ;;  %6734 = vmatpush2.bf16.msra.mxu1 %v9429_v51  ;;  %v1074_v50 = vsub.s32 2, %v10596_v60  ;;  %v9333_v51 = vcombine.low %v934_v47, %v942_v35  ;;  %v8504_v35 = vcombine.high %v103_v23, %v111_v24 }
 0x16e   :  { %6694 = vmatprep.subr.bf16.mxu0 %v9158_v52  ;;  %6735 = vmatprep.subr.bf16.mxu1 %v9414_v53  ;;  %v8552_v52 = vcombine.high %v151_v43, %v159_v44  ;;  %v8808_v53 = vcombine.high %v407_v45, %v415_v46 }
 0x171   :  { %6695 = vmatpush2.bf16.msra.mxu0 %v9157_v61  ;;  %6736 = vmatpush2.bf16.msra.mxu1 %v9413_v62  ;;  %v399_v61 = vld [vmem:[%s13887_s1 + $0xb58] sm:$0xff]  ;;  %v1075_v62 = vrot.slane %v10614_v7, %v1074_v50 }
 0x172   :  { %6696 = vmatprep.subr.bf16.mxu0 %v9142_v63  ;;  %6737 = vmatprep.subr.bf16.mxu1 %v9398_v0  ;;  %v8551_v63 = vcombine.low %v151_v43, %v159_v44  ;;  %v8807_v0 = vcombine.low %v407_v45, %v415_v46  ;;  %v8792_v3 = vcombine.high %v391_v57, %v399_v61  ;;  %v383_v7 = vld [vmem:[%s13887_s1 + $0xad8] sm:$0xff] }
 0x173   :  { %v8791_v15 = vcombine.low %v391_v57, %v399_v61  ;;  %v343_v43 = vld [vmem:[%s13887_s1 + $0x998] sm:$0xff]  ;;  %v8503_v45 = vcombine.low %v103_v23, %v111_v24 }
 0x174   :  { %v351_v44 = vld [vmem:[%s13887_s1 + $0x9d8] sm:$0xff] }
 0x175   :  { %6697 = vmatpush2.bf16.msra.mxu0 %v9141_v6  ;;  %6738 = vmatpush2.bf16.msra.mxu1 %v9397_v8  ;;  %v127_v6 = vld [vmem:[%s13887_s1 + $0x2d8] sm:$0xff]  ;;  %v8743_v61 = vcombine.low %v343_v43, %v351_v44 }
 0x176   :  { %6698 = vmatprep.subr.bf16.mxu0 %v9126_v9  ;;  %6739 = vmatprep.subr.bf16.mxu1 %v9382_v11  ;;  %v375_v9 = vld [vmem:[%s13887_s1 + $0xa98] sm:$0xff]  ;;  %v8519_v32 = vcombine.low %v119_v4, %v127_v6 }
 0x177   :  { %v8776_v22 = vcombine.high %v375_v9, %v383_v7  ;;  %v8775_v47 = vcombine.low %v375_v9, %v383_v7  ;;  %v39_v7 = vld [vmem:[%s13887_s1 + $0x18] sm:$0xff] }
 0x178   :  { %v535_v23 = vld [vmem:[%s13887_s1 + $0xf98] sm:$0xff] }
 0x179   :  { %6699 = vmatpush2.bf16.msra.mxu0 %v9125_v17  ;;  %6740 = vmatpush2.bf16.msra.mxu1 %v9381_v18  ;;  %v8520_v17 = vcombine.high %v119_v4, %v127_v6  ;;  %v8727_v6 = vcombine.low %v327_v55, %v335_v56  ;;  %v543_v24 = vld [vmem:[%s13887_s1 + $0xfd8] sm:$0xff] }
 0x17a   :  { %6700 = vmatprep.subr.bf16.mxu0 %v9110_v19  ;;  %6741 = vmatprep.subr.bf16.mxu1 %v9366_v21 }
 0x17d   :  { %6701 = vmatpush2.bf16.msra.mxu0 %v9109_v27  ;;  %6742 = vmatpush2.bf16.msra.mxu1 %v9365_v29  ;;  %v359_v27 = vld [vmem:[%s13887_s1 + $0xa18] sm:$0xff] }
 0x17e   :  { %6702 = vmatprep.subr.bf16.mxu0 %v9094_v37  ;;  %6743 = vmatprep.subr.bf16.mxu1 %v9350_v30  ;;  %v367_v29 = vld [vmem:[%s13887_s1 + $0xa58] sm:$0xff] }
 0x17f   :  { %v8759_v46 = vcombine.low %v359_v27, %v367_v29 }
 0x181   :  { %6703 = vmatpush2.bf16.msra.mxu0 %v9093_v38  ;;  %6744 = vmatpush2.bf16.msra.mxu1 %v9349_v40  ;;  %v8760_v40 = vcombine.high %v359_v27, %v367_v29 }
 0x182   :  { %6704 = vmatprep.subr.bf16.mxu0 %v9078_v41  ;;  %6745 = vmatprep.subr.bf16.mxu1 %v9334_v42  ;;  %v87_v41 = vld [vmem:[%s13887_s1 + $0x198] sm:$0xff] }
 0x183   :  { %v95_v42 = vld [vmem:[%s13887_s1 + $0x1d8] sm:$0xff] }
 0x184   :  { %v8487_v57 = vcombine.low %v87_v41, %v95_v42 }
 0x185   :  { %6705 = vmatpush2.bf16.msra.mxu0 %v9077_v48  ;;  %6746 = vmatpush2.bf16.msra.mxu1 %v9333_v51  ;;  %v8488_v48 = vcombine.high %v87_v41, %v95_v42  ;;  %v8744_v51 = vcombine.high %v343_v43, %v351_v44  ;;  %v247_v43 = vld [vmem:[%s13887_s1 + $0x698] sm:$0xff] }
 0x186   :  { %6756 = vmatprep.subr.bf16.mxu0 %v8552_v52  ;;  %6797 = vmatprep.subr.bf16.mxu1 %v8808_v53  ;;  %v71_v52 = vld [vmem:[%s13887_s1 + $0x118] sm:$0xff] }
 0x187   :  { %v79_v53 = vld [vmem:[%s13887_s1 + $0x158] sm:$0xff] }
 0x188   :  { %v6462_v8 = vpop.f32.mrf.mxu0  ;;  %6707 = vmatmul.mubr.bf16.vlgmr.msra.gmra.mxu0 %v10217_v36  ;;  %v6503_v12 = vpop.f32.mrf.mxu1  ;;  %6748 = vmatmul.mubr.bf16.vlgmr.msra.gmra.mxu1 %v10225_v39  ;;  %v8471_v4 = vcombine.low %v71_v52, %v79_v53  ;;  %v255_v44 = vld [vmem:[%s13887_s1 + $0x6d8] sm:$0xff] }
 0x189   :  { %v6463_v11 = vadd.f32 %v6462_v8, %v1075_v62  ;;  %6757 = vmatpush1.bf16.msra.mxu0 %v8551_v63  ;;  %6798 = vmatpush1.bf16.msra.mxu1 %v8807_v0  ;;  %v8472_v62 = vcombine.high %v71_v52, %v79_v53  ;;  %v8728_v63 = vcombine.high %v327_v55, %v335_v56  ;;  %v55_v0 = vld [vmem:[%s13887_s1 + $0x98] sm:$0xff] }
 0x18a   :  { %v6464_v14 = vpop.f32.mrf.mxu0  ;;  %6758 = vmatprep.subr.bf16.mxu0 %v8536_v1  ;;  %v6505_v21 = vpop.f32.mrf.mxu1  ;;  %6799 = vmatprep.subr.bf16.mxu1 %v8792_v3  ;;  %v63_v1 = vld [vmem:[%s13887_s1 + $0xd8] sm:$0xff]  ;;  %v8648_v52 = vcombine.high %v247_v43, %v255_v44 }
 0x18b   :  { %v11059_v18 = vadd.f32 %v6503_v12, %v6463_v11  ;;  %v6465_v19 = vadd.f32 %v6464_v14, %v1079_v2  ;;  %6788 = vmatprep.mubr.bf16.mxu0 %v9869_v58  ;;  %6829 = vmatprep.mubr.bf16.mxu1 %v9871_v59  ;;  %v311_v2 = vld [vmem:[%s13887_s1 + $0x898] sm:$0xff]  ;;  %v8456_v8 = vcombine.high %v55_v0, %v63_v1 }
 0x18c   :  { %v6466_v26 = vpop.f32.mrf.mxu0  ;;  %v6507_v30 = vpop.f32.mrf.mxu1  ;;  %v319_v3 = vld [vmem:[%s13887_s1 + $0x8d8] sm:$0xff]  ;;  %v8455_v14 = vcombine.low %v55_v0, %v63_v1 }
 0x18d   :  { %v11075_v37 = vadd.f32 %v6505_v21, %v6465_v19  ;;  %6759 = vmatpush1.bf16.msra.mxu0 %v8535_v13  ;;  %6800 = vmatpush1.bf16.msra.mxu1 %v8791_v15  ;;  %v8712_v9 = vcombine.high %v311_v2, %v319_v3  ;;  %v47_v11 = vld [vmem:[%s13887_s1 + $0x58] sm:$0xff]  ;;  %v8711_v15 = vcombine.low %v311_v2, %v319_v3 }
 0x18e   :  { %v6467_v33 = vpop.f32.mrf.mxu0  ;;  %6760 = vmatprep.subr.bf16.mxu0 %v8520_v17  ;;  %v6508_v38 = vpop.f32.mrf.mxu1  ;;  %6801 = vmatprep.subr.bf16.mxu1 %v8776_v22  ;;  %v295_v12 = vld [vmem:[%s13887_s1 + $0x818] sm:$0xff]  ;;  %v8440_v17 = vcombine.high %v39_v7, %v47_v11  ;;  %v8439_v26 = vcombine.low %v39_v7, %v47_v11  ;;  %v8936_v30 = vcombine.high %v535_v23, %v543_v24 }
 0x18f   :  { %v303_v13 = vld [vmem:[%s13887_s1 + $0x858] sm:$0xff] }
 0x190   :  { %v8696_v19 = vcombine.high %v295_v12, %v303_v13  ;;  %v279_v21 = vld [vmem:[%s13887_s1 + $0x798] sm:$0xff]  ;;  %v8695_v27 = vcombine.low %v295_v12, %v303_v13 }
 0x191   :  { %6761 = vmatpush1.bf16.msra.mxu0 %v8519_v32  ;;  %6802 = vmatpush1.bf16.msra.mxu1 %v8775_v47  ;;  %v287_v22 = vld [vmem:[%s13887_s1 + $0x7d8] sm:$0xff] }
 0x192   :  { %6762 = vmatprep.subr.bf16.mxu0 %v8504_v35  ;;  %6803 = vmatprep.subr.bf16.mxu1 %v8760_v40  ;;  %v8680_v29 = vcombine.high %v279_v21, %v287_v22  ;;  %v263_v32 = vld [vmem:[%s13887_s1 + $0x718] sm:$0xff]  ;;  %v8679_v38 = vcombine.low %v279_v21, %v287_v22  ;;  %v8935_v40 = vcombine.low %v535_v23, %v543_v24 }
 0x193   :  { %v271_v33 = vld [vmem:[%s13887_s1 + $0x758] sm:$0xff] }
 0x194   :  { %v519_v47 = vld [vmem:[%s13887_s1 + $0xf18] sm:$0xff]  ;;  %v8664_v41 = vcombine.high %v263_v32, %v271_v33 }
 0x195   :  { %6763 = vmatpush1.bf16.msra.mxu0 %v8503_v45  ;;  %6804 = vmatpush1.bf16.msra.mxu1 %v8759_v46  ;;  %v527_v35 = vld [vmem:[%s13887_s1 + $0xf58] sm:$0xff] }
 0x196   :  { %6764 = vmatprep.subr.bf16.mxu0 %v8488_v48  ;;  %6805 = vmatprep.subr.bf16.mxu1 %v8744_v51  ;;  %v8920_v42 = vcombine.high %v519_v47, %v527_v35  ;;  %v503_v45 = vld [vmem:[%s13887_s1 + $0xe98] sm:$0xff]  ;;  %v8663_v48 = vcombine.low %v263_v32, %v271_v33  ;;  %v8919_v51 = vcombine.low %v519_v47, %v527_v35 }
 0x197   :  { %v511_v46 = vld [vmem:[%s13887_s1 + $0xed8] sm:$0xff] }
 0x198   :  { %v8904_v53 = vcombine.high %v503_v45, %v511_v46  ;;  %v231_v55 = vld [vmem:[%s13887_s1 + $0x618] sm:$0xff] }
 0x199   :  { %6765 = vmatpush1.bf16.msra.mxu0 %v8487_v57  ;;  %6806 = vmatpush1.bf16.msra.mxu1 %v8743_v61  ;;  %v239_v56 = vld [vmem:[%s13887_s1 + $0x658] sm:$0xff] }
 0x19a   :  { %6766 = vmatprep.subr.bf16.mxu0 %v8472_v62  ;;  %6807 = vmatprep.subr.bf16.mxu1 %v8728_v63  ;;  %v487_v57 = vld [vmem:[%s13887_s1 + $0xe18] sm:$0xff]  ;;  %v8647_v62 = vcombine.low %v247_v43, %v255_v44  ;;  %v8903_v63 = vcombine.low %v503_v45, %v511_v46  ;;  %v8632_v0 = vcombine.high %v231_v55, %v239_v56 }
 0x19b   :  { %v495_v61 = vld [vmem:[%s13887_s1 + $0xe58] sm:$0xff] }
 0x19c   :  { %v8888_v1 = vcombine.high %v487_v57, %v495_v61  ;;  %v215_v2 = vld [vmem:[%s13887_s1 + $0x598] sm:$0xff] }
 0x19d   :  { %6767 = vmatpush1.bf16.msra.mxu0 %v8471_v4  ;;  %6808 = vmatpush1.bf16.msra.mxu1 %v8727_v6  ;;  %v223_v3 = vld [vmem:[%s13887_s1 + $0x5d8] sm:$0xff] }
 0x19e   :  { %6768 = vmatprep.subr.bf16.mxu0 %v8456_v8  ;;  %6809 = vmatprep.subr.bf16.mxu1 %v8712_v9  ;;  %v471_v4 = vld [vmem:[%s13887_s1 + $0xd98] sm:$0xff]  ;;  %v8631_v8 = vcombine.low %v231_v55, %v239_v56  ;;  %v8887_v9 = vcombine.low %v487_v57, %v495_v61  ;;  %v8616_v7 = vcombine.high %v215_v2, %v223_v3 }
 0x19f   :  { %v479_v6 = vld [vmem:[%s13887_s1 + $0xdd8] sm:$0xff] }
 0x1a0   :  { %v8872_v11 = vcombine.high %v471_v4, %v479_v6  ;;  %v199_v12 = vld [vmem:[%s13887_s1 + $0x518] sm:$0xff] }
 0x1a1   :  { %6769 = vmatpush1.bf16.msra.mxu0 %v8455_v14  ;;  %6810 = vmatpush1.bf16.msra.mxu1 %v8711_v15  ;;  %v207_v13 = vld [vmem:[%s13887_s1 + $0x558] sm:$0xff] }
 0x1a2   :  { %6770 = vmatprep.subr.bf16.mxu0 %v8440_v17  ;;  %6811 = vmatprep.subr.bf16.mxu1 %v8696_v19  ;;  %v455_v14 = vld [vmem:[%s13887_s1 + $0xd18] sm:$0xff]  ;;  %v8615_v17 = vcombine.low %v215_v2, %v223_v3  ;;  %v8871_v19 = vcombine.low %v471_v4, %v479_v6  ;;  %v8600_v21 = vcombine.high %v199_v12, %v207_v13 }
 0x1a3   :  { %v463_v15 = vld [vmem:[%s13887_s1 + $0xd58] sm:$0xff] }
 0x1a4   :  { %v8856_v22 = vcombine.high %v455_v14, %v463_v15  ;;  %v183_v23 = vld [vmem:[%s13887_s1 + $0x498] sm:$0xff] }
 0x1a5   :  { %6771 = vmatpush1.bf16.msra.mxu0 %v8439_v26  ;;  %6812 = vmatpush1.bf16.msra.mxu1 %v8695_v27  ;;  %v191_v24 = vld [vmem:[%s13887_s1 + $0x4d8] sm:$0xff] }
 0x1a6   :  { %6772 = vmatprep.subr.bf16.mxu0 %v8680_v29  ;;  %6813 = vmatprep.subr.bf16.mxu1 %v8936_v30  ;;  %v439_v26 = vld [vmem:[%s13887_s1 + $0xc98] sm:$0xff]  ;;  %v8599_v29 = vcombine.low %v199_v12, %v207_v13  ;;  %v8855_v30 = vcombine.low %v455_v14, %v463_v15  ;;  %v8584_v32 = vcombine.high %v183_v23, %v191_v24 }
 0x1a7   :  { %v447_v27 = vld [vmem:[%s13887_s1 + $0xcd8] sm:$0xff] }
 0x1a8   :  { %v8840_v33 = vcombine.high %v439_v26, %v447_v27  ;;  %v167_v47 = vld [vmem:[%s13887_s1 + $0x418] sm:$0xff] }
 0x1a9   :  { %6773 = vmatpush2.bf16.msra.mxu0 %v8679_v38  ;;  %6814 = vmatpush2.bf16.msra.mxu1 %v8935_v40  ;;  %v175_v35 = vld [vmem:[%s13887_s1 + $0x458] sm:$0xff] }
 0x1aa   :  { %6774 = vmatprep.subr.bf16.mxu0 %v8664_v41  ;;  %6815 = vmatprep.subr.bf16.mxu1 %v8920_v42  ;;  %v423_v38 = vld [vmem:[%s13887_s1 + $0xc18] sm:$0xff]  ;;  %v8583_v41 = vcombine.low %v183_v23, %v191_v24  ;;  %v8839_v42 = vcombine.low %v439_v26, %v447_v27  ;;  %v8568_v43 = vcombine.high %v167_v47, %v175_v35 }
 0x1ab   :  { %v431_v40 = vld [vmem:[%s13887_s1 + $0xc58] sm:$0xff] }
 0x1ac   :  { %v8824_v44 = vcombine.high %v423_v38, %v431_v40  ;;  %v663_v45 = vld [vmem:[%s13887_s1 + $0x1398] sm:$0xff] }
 0x1ad   :  { %6775 = vmatpush2.bf16.msra.mxu0 %v8663_v48  ;;  %6816 = vmatpush2.bf16.msra.mxu1 %v8919_v51  ;;  %v671_v46 = vld [vmem:[%s13887_s1 + $0x13d8] sm:$0xff] }
 0x1ae   :  { %6776 = vmatprep.subr.bf16.mxu0 %v8648_v52  ;;  %6817 = vmatprep.subr.bf16.mxu1 %v8904_v53  ;;  %v919_v48 = vld [vmem:[%s13887_s1 + $0x1b98] sm:$0xff]  ;;  %v8567_v52 = vcombine.low %v167_v47, %v175_v35  ;;  %v8823_v53 = vcombine.low %v423_v38, %v431_v40  ;;  %v9064_v55 = vcombine.high %v663_v45, %v671_v46 }
 0x1af   :  { %v927_v51 = vld [vmem:[%s13887_s1 + $0x1bd8] sm:$0xff] }
 0x1b0   :  { %v9320_v56 = vcombine.high %v919_v48, %v927_v51  ;;  %v647_v57 = vld [vmem:[%s13887_s1 + $0x1318] sm:$0xff] }
 0x1b1   :  { %6777 = vmatpush2.bf16.msra.mxu0 %v8647_v62  ;;  %6818 = vmatpush2.bf16.msra.mxu1 %v8903_v63  ;;  %v655_v61 = vld [vmem:[%s13887_s1 + $0x1358] sm:$0xff] }
 0x1b2   :  { %6778 = vmatprep.subr.bf16.mxu0 %v8632_v0  ;;  %6819 = vmatprep.subr.bf16.mxu1 %v8888_v1  ;;  %v903_v62 = vld [vmem:[%s13887_s1 + $0x1b18] sm:$0xff]  ;;  %v9063_v0 = vcombine.low %v663_v45, %v671_v46  ;;  %v9319_v1 = vcombine.low %v919_v48, %v927_v51  ;;  %v9048_v2 = vcombine.high %v647_v57, %v655_v61 }
 0x1b3   :  { %v911_v63 = vld [vmem:[%s13887_s1 + $0x1b58] sm:$0xff]  ;;  %v9047_v13 = vcombine.low %v647_v57, %v655_v61 }
 0x1b4   :  { %v9304_v3 = vcombine.high %v903_v62, %v911_v63  ;;  %v631_v4 = vld [vmem:[%s13887_s1 + $0x1298] sm:$0xff]  ;;  %v9303_v15 = vcombine.low %v903_v62, %v911_v63 }
 0x1b5   :  { %6779 = vmatpush2.bf16.msra.mxu0 %v8631_v8  ;;  %6820 = vmatpush2.bf16.msra.mxu1 %v8887_v9  ;;  %v639_v6 = vld [vmem:[%s13887_s1 + $0x12d8] sm:$0xff] }
 0x1b6   :  { %6780 = vmatprep.subr.bf16.mxu0 %v8616_v7  ;;  %6821 = vmatprep.subr.bf16.mxu1 %v8872_v11  ;;  %v887_v9 = vld [vmem:[%s13887_s1 + $0x1a98] sm:$0xff] }
 0x1b7   :  { %v895_v7 = vld [vmem:[%s13887_s1 + $0x1ad8] sm:$0xff] }
 0x1b8   :  { %v9288_v23 = vcombine.high %v887_v9, %v895_v7  ;;  %v623_v24 = vld [vmem:[%s13887_s1 + $0x1258] sm:$0xff]  ;;  %v9287_v47 = vcombine.low %v887_v9, %v895_v7 }
 0x1b9   :  { %6781 = vmatpush2.bf16.msra.mxu0 %v8615_v17  ;;  %6822 = vmatpush2.bf16.msra.mxu1 %v8871_v19  ;;  %v9032_v17 = vcombine.high %v631_v4, %v639_v6  ;;  %v871_v27 = vld [vmem:[%s13887_s1 + $0x1a18] sm:$0xff] }
 0x1ba   :  { %6782 = vmatprep.subr.bf16.mxu0 %v8600_v21  ;;  %6823 = vmatprep.subr.bf16.mxu1 %v8856_v22  ;;  %v551_v7 = vld [vmem:[%s13887_s1 + $0x1018] sm:$0xff] }
 0x1bd   :  { %6783 = vmatpush2.bf16.msra.mxu0 %v8599_v29  ;;  %6824 = vmatpush2.bf16.msra.mxu1 %v8855_v30 }
 0x1be   :  { %6784 = vmatprep.subr.bf16.mxu0 %v8584_v32  ;;  %6825 = vmatprep.subr.bf16.mxu1 %v8840_v33  ;;  %v9031_v32 = vcombine.low %v631_v4, %v639_v6 }
 0x1c1   :  { %6785 = vmatpush2.bf16.msra.mxu0 %v8583_v41  ;;  %6826 = vmatpush2.bf16.msra.mxu1 %v8839_v42  ;;  %v599_v41 = vld [vmem:[%s13887_s1 + $0x1198] sm:$0xff] }
 0x1c2   :  { %6786 = vmatprep.subr.bf16.mxu0 %v8568_v43  ;;  %6827 = vmatprep.subr.bf16.mxu1 %v8824_v44  ;;  %v607_v42 = vld [vmem:[%s13887_s1 + $0x11d8] sm:$0xff] }
 0x1c3   :  { %v855_v43 = vld [vmem:[%s13887_s1 + $0x1998] sm:$0xff]  ;;  %v9000_v48 = vcombine.high %v599_v41, %v607_v42  ;;  %v8999_v57 = vcombine.low %v599_v41, %v607_v42 }
 0x1c4   :  { %v863_v44 = vld [vmem:[%s13887_s1 + $0x19d8] sm:$0xff] }
 0x1c5   :  { %6787 = vmatpush2.bf16.msra.mxu0 %v8567_v52  ;;  %6828 = vmatpush2.bf16.msra.mxu1 %v8823_v53  ;;  %v9256_v51 = vcombine.high %v855_v43, %v863_v44  ;;  %v583_v52 = vld [vmem:[%s13887_s1 + $0x1118] sm:$0xff]  ;;  %v9255_v61 = vcombine.low %v855_v43, %v863_v44 }
 0x1c6   :  { %6838 = vmatprep.subr.bf16.mxu0 %v9064_v55  ;;  %6879 = vmatprep.subr.bf16.mxu1 %v9320_v56  ;;  %v591_v53 = vld [vmem:[%s13887_s1 + $0x1158] sm:$0xff] }
 0x1c7   :  { %v839_v55 = vld [vmem:[%s13887_s1 + $0x1918] sm:$0xff]  ;;  %v8984_v62 = vcombine.high %v583_v52, %v591_v53  ;;  %v8983_v4 = vcombine.low %v583_v52, %v591_v53 }
 0x1c8   :  { %v6544_v8 = vpop.f32.mrf.mxu0  ;;  %6789 = vmatmul.mubr.bf16.vlgmr.msra.gmra.mxu0 %v10001_v16  ;;  %v6585_v12 = vpop.f32.mrf.mxu1  ;;  %6830 = vmatmul.mubr.bf16.vlgmr.msra.gmra.mxu1 %v10012_v20  ;;  %v847_v56 = vld [vmem:[%s13887_s1 + $0x1958] sm:$0xff] }
 0x1c9   :  { %v6545_v11 = vadd.f32 %v6544_v8, %v11059_v18  ;;  %6839 = vmatpush1.bf16.msra.mxu0 %v9063_v0  ;;  %6880 = vmatpush1.bf16.msra.mxu1 %v9319_v1  ;;  %v615_v18 = vld [vmem:[%s13887_s1 + $0x1218] sm:$0xff]  ;;  %v9240_v63 = vcombine.high %v839_v55, %v847_v56  ;;  %v9239_v6 = vcombine.low %v839_v55, %v847_v56 }
 0x1ca   :  { %v6546_v14 = vpop.f32.mrf.mxu0  ;;  %6840 = vmatprep.subr.bf16.mxu0 %v9048_v2  ;;  %v6587_v22 = vpop.f32.mrf.mxu1  ;;  %6881 = vmatprep.subr.bf16.mxu1 %v9304_v3  ;;  %v9016_v35 = vcombine.high %v615_v18, %v623_v24  ;;  %v9015_v45 = vcombine.low %v615_v18, %v623_v24  ;;  %v567_v0 = vld [vmem:[%s13887_s1 + $0x1098] sm:$0xff] }
 0x1cb   :  { %v11260_v19 = vadd.f32 %v6585_v12, %v6545_v11  ;;  %v6547_v21 = vadd.f32 %v6546_v14, %v11075_v37  ;;  %6870 = vmatprep.mubr.bf16.mxu0 %v10023_v28  ;;  %v879_v37 = vld [vmem:[%s13887_s1 + $0x1a58] sm:$0xff]  ;;  %6911 = vmatprep.mubr.bf16.mxu1 %v10032_v31 }
 0x1cc   :  { %v6548_v26 = vpop.f32.mrf.mxu0  ;;  %v6589_v30 = vpop.f32.mrf.mxu1  ;;  %v9272_v40 = vcombine.high %v871_v27, %v879_v37  ;;  %v9271_v46 = vcombine.low %v871_v27, %v879_v37  ;;  %v575_v1 = vld [vmem:[%s13887_s1 + $0x10d8] sm:$0xff] }
 0x1cd   :  { %v11277_v29 = vadd.f32 %v6587_v22, %v6547_v21  ;;  %6841 = vmatpush1.bf16.msra.mxu0 %v9047_v13  ;;  %6882 = vmatpush1.bf16.msra.mxu1 %v9303_v15  ;;  %v823_v2 = vld [vmem:[%s13887_s1 + $0x1898] sm:$0xff]  ;;  %v8968_v8 = vcombine.high %v567_v0, %v575_v1  ;;  %v8967_v14 = vcombine.low %v567_v0, %v575_v1 }
 0x1ce   :  { %v6549_v33 = vpop.f32.mrf.mxu0  ;;  %6842 = vmatprep.subr.bf16.mxu0 %v9032_v17  ;;  %v6590_v38 = vpop.f32.mrf.mxu1  ;;  %6883 = vmatprep.subr.bf16.mxu1 %v9288_v23  ;;  %v831_v3 = vld [vmem:[%s13887_s1 + $0x18d8] sm:$0xff] }
 0x1cf   :  { %v9224_v9 = vcombine.high %v823_v2, %v831_v3  ;;  %v559_v11 = vld [vmem:[%s13887_s1 + $0x1058] sm:$0xff]  ;;  %v9223_v15 = vcombine.low %v823_v2, %v831_v3 }
 0x1d0   :  { %v807_v12 = vld [vmem:[%s13887_s1 + $0x1818] sm:$0xff]  ;;  %v8952_v17 = vcombine.high %v551_v7, %v559_v11  ;;  %v8951_v26 = vcombine.low %v551_v7, %v559_v11 }
 0x1d1   :  { %6843 = vmatpush1.bf16.msra.mxu0 %v9031_v32  ;;  %6884 = vmatpush1.bf16.msra.mxu1 %v9287_v47  ;;  %v815_v13 = vld [vmem:[%s13887_s1 + $0x1858] sm:$0xff] }
 0x1d2   :  { %6844 = vmatprep.subr.bf16.mxu0 %v9016_v35  ;;  %6885 = vmatprep.subr.bf16.mxu1 %v9272_v40  ;;  %v9208_v21 = vcombine.high %v807_v12, %v815_v13  ;;  %v791_v22 = vld [vmem:[%s13887_s1 + $0x1798] sm:$0xff]  ;;  %v9207_v27 = vcombine.low %v807_v12, %v815_v13 }
 0x1d3   :  { %v799_v23 = vld [vmem:[%s13887_s1 + $0x17d8] sm:$0xff] }
 0x1d4   :  { %v1047_v18 = vld [vmem:[%s13887_s1 + $0x1f98] sm:$0xff]  ;;  %v9192_v37 = vcombine.high %v791_v22, %v799_v23  ;;  %v9191_v38 = vcombine.low %v791_v22, %v799_v23 }
 0x1d5   :  { %6845 = vmatpush1.bf16.msra.mxu0 %v9015_v45  ;;  %6886 = vmatpush1.bf16.msra.mxu1 %v9271_v46  ;;  %v1055_v24 = vld [vmem:[%s13887_s1 + $0x1fd8] sm:$0xff] }
 0x1d6   :  { %6846 = vmatprep.subr.bf16.mxu0 %v9000_v48  ;;  %6887 = vmatprep.subr.bf16.mxu1 %v9256_v51  ;;  %v9448_v30 = vcombine.high %v1047_v18, %v1055_v24  ;;  %v775_v32 = vld [vmem:[%s13887_s1 + $0x1718] sm:$0xff]  ;;  %v9447_v40 = vcombine.low %v1047_v18, %v1055_v24 }
 0x1d7   :  { %v783_v33 = vld [vmem:[%s13887_s1 + $0x1758] sm:$0xff] }
 0x1d8   :  { %v1031_v47 = vld [vmem:[%s13887_s1 + $0x1f18] sm:$0xff]  ;;  %v9176_v41 = vcombine.high %v775_v32, %v783_v33  ;;  %v9175_v48 = vcombine.low %v775_v32, %v783_v33 }
 0x1d9   :  { %6847 = vmatpush1.bf16.msra.mxu0 %v8999_v57  ;;  %6888 = vmatpush1.bf16.msra.mxu1 %v9255_v61  ;;  %v1039_v35 = vld [vmem:[%s13887_s1 + $0x1f58] sm:$0xff] }
 0x1da   :  { %6848 = vmatprep.subr.bf16.mxu0 %v8984_v62  ;;  %6889 = vmatprep.subr.bf16.mxu1 %v9240_v63  ;;  %v9432_v42 = vcombine.high %v1031_v47, %v1039_v35  ;;  %v759_v43 = vld [vmem:[%s13887_s1 + $0x1698] sm:$0xff]  ;;  %v9431_v51 = vcombine.low %v1031_v47, %v1039_v35 }
 0x1db   :  { %v767_v44 = vld [vmem:[%s13887_s1 + $0x16d8] sm:$0xff] }
 0x1dc   :  { %v1015_v45 = vld [vmem:[%s13887_s1 + $0x1e98] sm:$0xff]  ;;  %v9160_v52 = vcombine.high %v759_v43, %v767_v44  ;;  %v9159_v62 = vcombine.low %v759_v43, %v767_v44 }
 0x1dd   :  { %6849 = vmatpush1.bf16.msra.mxu0 %v8983_v4  ;;  %6890 = vmatpush1.bf16.msra.mxu1 %v9239_v6  ;;  %v1023_v46 = vld [vmem:[%s13887_s1 + $0x1ed8] sm:$0xff] }
 0x1de   :  { %6850 = vmatprep.subr.bf16.mxu0 %v8968_v8  ;;  %6891 = vmatprep.subr.bf16.mxu1 %v9224_v9  ;;  %v9416_v53 = vcombine.high %v1015_v45, %v1023_v46  ;;  %v743_v55 = vld [vmem:[%s13887_s1 + $0x1618] sm:$0xff]  ;;  %v9415_v63 = vcombine.low %v1015_v45, %v1023_v46  ;;  %v152_v45 = vld [vmem:[%s13887_s1 + $0x3a0] sm:$0xff] }
 0x1df   :  { %v751_v56 = vld [vmem:[%s13887_s1 + $0x1658] sm:$0xff]  ;;  %v160_v46 = vld [vmem:[%s13887_s1 + $0x3e0] sm:$0xff] }
 0x1e0   :  { %v999_v57 = vld [vmem:[%s13887_s1 + $0x1e18] sm:$0xff]  ;;  %v9144_v0 = vcombine.high %v743_v55, %v751_v56  ;;  %v9143_v8 = vcombine.low %v743_v55, %v751_v56  ;;  %v8554_v56 = vcombine.high %v152_v45, %v160_v46 }
 0x1e1   :  { %6851 = vmatpush1.bf16.msra.mxu0 %v8967_v14  ;;  %6892 = vmatpush1.bf16.msra.mxu1 %v9223_v15  ;;  %v1007_v61 = vld [vmem:[%s13887_s1 + $0x1e58] sm:$0xff] }
 0x1e2   :  { %6852 = vmatprep.subr.bf16.mxu0 %v8952_v17  ;;  %6893 = vmatprep.subr.bf16.mxu1 %v9208_v21  ;;  %v9400_v1 = vcombine.high %v999_v57, %v1007_v61  ;;  %v727_v2 = vld [vmem:[%s13887_s1 + $0x1598] sm:$0xff]  ;;  %v9399_v9 = vcombine.low %v999_v57, %v1007_v61  ;;  %v1086_v61 = vsub.s32 5, %v10596_v60 }
 0x1e3   :  { %v735_v3 = vld [vmem:[%s13887_s1 + $0x15d8] sm:$0xff] }
 0x1e4   :  { %v983_v4 = vld [vmem:[%s13887_s1 + $0x1d98] sm:$0xff]  ;;  %v9128_v7 = vcombine.high %v727_v2, %v735_v3  ;;  %v9127_v17 = vcombine.low %v727_v2, %v735_v3  ;;  %v11452_v2 = vld [vmem:[%s13889_s2] sm:$0xff] }
 0x1e5   :  { %6853 = vmatpush1.bf16.msra.mxu0 %v8951_v26  ;;  %6894 = vmatpush1.bf16.msra.mxu1 %v9207_v27  ;;  %v991_v6 = vld [vmem:[%s13887_s1 + $0x1dd8] sm:$0xff] }
 0x1e6   :  { %6854 = vmatprep.subr.bf16.mxu0 %v9192_v37  ;;  %6895 = vmatprep.subr.bf16.mxu1 %v9448_v30  ;;  %v9384_v11 = vcombine.high %v983_v4, %v991_v6  ;;  %v711_v12 = vld [vmem:[%s13887_s1 + $0x1518] sm:$0xff]  ;;  %v9383_v21 = vcombine.low %v983_v4, %v991_v6  ;;  %v8553_v4 = vcombine.low %v152_v45, %v160_v46 }
 0x1e7   :  { %v719_v13 = vld [vmem:[%s13887_s1 + $0x1558] sm:$0xff] }
 0x1e8   :  { %v967_v14 = vld [vmem:[%s13887_s1 + $0x1d18] sm:$0xff]  ;;  %v9112_v22 = vcombine.high %v711_v12, %v719_v13  ;;  %v9111_v37 = vcombine.low %v711_v12, %v719_v13  ;;  %v128_v12 = vld [vmem:[%s13887_s1 + $0x2e0] sm:$0xff] }
 0x1e9   :  { %6855 = vmatpush2.bf16.msra.mxu0 %v9191_v38  ;;  %6896 = vmatpush2.bf16.msra.mxu1 %v9447_v40  ;;  %v975_v15 = vld [vmem:[%s13887_s1 + $0x1d58] sm:$0xff] }
 0x1ea   :  { %6856 = vmatprep.subr.bf16.mxu0 %v9176_v41  ;;  %6897 = vmatprep.subr.bf16.mxu1 %v9432_v42  ;;  %v9368_v23 = vcombine.high %v967_v14, %v975_v15  ;;  %v695_v18 = vld [vmem:[%s13887_s1 + $0x1498] sm:$0xff]  ;;  %v9367_v30 = vcombine.low %v967_v14, %v975_v15  ;;  %v376_v14 = vld [vmem:[%s13887_s1 + $0xaa0] sm:$0xff] }
 0x1eb   :  { %v703_v24 = vld [vmem:[%s13887_s1 + $0x14d8] sm:$0xff]  ;;  %v384_v15 = vld [vmem:[%s13887_s1 + $0xae0] sm:$0xff] }
 0x1ec   :  { %v951_v26 = vld [vmem:[%s13887_s1 + $0x1c98] sm:$0xff]  ;;  %v9096_v32 = vcombine.high %v695_v18, %v703_v24  ;;  %v9095_v41 = vcombine.low %v695_v18, %v703_v24 }
 0x1ed   :  { %6857 = vmatpush2.bf16.msra.mxu0 %v9175_v48  ;;  %6898 = vmatpush2.bf16.msra.mxu1 %v9431_v51  ;;  %v959_v27 = vld [vmem:[%s13887_s1 + $0x1cd8] sm:$0xff]  ;;  %v408_v48 = vld [vmem:[%s13887_s1 + $0xba0] sm:$0xff] }
 0x1ee   :  { %6858 = vmatprep.subr.bf16.mxu0 %v9160_v52  ;;  %6899 = vmatprep.subr.bf16.mxu1 %v9416_v53  ;;  %v9352_v33 = vcombine.high %v951_v26, %v959_v27  ;;  %v679_v47 = vld [vmem:[%s13887_s1 + $0x1418] sm:$0xff]  ;;  %v9351_v42 = vcombine.low %v951_v26, %v959_v27  ;;  %v416_v51 = vld [vmem:[%s13887_s1 + $0xbe0] sm:$0xff]  ;;  %v1082_v53 = vsub.s32 4, %v10596_v60 }
 0x1ef   :  { %v687_v35 = vld [vmem:[%s13887_s1 + $0x1458] sm:$0xff]  ;;  %v8810_v57 = vcombine.high %v408_v48, %v416_v51  ;;  %v8809_v6 = vcombine.low %v408_v48, %v416_v51  ;;  %v88_v51 = vld [vmem:[%s13887_s1 + $0x1a0] sm:$0xff] }
 0x1f0   :  { %v935_v38 = vld [vmem:[%s13887_s1 + $0x1c18] sm:$0xff]  ;;  %v9080_v43 = vcombine.high %v679_v47, %v687_v35  ;;  %v9079_v52 = vcombine.low %v679_v47, %v687_v35  ;;  %v1083_v3 = vrot.slane %v11452_v2, %v1082_v53  ;;  %v360_v35 = vld [vmem:[%s13887_s1 + $0xa20] sm:$0xff] }
 0x1f1   :  { %6859 = vmatpush2.bf16.msra.mxu0 %v9159_v62  ;;  %6900 = vmatpush2.bf16.msra.mxu1 %v9415_v63  ;;  %v943_v40 = vld [vmem:[%s13887_s1 + $0x1c58] sm:$0xff]  ;;  %v136_v62 = vld [vmem:[%s13887_s1 + $0x320] sm:$0xff] }
 0x1f2   :  { %6860 = vmatprep.subr.bf16.mxu0 %v9144_v0  ;;  %6901 = vmatprep.subr.bf16.mxu1 %v9400_v1  ;;  %v9336_v44 = vcombine.high %v935_v38, %v943_v40  ;;  %v9335_v55 = vcombine.low %v935_v38, %v943_v40  ;;  %v144_v63 = vld [vmem:[%s13887_s1 + $0x360] sm:$0xff] }
 0x1f3   :  { %v392_v0 = vld [vmem:[%s13887_s1 + $0xb20] sm:$0xff] }
 0x1f4   :  { %v400_v1 = vld [vmem:[%s13887_s1 + $0xb60] sm:$0xff] }
 0x1f5   :  { %6861 = vmatpush2.bf16.msra.mxu0 %v9143_v8  ;;  %6902 = vmatpush2.bf16.msra.mxu1 %v9399_v9  ;;  %v8538_v8 = vcombine.high %v136_v62, %v144_v63  ;;  %v1087_v9 = vrot.slane %v11452_v2, %v1086_v61  ;;  %v8793_v18 = vcombine.low %v392_v0, %v400_v1  ;;  %v368_v38 = vld [vmem:[%s13887_s1 + $0xa60] sm:$0xff] }
 0x1f6   :  { %6862 = vmatprep.subr.bf16.mxu0 %v9128_v7  ;;  %6903 = vmatprep.subr.bf16.mxu1 %v9384_v11  ;;  %v8794_v7 = vcombine.high %v392_v0, %v400_v1  ;;  %v120_v11 = vld [vmem:[%s13887_s1 + $0x2a0] sm:$0xff]  ;;  %v8762_v48 = vcombine.high %v360_v35, %v368_v38 }
 0x1f7   :  { %v8522_v24 = vcombine.high %v120_v11, %v128_v12  ;;  %v72_v1 = vld [vmem:[%s13887_s1 + $0x120] sm:$0xff] }
 0x1f9   :  { %6863 = vmatpush2.bf16.msra.mxu0 %v9127_v17  ;;  %6904 = vmatpush2.bf16.msra.mxu1 %v9383_v21 }
 0x1fa   :  { %6864 = vmatprep.subr.bf16.mxu0 %v9112_v22  ;;  %6905 = vmatprep.subr.bf16.mxu1 %v9368_v23  ;;  %v8537_v22 = vcombine.low %v136_v62, %v144_v63  ;;  %v8761_v62 = vcombine.low %v360_v35, %v368_v38  ;;  %v280_v35 = vld [vmem:[%s13887_s1 + $0x7a0] sm:$0xff] }
 0x1fb   :  { %v288_v38 = vld [vmem:[%s13887_s1 + $0x7e0] sm:$0xff] }
 0x1fd   :  { %6865 = vmatpush2.bf16.msra.mxu0 %v9111_v37  ;;  %6906 = vmatpush2.bf16.msra.mxu1 %v9367_v30  ;;  %v8778_v30 = vcombine.high %v376_v14, %v384_v15 }
 0x1fe   :  { %6866 = vmatprep.subr.bf16.mxu0 %v9096_v32  ;;  %6907 = vmatprep.subr.bf16.mxu1 %v9352_v33  ;;  %v104_v32 = vld [vmem:[%s13887_s1 + $0x220] sm:$0xff] }
 0x1ff   :  { %v112_v33 = vld [vmem:[%s13887_s1 + $0x260] sm:$0xff] }
 0x200   :  { %v8506_v45 = vcombine.high %v104_v32, %v112_v33 }
 0x201   :  { %6867 = vmatpush2.bf16.msra.mxu0 %v9095_v41  ;;  %6908 = vmatpush2.bf16.msra.mxu1 %v9351_v42  ;;  %v8521_v42 = vcombine.low %v120_v11, %v128_v12  ;;  %v56_v12 = vld [vmem:[%s13887_s1 + $0xa0] sm:$0xff] }
 0x202   :  { %6868 = vmatprep.subr.bf16.mxu0 %v9080_v43  ;;  %6909 = vmatprep.subr.bf16.mxu1 %v9336_v44  ;;  %v8777_v44 = vcombine.low %v376_v14, %v384_v15  ;;  %v312_v14 = vld [vmem:[%s13887_s1 + $0x8a0] sm:$0xff] }
 0x203   :  { %v320_v15 = vld [vmem:[%s13887_s1 + $0x8e0] sm:$0xff] }
 0x205   :  { %6869 = vmatpush2.bf16.msra.mxu0 %v9079_v52  ;;  %6910 = vmatpush2.bf16.msra.mxu1 %v9335_v55  ;;  %v96_v52 = vld [vmem:[%s13887_s1 + $0x1e0] sm:$0xff] }
 0x206   :  { %6920 = vmatprep.subr.bf16.mxu0 %v8554_v56  ;;  %6961 = vmatprep.subr.bf16.mxu1 %v8810_v57  ;;  %v344_v55 = vld [vmem:[%s13887_s1 + $0x9a0] sm:$0xff]  ;;  %v8505_v57 = vcombine.low %v104_v32, %v112_v33  ;;  %v8490_v63 = vcombine.high %v88_v51, %v96_v52  ;;  %v8713_v32 = vcombine.low %v312_v14, %v320_v15 }
 0x207   :  { %v352_v56 = vld [vmem:[%s13887_s1 + $0x9e0] sm:$0xff] }
 0x208   :  { %v6626_v13 = vpop.f32.mrf.mxu0  ;;  %6871 = vmatmul.mubr.bf16.vlgmr.msra.gmra.mxu0 %v10217_v36  ;;  %v6667_v21 = vpop.f32.mrf.mxu1  ;;  %6912 = vmatmul.mubr.bf16.vlgmr.msra.gmra.mxu1 %v10225_v39  ;;  %v8746_v0 = vcombine.high %v344_v55, %v352_v56 }
 0x209   :  { %v6627_v17 = vadd.f32 %v6626_v13, %v1083_v3  ;;  %6921 = vmatpush1.bf16.msra.mxu0 %v8553_v4  ;;  %6962 = vmatpush1.bf16.msra.mxu1 %v8809_v6  ;;  %v80_v3 = vld [vmem:[%s13887_s1 + $0x160] sm:$0xff] }
 0x20a   :  { %v6628_v23 = vpop.f32.mrf.mxu0  ;;  %6922 = vmatprep.subr.bf16.mxu0 %v8538_v8  ;;  %v6669_v37 = vpop.f32.mrf.mxu1  ;;  %6963 = vmatprep.subr.bf16.mxu1 %v8794_v7  ;;  %v328_v4 = vld [vmem:[%s13887_s1 + $0x920] sm:$0xff]  ;;  %v8489_v8 = vcombine.low %v88_v51, %v96_v52  ;;  %v8474_v7 = vcombine.high %v72_v1, %v80_v3 }
 0x20b   :  { %v11474_v26 = vadd.f32 %v6667_v21, %v6627_v17  ;;  %v6629_v27 = vadd.f32 %v6628_v23, %v1087_v9  ;;  %6952 = vmatprep.mubr.bf16.mxu0 %v9869_v58  ;;  %6993 = vmatprep.mubr.bf16.mxu1 %v9871_v59  ;;  %v336_v6 = vld [vmem:[%s13887_s1 + $0x960] sm:$0xff]  ;;  %v8745_v9 = vcombine.low %v344_v55, %v352_v56 }
 0x20c   :  { %v6630_v47 = vpop.f32.mrf.mxu0  ;;  %v6671_v41 = vpop.f32.mrf.mxu1  ;;  %v8730_v11 = vcombine.high %v328_v4, %v336_v6  ;;  %v64_v13 = vld [vmem:[%s13887_s1 + $0xe0] sm:$0xff]  ;;  %v8473_v17 = vcombine.low %v72_v1, %v80_v3  ;;  %v8729_v21 = vcombine.low %v328_v4, %v336_v6  ;;  %v8714_v23 = vcombine.high %v312_v14, %v320_v15 }
 0x20d   :  { %v11490_v40 = vadd.f32 %v6669_v37, %v6629_v27  ;;  %6923 = vmatpush1.bf16.msra.mxu0 %v8537_v22  ;;  %6964 = vmatpush1.bf16.msra.mxu1 %v8793_v18  ;;  %v8458_v22 = vcombine.high %v56_v12, %v64_v13  ;;  %v40_v18 = vld [vmem:[%s13887_s1 + $0x20] sm:$0xff]  ;;  %v8681_v56 = vcombine.low %v280_v35, %v288_v38 }
 0x20e   :  { %v6631_v43 = vpop.f32.mrf.mxu0  ;;  %6924 = vmatprep.subr.bf16.mxu0 %v8522_v24  ;;  %v6672_v46 = vpop.f32.mrf.mxu1  ;;  %6965 = vmatprep.subr.bf16.mxu1 %v8778_v30  ;;  %v48_v24 = vld [vmem:[%s13887_s1 + $0x60] sm:$0xff]  ;;  %v8457_v30 = vcombine.low %v56_v12, %v64_v13 }
 0x20f   :  { %v296_v27 = vld [vmem:[%s13887_s1 + $0x820] sm:$0xff]  ;;  %v8442_v33 = vcombine.high %v40_v18, %v48_v24  ;;  %v8441_v43 = vcombine.low %v40_v18, %v48_v24 }
 0x210   :  { %v304_v37 = vld [vmem:[%s13887_s1 + $0x860] sm:$0xff] }
 0x211   :  { %6925 = vmatpush1.bf16.msra.mxu0 %v8521_v42  ;;  %6966 = vmatpush1.bf16.msra.mxu1 %v8777_v44  ;;  %v8698_v47 = vcombine.high %v296_v27, %v304_v37  ;;  %v536_v41 = vld [vmem:[%s13887_s1 + $0xfa0] sm:$0xff]  ;;  %v8697_v44 = vcombine.low %v296_v27, %v304_v37 }
 0x212   :  { %6926 = vmatprep.subr.bf16.mxu0 %v8506_v45  ;;  %6967 = vmatprep.subr.bf16.mxu1 %v8762_v48  ;;  %v544_v42 = vld [vmem:[%s13887_s1 + $0xfe0] sm:$0xff]  ;;  %v8682_v45 = vcombine.high %v280_v35, %v288_v38 }
 0x213   :  { %v8938_v46 = vcombine.high %v536_v41, %v544_v42  ;;  %v264_v48 = vld [vmem:[%s13887_s1 + $0x720] sm:$0xff] }
 0x214   :  { %v272_v51 = vld [vmem:[%s13887_s1 + $0x760] sm:$0xff] }
 0x215   :  { %6927 = vmatpush1.bf16.msra.mxu0 %v8505_v57  ;;  %6968 = vmatpush1.bf16.msra.mxu1 %v8761_v62  ;;  %v520_v52 = vld [vmem:[%s13887_s1 + $0xf20] sm:$0xff]  ;;  %v8937_v57 = vcombine.low %v536_v41, %v544_v42  ;;  %v8666_v62 = vcombine.high %v264_v48, %v272_v51  ;;  %v8665_v6 = vcombine.low %v264_v48, %v272_v51 }
 0x216   :  { %6928 = vmatprep.subr.bf16.mxu0 %v8490_v63  ;;  %6969 = vmatprep.subr.bf16.mxu1 %v8746_v0  ;;  %v528_v55 = vld [vmem:[%s13887_s1 + $0xf60] sm:$0xff] }
 0x217   :  { %v8922_v63 = vcombine.high %v520_v52, %v528_v55  ;;  %v248_v0 = vld [vmem:[%s13887_s1 + $0x6a0] sm:$0xff] }
 0x218   :  { %v256_v1 = vld [vmem:[%s13887_s1 + $0x6e0] sm:$0xff] }
 0x219   :  { %6929 = vmatpush1.bf16.msra.mxu0 %v8489_v8  ;;  %6970 = vmatpush1.bf16.msra.mxu1 %v8745_v9  ;;  %v504_v3 = vld [vmem:[%s13887_s1 + $0xea0] sm:$0xff]  ;;  %v8921_v8 = vcombine.low %v520_v52, %v528_v55  ;;  %v8650_v9 = vcombine.high %v248_v0, %v256_v1  ;;  %v8649_v15 = vcombine.low %v248_v0, %v256_v1 }
 0x21a   :  { %6930 = vmatprep.subr.bf16.mxu0 %v8474_v7  ;;  %6971 = vmatprep.subr.bf16.mxu1 %v8730_v11  ;;  %v512_v4 = vld [vmem:[%s13887_s1 + $0xee0] sm:$0xff] }
 0x21b   :  { %v8906_v7 = vcombine.high %v504_v3, %v512_v4  ;;  %v232_v11 = vld [vmem:[%s13887_s1 + $0x620] sm:$0xff] }
 0x21c   :  { %v240_v12 = vld [vmem:[%s13887_s1 + $0x660] sm:$0xff] }
 0x21d   :  { %6931 = vmatpush1.bf16.msra.mxu0 %v8473_v17  ;;  %6972 = vmatpush1.bf16.msra.mxu1 %v8729_v21  ;;  %v488_v13 = vld [vmem:[%s13887_s1 + $0xe20] sm:$0xff]  ;;  %v8905_v17 = vcombine.low %v504_v3, %v512_v4  ;;  %v8634_v21 = vcombine.high %v232_v11, %v240_v12  ;;  %v8633_v37 = vcombine.low %v232_v11, %v240_v12 }
 0x21e   :  { %6932 = vmatprep.subr.bf16.mxu0 %v8458_v22  ;;  %6973 = vmatprep.subr.bf16.mxu1 %v8714_v23  ;;  %v496_v14 = vld [vmem:[%s13887_s1 + $0xe60] sm:$0xff] }
 0x21f   :  { %v8890_v22 = vcombine.high %v488_v13, %v496_v14  ;;  %v216_v23 = vld [vmem:[%s13887_s1 + $0x5a0] sm:$0xff] }
 0x220   :  { %v224_v18 = vld [vmem:[%s13887_s1 + $0x5e0] sm:$0xff] }
 0x221   :  { %6933 = vmatpush1.bf16.msra.mxu0 %v8457_v30  ;;  %6974 = vmatpush1.bf16.msra.mxu1 %v8713_v32  ;;  %v472_v24 = vld [vmem:[%s13887_s1 + $0xda0] sm:$0xff]  ;;  %v8889_v30 = vcombine.low %v488_v13, %v496_v14  ;;  %v8618_v32 = vcombine.high %v216_v23, %v224_v18  ;;  %v8617_v42 = vcombine.low %v216_v23, %v224_v18 }
 0x222   :  { %6934 = vmatprep.subr.bf16.mxu0 %v8442_v33  ;;  %6975 = vmatprep.subr.bf16.mxu1 %v8698_v47  ;;  %v480_v27 = vld [vmem:[%s13887_s1 + $0xde0] sm:$0xff] }
 0x223   :  { %v8874_v33 = vcombine.high %v472_v24, %v480_v27  ;;  %v200_v47 = vld [vmem:[%s13887_s1 + $0x520] sm:$0xff] }
 0x224   :  { %v208_v35 = vld [vmem:[%s13887_s1 + $0x560] sm:$0xff] }
 0x225   :  { %6935 = vmatpush1.bf16.msra.mxu0 %v8441_v43  ;;  %6976 = vmatpush1.bf16.msra.mxu1 %v8697_v44  ;;  %v456_v38 = vld [vmem:[%s13887_s1 + $0xd20] sm:$0xff]  ;;  %v8873_v43 = vcombine.low %v472_v24, %v480_v27  ;;  %v8602_v44 = vcombine.high %v200_v47, %v208_v35  ;;  %v8601_v55 = vcombine.low %v200_v47, %v208_v35 }
 0x226   :  { %6936 = vmatprep.subr.bf16.mxu0 %v8682_v45  ;;  %6977 = vmatprep.subr.bf16.mxu1 %v8938_v46  ;;  %v464_v41 = vld [vmem:[%s13887_s1 + $0xd60] sm:$0xff] }
 0x227   :  { %v8858_v45 = vcombine.high %v456_v38, %v464_v41  ;;  %v184_v46 = vld [vmem:[%s13887_s1 + $0x4a0] sm:$0xff] }
 0x228   :  { %v192_v48 = vld [vmem:[%s13887_s1 + $0x4e0] sm:$0xff] }
 0x229   :  { %6937 = vmatpush2.bf16.msra.mxu0 %v8681_v56  ;;  %6978 = vmatpush2.bf16.msra.mxu1 %v8937_v57  ;;  %v440_v51 = vld [vmem:[%s13887_s1 + $0xca0] sm:$0xff]  ;;  %v8857_v56 = vcombine.low %v456_v38, %v464_v41  ;;  %v8586_v57 = vcombine.high %v184_v46, %v192_v48  ;;  %v8585_v4 = vcombine.low %v184_v46, %v192_v48 }
 0x22a   :  { %6938 = vmatprep.subr.bf16.mxu0 %v8666_v62  ;;  %6979 = vmatprep.subr.bf16.mxu1 %v8922_v63  ;;  %v448_v52 = vld [vmem:[%s13887_s1 + $0xce0] sm:$0xff] }
 0x22b   :  { %v8842_v62 = vcombine.high %v440_v51, %v448_v52  ;;  %v168_v63 = vld [vmem:[%s13887_s1 + $0x420] sm:$0xff] }
 0x22c   :  { %v176_v0 = vld [vmem:[%s13887_s1 + $0x460] sm:$0xff] }
 0x22d   :  { %6939 = vmatpush2.bf16.msra.mxu0 %v8665_v6  ;;  %6980 = vmatpush2.bf16.msra.mxu1 %v8921_v8  ;;  %v424_v1 = vld [vmem:[%s13887_s1 + $0xc20] sm:$0xff]  ;;  %v8841_v6 = vcombine.low %v440_v51, %v448_v52  ;;  %v8570_v8 = vcombine.high %v168_v63, %v176_v0  ;;  %v8569_v14 = vcombine.low %v168_v63, %v176_v0 }
 0x22e   :  { %6940 = vmatprep.subr.bf16.mxu0 %v8650_v9  ;;  %6981 = vmatprep.subr.bf16.mxu1 %v8906_v7  ;;  %v432_v3 = vld [vmem:[%s13887_s1 + $0xc60] sm:$0xff] }
 0x22f   :  { %v8826_v9 = vcombine.high %v424_v1, %v432_v3  ;;  %v664_v7 = vld [vmem:[%s13887_s1 + $0x13a0] sm:$0xff] }
 0x230   :  { %v672_v11 = vld [vmem:[%s13887_s1 + $0x13e0] sm:$0xff] }
 0x231   :  { %6941 = vmatpush2.bf16.msra.mxu0 %v8649_v15  ;;  %6982 = vmatpush2.bf16.msra.mxu1 %v8905_v17  ;;  %v920_v12 = vld [vmem:[%s13887_s1 + $0x1ba0] sm:$0xff]  ;;  %v8825_v15 = vcombine.low %v424_v1, %v432_v3  ;;  %v9066_v17 = vcombine.high %v664_v7, %v672_v11  ;;  %v9065_v27 = vcombine.low %v664_v7, %v672_v11 }
 0x232   :  { %6942 = vmatprep.subr.bf16.mxu0 %v8634_v21  ;;  %6983 = vmatprep.subr.bf16.mxu1 %v8890_v22  ;;  %v928_v13 = vld [vmem:[%s13887_s1 + $0x1be0] sm:$0xff] }
 0x233   :  { %v9322_v21 = vcombine.high %v920_v12, %v928_v13  ;;  %v648_v22 = vld [vmem:[%s13887_s1 + $0x1320] sm:$0xff] }
 0x234   :  { %v656_v23 = vld [vmem:[%s13887_s1 + $0x1360] sm:$0xff] }
 0x235   :  { %6943 = vmatpush2.bf16.msra.mxu0 %v8633_v37  ;;  %6984 = vmatpush2.bf16.msra.mxu1 %v8889_v30  ;;  %v904_v18 = vld [vmem:[%s13887_s1 + $0x1b20] sm:$0xff]  ;;  %v9321_v37 = vcombine.low %v920_v12, %v928_v13  ;;  %v9050_v30 = vcombine.high %v648_v22, %v656_v23 }
 0x236   :  { %6944 = vmatprep.subr.bf16.mxu0 %v8618_v32  ;;  %6985 = vmatprep.subr.bf16.mxu1 %v8874_v33  ;;  %v912_v24 = vld [vmem:[%s13887_s1 + $0x1b60] sm:$0xff] }
 0x237   :  { %v9306_v32 = vcombine.high %v904_v18, %v912_v24  ;;  %v632_v33 = vld [vmem:[%s13887_s1 + $0x12a0] sm:$0xff]  ;;  %v9305_v46 = vcombine.low %v904_v18, %v912_v24 }
 0x238   :  { %v640_v47 = vld [vmem:[%s13887_s1 + $0x12e0] sm:$0xff] }
 0x239   :  { %6945 = vmatpush2.bf16.msra.mxu0 %v8617_v42  ;;  %6986 = vmatpush2.bf16.msra.mxu1 %v8873_v43  ;;  %v888_v38 = vld [vmem:[%s13887_s1 + $0x1aa0] sm:$0xff]  ;;  %v9034_v48 = vcombine.high %v632_v33, %v640_v47  ;;  %v9033_v3 = vcombine.low %v632_v33, %v640_v47 }
 0x23a   :  { %6946 = vmatprep.subr.bf16.mxu0 %v8602_v44  ;;  %6987 = vmatprep.subr.bf16.mxu1 %v8858_v45  ;;  %v896_v41 = vld [vmem:[%s13887_s1 + $0x1ae0] sm:$0xff]  ;;  %v9049_v44 = vcombine.low %v648_v22, %v656_v23 }
 0x23b   :  { %v872_v63 = vld [vmem:[%s13887_s1 + $0x1a20] sm:$0xff] }
 0x23c   :  { %v600_v11 = vld [vmem:[%s13887_s1 + $0x11a0] sm:$0xff] }
 0x23d   :  { %6947 = vmatpush2.bf16.msra.mxu0 %v8601_v55  ;;  %6988 = vmatpush2.bf16.msra.mxu1 %v8857_v56  ;;  %v9290_v56 = vcombine.high %v888_v38, %v896_v41  ;;  %v608_v12 = vld [vmem:[%s13887_s1 + $0x11e0] sm:$0xff] }
 0x23e   :  { %6948 = vmatprep.subr.bf16.mxu0 %v8586_v57  ;;  %6989 = vmatprep.subr.bf16.mxu1 %v8842_v62  ;;  %v624_v57 = vld [vmem:[%s13887_s1 + $0x1260] sm:$0xff] }
 0x23f   :  { %v856_v13 = vld [vmem:[%s13887_s1 + $0x19a0] sm:$0xff] }
 0x240   :  { %v584_v23 = vld [vmem:[%s13887_s1 + $0x1120] sm:$0xff] }
 0x241   :  { %6949 = vmatpush2.bf16.msra.mxu0 %v8585_v4  ;;  %6990 = vmatpush2.bf16.msra.mxu1 %v8841_v6  ;;  %v9289_v6 = vcombine.low %v888_v38, %v896_v41  ;;  %v592_v18 = vld [vmem:[%s13887_s1 + $0x1160] sm:$0xff] }
 0x242   :  { %6950 = vmatprep.subr.bf16.mxu0 %v8570_v8  ;;  %6991 = vmatprep.subr.bf16.mxu1 %v8826_v9  ;;  %v840_v24 = vld [vmem:[%s13887_s1 + $0x1920] sm:$0xff] }
 0x243   :  { %v568_v47 = vld [vmem:[%s13887_s1 + $0x10a0] sm:$0xff] }
 0x244   :  { %v824_v38 = vld [vmem:[%s13887_s1 + $0x18a0] sm:$0xff] }
 0x245   :  { %6951 = vmatpush2.bf16.msra.mxu0 %v8569_v14  ;;  %6992 = vmatpush2.bf16.msra.mxu1 %v8825_v15  ;;  %v864_v14 = vld [vmem:[%s13887_s1 + $0x19e0] sm:$0xff] }
 0x246   :  { %7002 = vmatprep.subr.bf16.mxu0 %v9066_v17  ;;  %7043 = vmatprep.subr.bf16.mxu1 %v9322_v21  ;;  %v9002_v21 = vcombine.high %v600_v11, %v608_v12  ;;  %v9258_v22 = vcombine.high %v856_v13, %v864_v14  ;;  %v832_v41 = vld [vmem:[%s13887_s1 + $0x18e0] sm:$0xff] }
 0x248   :  { %v6708_v35 = vpop.f32.mrf.mxu0  ;;  %6953 = vmatmul.mubr.bf16.vlgmr.msra.gmra.mxu0 %v10001_v16  ;;  %v6749_v43 = vpop.f32.mrf.mxu1  ;;  %6994 = vmatmul.mubr.bf16.vlgmr.msra.gmra.mxu1 %v10012_v20 }
 0x249   :  { %v6709_v42 = vadd.f32 %v6708_v35, %v11474_v26  ;;  %7003 = vmatpush1.bf16.msra.mxu0 %v9065_v27  ;;  %7044 = vmatpush1.bf16.msra.mxu1 %v9321_v37  ;;  %v616_v26 = vld [vmem:[%s13887_s1 + $0x1220] sm:$0xff]  ;;  %v9001_v37 = vcombine.low %v600_v11, %v608_v12 }
 0x24a   :  { %v6710_v45 = vpop.f32.mrf.mxu0  ;;  %7004 = vmatprep.subr.bf16.mxu0 %v9050_v30  ;;  %v6751_v55 = vpop.f32.mrf.mxu1  ;;  %7045 = vmatprep.subr.bf16.mxu1 %v9306_v32  ;;  %v9018_v8 = vcombine.high %v616_v26, %v624_v57  ;;  %v9017_v15 = vcombine.low %v616_v26, %v624_v57  ;;  %v848_v27 = vld [vmem:[%s13887_s1 + $0x1960] sm:$0xff]  ;;  %v9257_v30 = vcombine.low %v856_v13, %v864_v14 }
 0x24b   :  { %v11675_v51 = vadd.f32 %v6749_v43, %v6709_v42  ;;  %v6711_v52 = vadd.f32 %v6710_v45, %v11490_v40  ;;  %7034 = vmatprep.mubr.bf16.mxu0 %v10023_v28  ;;  %v880_v40 = vld [vmem:[%s13887_s1 + $0x1a60] sm:$0xff]  ;;  %7075 = vmatprep.mubr.bf16.mxu1 %v10032_v31  ;;  %v8986_v32 = vcombine.high %v584_v23, %v592_v18 }
 0x24c   :  { %v6712_v62 = vpop.f32.mrf.mxu0  ;;  %v6753_v1 = vpop.f32.mrf.mxu1  ;;  %v9274_v7 = vcombine.high %v872_v63, %v880_v40  ;;  %v9273_v17 = vcombine.low %v872_v63, %v880_v40  ;;  %v9242_v33 = vcombine.high %v840_v24, %v848_v27  ;;  %v576_v35 = vld [vmem:[%s13887_s1 + $0x10e0] sm:$0xff]  ;;  %v8985_v42 = vcombine.low %v584_v23, %v592_v18 }
 0x24d   :  { %v11692_v0 = vadd.f32 %v6751_v55, %v6711_v52  ;;  %7005 = vmatpush1.bf16.msra.mxu0 %v9049_v44  ;;  %7046 = vmatpush1.bf16.msra.mxu1 %v9305_v46  ;;  %v9241_v43 = vcombine.low %v840_v24, %v848_v27  ;;  %v8970_v44 = vcombine.high %v568_v47, %v576_v35  ;;  %v552_v46 = vld [vmem:[%s13887_s1 + $0x1020] sm:$0xff] }
 0x24e   :  { %v6713_v4 = vpop.f32.mrf.mxu0  ;;  %7006 = vmatprep.subr.bf16.mxu0 %v9034_v48  ;;  %v6754_v9 = vpop.f32.mrf.mxu1  ;;  %7047 = vmatprep.subr.bf16.mxu1 %v9290_v56  ;;  %v9226_v45 = vcombine.high %v824_v38, %v832_v41  ;;  %v560_v48 = vld [vmem:[%s13887_s1 + $0x1060] sm:$0xff]  ;;  %v8969_v56 = vcombine.low %v568_v47, %v576_v35  ;;  %v9225_v26 = vcombine.low %v824_v38, %v832_v41 }
 0x24f   :  { %v808_v52 = vld [vmem:[%s13887_s1 + $0x1820] sm:$0xff]  ;;  %v8954_v57 = vcombine.high %v552_v46, %v560_v48  ;;  %v8953_v4 = vcombine.low %v552_v46, %v560_v48 }
 0x250   :  { %v816_v55 = vld [vmem:[%s13887_s1 + $0x1860] sm:$0xff] }
 0x251   :  { %7007 = vmatpush1.bf16.msra.mxu0 %v9033_v3  ;;  %7048 = vmatpush1.bf16.msra.mxu1 %v9289_v6  ;;  %v9210_v62 = vcombine.high %v808_v52, %v816_v55  ;;  %v792_v63 = vld [vmem:[%s13887_s1 + $0x17a0] sm:$0xff]  ;;  %v9209_v6 = vcombine.low %v808_v52, %v816_v55 }
 0x252   :  { %7008 = vmatprep.subr.bf16.mxu0 %v9018_v8  ;;  %7049 = vmatprep.subr.bf16.mxu1 %v9274_v7  ;;  %v800_v40 = vld [vmem:[%s13887_s1 + $0x17e0] sm:$0xff] }
 0x253   :  { %v1048_v1 = vld [vmem:[%s13887_s1 + $0x1fa0] sm:$0xff]  ;;  %v9194_v8 = vcombine.high %v792_v63, %v800_v40  ;;  %v9193_v14 = vcombine.low %v792_v63, %v800_v40 }
 0x254   :  { %v1056_v3 = vld [vmem:[%s13887_s1 + $0x1fe0] sm:$0xff] }
 0x255   :  { %7009 = vmatpush1.bf16.msra.mxu0 %v9017_v15  ;;  %7050 = vmatpush1.bf16.msra.mxu1 %v9273_v17  ;;  %v9450_v9 = vcombine.high %v1048_v1, %v1056_v3  ;;  %v776_v7 = vld [vmem:[%s13887_s1 + $0x1720] sm:$0xff]  ;;  %v9449_v15 = vcombine.low %v1048_v1, %v1056_v3 }
 0x256   :  { %7010 = vmatprep.subr.bf16.mxu0 %v9002_v21  ;;  %7051 = vmatprep.subr.bf16.mxu1 %v9258_v22  ;;  %v784_v11 = vld [vmem:[%s13887_s1 + $0x1760] sm:$0xff] }
 0x257   :  { %v1032_v12 = vld [vmem:[%s13887_s1 + $0x1f20] sm:$0xff]  ;;  %v9178_v17 = vcombine.high %v776_v7, %v784_v11  ;;  %v9177_v27 = vcombine.low %v776_v7, %v784_v11 }
 0x258   :  { %v1040_v13 = vld [vmem:[%s13887_s1 + $0x1f60] sm:$0xff] }
 0x259   :  { %7011 = vmatpush1.bf16.msra.mxu0 %v9001_v37  ;;  %7052 = vmatpush1.bf16.msra.mxu1 %v9257_v30  ;;  %v9434_v21 = vcombine.high %v1032_v12, %v1040_v13  ;;  %v760_v22 = vld [vmem:[%s13887_s1 + $0x16a0] sm:$0xff]  ;;  %v9433_v37 = vcombine.low %v1032_v12, %v1040_v13 }
 0x25a   :  { %7012 = vmatprep.subr.bf16.mxu0 %v8986_v32  ;;  %7053 = vmatprep.subr.bf16.mxu1 %v9242_v33  ;;  %v768_v23 = vld [vmem:[%s13887_s1 + $0x16e0] sm:$0xff] }
 0x25b   :  { %v1016_v18 = vld [vmem:[%s13887_s1 + $0x1ea0] sm:$0xff]  ;;  %v9162_v30 = vcombine.high %v760_v22, %v768_v23  ;;  %v9161_v41 = vcombine.low %v760_v22, %v768_v23 }
 0x25c   :  { %v1024_v24 = vld [vmem:[%s13887_s1 + $0x1ee0] sm:$0xff] }
 0x25d   :  { %7013 = vmatpush1.bf16.msra.mxu0 %v8985_v42  ;;  %7054 = vmatpush1.bf16.msra.mxu1 %v9241_v43  ;;  %v9418_v32 = vcombine.high %v1016_v18, %v1024_v24  ;;  %v744_v33 = vld [vmem:[%s13887_s1 + $0x1620] sm:$0xff]  ;;  %v9417_v42 = vcombine.low %v1016_v18, %v1024_v24 }
 0x25e   :  { %7014 = vmatprep.subr.bf16.mxu0 %v8970_v44  ;;  %7055 = vmatprep.subr.bf16.mxu1 %v9226_v45  ;;  %v752_v47 = vld [vmem:[%s13887_s1 + $0x1660] sm:$0xff] }
 0x25f   :  { %v1000_v35 = vld [vmem:[%s13887_s1 + $0x1e20] sm:$0xff]  ;;  %v9146_v43 = vcombine.high %v744_v33, %v752_v47  ;;  %v9145_v55 = vcombine.low %v744_v33, %v752_v47  ;;  %v161_v33 = vld [vmem:[%s13887_s1 + $0x3e8] sm:$0xff] }
 0x260   :  { %v1008_v38 = vld [vmem:[%s13887_s1 + $0x1e60] sm:$0xff]  ;;  %v409_v47 = vld [vmem:[%s13887_s1 + $0xba8] sm:$0xff] }
 0x261   :  { %7015 = vmatpush1.bf16.msra.mxu0 %v8969_v56  ;;  %7056 = vmatpush1.bf16.msra.mxu1 %v9225_v26  ;;  %v9402_v44 = vcombine.high %v1000_v35, %v1008_v38  ;;  %v728_v45 = vld [vmem:[%s13887_s1 + $0x15a0] sm:$0xff]  ;;  %v9401_v56 = vcombine.low %v1000_v35, %v1008_v38  ;;  %v417_v35 = vld [vmem:[%s13887_s1 + $0xbe8] sm:$0xff] }
 0x262   :  { %7016 = vmatprep.subr.bf16.mxu0 %v8954_v57  ;;  %7057 = vmatprep.subr.bf16.mxu1 %v9210_v62  ;;  %v736_v46 = vld [vmem:[%s13887_s1 + $0x15e0] sm:$0xff] }
 0x263   :  { %v984_v48 = vld [vmem:[%s13887_s1 + $0x1da0] sm:$0xff]  ;;  %v9130_v26 = vcombine.high %v728_v45, %v736_v46  ;;  %v9129_v3 = vcombine.low %v728_v45, %v736_v46  ;;  %v1094_v45 = vsub.s32 7, %v10596_v60  ;;  %v137_v46 = vld [vmem:[%s13887_s1 + $0x328] sm:$0xff] }
 0x264   :  { %v992_v52 = vld [vmem:[%s13887_s1 + $0x1de0] sm:$0xff] }
 0x265   :  { %7017 = vmatpush1.bf16.msra.mxu0 %v8953_v4  ;;  %7058 = vmatpush1.bf16.msra.mxu1 %v9209_v6  ;;  %v9386_v57 = vcombine.high %v984_v48, %v992_v52  ;;  %v712_v62 = vld [vmem:[%s13887_s1 + $0x1520] sm:$0xff]  ;;  %v9385_v4 = vcombine.low %v984_v48, %v992_v52  ;;  %v145_v48 = vld [vmem:[%s13887_s1 + $0x368] sm:$0xff] }
 0x266   :  { %7018 = vmatprep.subr.bf16.mxu0 %v9194_v8  ;;  %7059 = vmatprep.subr.bf16.mxu1 %v9450_v9  ;;  %v720_v63 = vld [vmem:[%s13887_s1 + $0x1560] sm:$0xff]  ;;  %v393_v52 = vld [vmem:[%s13887_s1 + $0xb28] sm:$0xff] }
 0x267   :  { %v968_v40 = vld [vmem:[%s13887_s1 + $0x1d20] sm:$0xff]  ;;  %v9114_v6 = vcombine.high %v712_v62, %v720_v63  ;;  %v9113_v13 = vcombine.low %v712_v62, %v720_v63  ;;  %v8540_v62 = vcombine.high %v137_v46, %v145_v48  ;;  %v1095_v63 = vrot.slane %v11452_v2, %v1094_v45 }
 0x268   :  { %v976_v1 = vld [vmem:[%s13887_s1 + $0x1d60] sm:$0xff] }
 0x269   :  { %7019 = vmatpush2.bf16.msra.mxu0 %v9193_v14  ;;  %7060 = vmatpush2.bf16.msra.mxu1 %v9449_v15  ;;  %v9370_v8 = vcombine.high %v968_v40, %v976_v1  ;;  %v696_v9 = vld [vmem:[%s13887_s1 + $0x14a0] sm:$0xff]  ;;  %v9369_v14 = vcombine.low %v968_v40, %v976_v1  ;;  %v121_v1 = vld [vmem:[%s13887_s1 + $0x2a8] sm:$0xff] }
 0x26a   :  { %7020 = vmatprep.subr.bf16.mxu0 %v9178_v17  ;;  %7061 = vmatprep.subr.bf16.mxu1 %v9434_v21  ;;  %v704_v7 = vld [vmem:[%s13887_s1 + $0x14e0] sm:$0xff] }
 0x26b   :  { %v952_v11 = vld [vmem:[%s13887_s1 + $0x1ca0] sm:$0xff]  ;;  %v9098_v15 = vcombine.high %v696_v9, %v704_v7  ;;  %v9097_v24 = vcombine.low %v696_v9, %v704_v7  ;;  %v8539_v7 = vcombine.low %v137_v46, %v145_v48  ;;  %v345_v46 = vld [vmem:[%s13887_s1 + $0x9a8] sm:$0xff] }
 0x26c   :  { %v960_v12 = vld [vmem:[%s13887_s1 + $0x1ce0] sm:$0xff]  ;;  %v353_v48 = vld [vmem:[%s13887_s1 + $0x9e8] sm:$0xff] }
 0x26d   :  { %7021 = vmatpush2.bf16.msra.mxu0 %v9177_v27  ;;  %7062 = vmatpush2.bf16.msra.mxu1 %v9433_v37  ;;  %v9354_v17 = vcombine.high %v952_v11, %v960_v12  ;;  %v680_v21 = vld [vmem:[%s13887_s1 + $0x1420] sm:$0xff]  ;;  %v9353_v27 = vcombine.low %v952_v11, %v960_v12 }
 0x26e   :  { %7022 = vmatprep.subr.bf16.mxu0 %v9162_v30  ;;  %7063 = vmatprep.subr.bf16.mxu1 %v9418_v32  ;;  %v688_v22 = vld [vmem:[%s13887_s1 + $0x1460] sm:$0xff]  ;;  %v153_v32 = vld [vmem:[%s13887_s1 + $0x3a8] sm:$0xff] }
 0x26f   :  { %v936_v23 = vld [vmem:[%s13887_s1 + $0x1c20] sm:$0xff]  ;;  %v9082_v37 = vcombine.high %v680_v21, %v688_v22  ;;  %v9081_v38 = vcombine.low %v680_v21, %v688_v22  ;;  %v105_v22 = vld [vmem:[%s13887_s1 + $0x228] sm:$0xff] }
 0x270   :  { %v944_v18 = vld [vmem:[%s13887_s1 + $0x1c60] sm:$0xff] }
 0x271   :  { %7023 = vmatpush2.bf16.msra.mxu0 %v9161_v41  ;;  %7064 = vmatpush2.bf16.msra.mxu1 %v9417_v42  ;;  %v9338_v30 = vcombine.high %v936_v23, %v944_v18  ;;  %v1090_v41 = vsub.s32 6, %v10596_v60  ;;  %v9337_v42 = vcombine.low %v936_v23, %v944_v18  ;;  %v113_v23 = vld [vmem:[%s13887_s1 + $0x268] sm:$0xff] }
 0x272   :  { %7024 = vmatprep.subr.bf16.mxu0 %v9146_v43  ;;  %7065 = vmatprep.subr.bf16.mxu1 %v9402_v44  ;;  %v8556_v43 = vcombine.high %v153_v32, %v161_v33  ;;  %v8812_v44 = vcombine.high %v409_v47, %v417_v35 }
 0x275   :  { %7025 = vmatpush2.bf16.msra.mxu0 %v9145_v55  ;;  %7066 = vmatpush2.bf16.msra.mxu1 %v9401_v56  ;;  %v401_v55 = vld [vmem:[%s13887_s1 + $0xb68] sm:$0xff]  ;;  %v1091_v56 = vrot.slane %v11452_v2, %v1090_v41 }
 0x276   :  { %7026 = vmatprep.subr.bf16.mxu0 %v9130_v26  ;;  %7067 = vmatprep.subr.bf16.mxu1 %v9386_v57  ;;  %v8555_v26 = vcombine.low %v153_v32, %v161_v33  ;;  %v8811_v57 = vcombine.low %v409_v47, %v417_v35  ;;  %v8796_v40 = vcombine.high %v393_v52, %v401_v55  ;;  %v385_v2 = vld [vmem:[%s13887_s1 + $0xae8] sm:$0xff] }
 0x277   :  { %v8795_v12 = vcombine.low %v393_v52, %v401_v55  ;;  %v8508_v35 = vcombine.high %v105_v22, %v113_v23  ;;  %v8507_v52 = vcombine.low %v105_v22, %v113_v23  ;;  %v297_v22 = vld [vmem:[%s13887_s1 + $0x828] sm:$0xff] }
 0x278   :  { %v305_v23 = vld [vmem:[%s13887_s1 + $0x868] sm:$0xff] }
 0x279   :  { %7027 = vmatpush2.bf16.msra.mxu0 %v9129_v3  ;;  %7068 = vmatpush2.bf16.msra.mxu1 %v9385_v4  ;;  %v129_v3 = vld [vmem:[%s13887_s1 + $0x2e8] sm:$0xff] }
 0x27a   :  { %7028 = vmatprep.subr.bf16.mxu0 %v9114_v6  ;;  %7069 = vmatprep.subr.bf16.mxu1 %v9370_v8  ;;  %v377_v6 = vld [vmem:[%s13887_s1 + $0xaa8] sm:$0xff]  ;;  %v8523_v32 = vcombine.low %v121_v1, %v129_v3 }
 0x27b   :  { %v8780_v21 = vcombine.high %v377_v6, %v385_v2  ;;  %v8779_v47 = vcombine.low %v377_v6, %v385_v2  ;;  %v57_v2 = vld [vmem:[%s13887_s1 + $0xa8] sm:$0xff] }
 0x27d   :  { %7029 = vmatpush2.bf16.msra.mxu0 %v9113_v13  ;;  %7070 = vmatpush2.bf16.msra.mxu1 %v9369_v14  ;;  %v8524_v13 = vcombine.high %v121_v1, %v129_v3  ;;  %v8747_v3 = vcombine.low %v345_v46, %v353_v48 }
 0x27e   :  { %7030 = vmatprep.subr.bf16.mxu0 %v9098_v15  ;;  %7071 = vmatprep.subr.bf16.mxu1 %v9354_v17 }
 0x281   :  { %7031 = vmatpush2.bf16.msra.mxu0 %v9097_v24  ;;  %7072 = vmatpush2.bf16.msra.mxu1 %v9353_v27  ;;  %v361_v24 = vld [vmem:[%s13887_s1 + $0xa28] sm:$0xff] }
 0x282   :  { %7032 = vmatprep.subr.bf16.mxu0 %v9082_v37  ;;  %7073 = vmatprep.subr.bf16.mxu1 %v9338_v30  ;;  %v369_v27 = vld [vmem:[%s13887_s1 + $0xa68] sm:$0xff] }
 0x283   :  { %v8763_v55 = vcombine.low %v361_v24, %v369_v27 }
 0x285   :  { %7033 = vmatpush2.bf16.msra.mxu0 %v9081_v38  ;;  %7074 = vmatpush2.bf16.msra.mxu1 %v9337_v42  ;;  %v8764_v42 = vcombine.high %v361_v24, %v369_v27 }
 0x286   :  { %7084 = vmatprep.subr.bf16.mxu0 %v8556_v43  ;;  %7125 = vmatprep.subr.bf16.mxu1 %v8812_v44  ;;  %v89_v43 = vld [vmem:[%s13887_s1 + $0x1a8] sm:$0xff] }
 0x287   :  { %v97_v44 = vld [vmem:[%s13887_s1 + $0x1e8] sm:$0xff] }
 0x288   :  { %v6790_v4 = vpop.f32.mrf.mxu0  ;;  %7035 = vmatmul.mubr.bf16.vlgmr.msra.gmra.mxu0 %v10217_v36  ;;  %v6831_v9 = vpop.f32.mrf.mxu1  ;;  %7076 = vmatmul.mubr.bf16.vlgmr.msra.gmra.mxu1 %v10225_v39  ;;  %v8491_v1 = vcombine.low %v89_v43, %v97_v44 }
 0x289   :  { %v6791_v8 = vadd.f32 %v6790_v4, %v1091_v56  ;;  %7085 = vmatpush1.bf16.msra.mxu0 %v8555_v26  ;;  %7126 = vmatpush1.bf16.msra.mxu1 %v8811_v57  ;;  %v8492_v56 = vcombine.high %v89_v43, %v97_v44  ;;  %v8748_v26 = vcombine.high %v345_v46, %v353_v48  ;;  %v73_v57 = vld [vmem:[%s13887_s1 + $0x128] sm:$0xff] }
 0x28a   :  { %v6792_v11 = vpop.f32.mrf.mxu0  ;;  %7086 = vmatprep.subr.bf16.mxu0 %v8540_v62  ;;  %v6833_v17 = vpop.f32.mrf.mxu1  ;;  %7127 = vmatprep.subr.bf16.mxu1 %v8796_v40  ;;  %v81_v62 = vld [vmem:[%s13887_s1 + $0x168] sm:$0xff] }
 0x28b   :  { %v11884_v14 = vadd.f32 %v6831_v9, %v6791_v8  ;;  %v6793_v15 = vadd.f32 %v6792_v11, %v1095_v63  ;;  %7116 = vmatprep.mubr.bf16.mxu0 %v9869_v58  ;;  %7157 = vmatprep.mubr.bf16.mxu1 %v9871_v59  ;;  %v329_v63 = vld [vmem:[%s13887_s1 + $0x928] sm:$0xff]  ;;  %v8476_v4 = vcombine.high %v73_v57, %v81_v62 }
 0x28c   :  { %v6794_v18 = vpop.f32.mrf.mxu0  ;;  %v6835_v30 = vpop.f32.mrf.mxu1  ;;  %v337_v40 = vld [vmem:[%s13887_s1 + $0x968] sm:$0xff]  ;;  %v8475_v11 = vcombine.low %v73_v57, %v81_v62 }
 0x28d   :  { %v11900_v37 = vadd.f32 %v6833_v17, %v6793_v15  ;;  %7087 = vmatpush1.bf16.msra.mxu0 %v8539_v7  ;;  %7128 = vmatpush1.bf16.msra.mxu1 %v8795_v12  ;;  %v8732_v6 = vcombine.high %v329_v63, %v337_v40  ;;  %v65_v8 = vld [vmem:[%s13887_s1 + $0xe8] sm:$0xff]  ;;  %v8731_v12 = vcombine.low %v329_v63, %v337_v40 }
 0x28e   :  { %v6795_v33 = vpop.f32.mrf.mxu0  ;;  %7088 = vmatprep.subr.bf16.mxu0 %v8524_v13  ;;  %v6836_v38 = vpop.f32.mrf.mxu1  ;;  %7129 = vmatprep.subr.bf16.mxu1 %v8780_v21  ;;  %v313_v9 = vld [vmem:[%s13887_s1 + $0x8a8] sm:$0xff]  ;;  %v8460_v13 = vcombine.high %v57_v2, %v65_v8  ;;  %v8459_v18 = vcombine.low %v57_v2, %v65_v8  ;;  %v8700_v30 = vcombine.high %v297_v22, %v305_v23 }
 0x28f   :  { %v321_v7 = vld [vmem:[%s13887_s1 + $0x8e8] sm:$0xff] }
 0x290   :  { %v8716_v15 = vcombine.high %v313_v9, %v321_v7  ;;  %v41_v17 = vld [vmem:[%s13887_s1 + $0x28] sm:$0xff]  ;;  %v8715_v24 = vcombine.low %v313_v9, %v321_v7 }
 0x291   :  { %7089 = vmatpush1.bf16.msra.mxu0 %v8523_v32  ;;  %7130 = vmatpush1.bf16.msra.mxu1 %v8779_v47  ;;  %v49_v21 = vld [vmem:[%s13887_s1 + $0x68] sm:$0xff] }
 0x292   :  { %7090 = vmatprep.subr.bf16.mxu0 %v8508_v35  ;;  %7131 = vmatprep.subr.bf16.mxu1 %v8764_v42  ;;  %v8444_v27 = vcombine.high %v41_v17, %v49_v21  ;;  %v281_v32 = vld [vmem:[%s13887_s1 + $0x7a8] sm:$0xff]  ;;  %v8443_v38 = vcombine.low %v41_v17, %v49_v21  ;;  %v8699_v42 = vcombine.low %v297_v22, %v305_v23 }
 0x293   :  { %v289_v33 = vld [vmem:[%s13887_s1 + $0x7e8] sm:$0xff] }
 0x294   :  { %v537_v47 = vld [vmem:[%s13887_s1 + $0xfa8] sm:$0xff]  ;;  %v8684_v43 = vcombine.high %v281_v32, %v289_v33 }
 0x295   :  { %7091 = vmatpush1.bf16.msra.mxu0 %v8507_v52  ;;  %7132 = vmatpush1.bf16.msra.mxu1 %v8763_v55  ;;  %v545_v35 = vld [vmem:[%s13887_s1 + $0xfe8] sm:$0xff] }
 0x296   :  { %7092 = vmatprep.subr.bf16.mxu0 %v8492_v56  ;;  %7133 = vmatprep.subr.bf16.mxu1 %v8748_v26  ;;  %v8940_v44 = vcombine.high %v537_v47, %v545_v35  ;;  %v265_v46 = vld [vmem:[%s13887_s1 + $0x728] sm:$0xff]  ;;  %v8683_v56 = vcombine.low %v281_v32, %v289_v33  ;;  %v8939_v26 = vcombine.low %v537_v47, %v545_v35 }
 0x297   :  { %v273_v48 = vld [vmem:[%s13887_s1 + $0x768] sm:$0xff] }
 0x298   :  { %v521_v52 = vld [vmem:[%s13887_s1 + $0xf28] sm:$0xff]  ;;  %v8668_v57 = vcombine.high %v265_v46, %v273_v48 }
 0x299   :  { %7093 = vmatpush1.bf16.msra.mxu0 %v8491_v1  ;;  %7134 = vmatpush1.bf16.msra.mxu1 %v8747_v3  ;;  %v529_v55 = vld [vmem:[%s13887_s1 + $0xf68] sm:$0xff] }
 0x29a   :  { %7094 = vmatprep.subr.bf16.mxu0 %v8476_v4  ;;  %7135 = vmatprep.subr.bf16.mxu1 %v8732_v6  ;;  %v8924_v62 = vcombine.high %v521_v52, %v529_v55  ;;  %v249_v63 = vld [vmem:[%s13887_s1 + $0x6a8] sm:$0xff]  ;;  %v8667_v4 = vcombine.low %v265_v46, %v273_v48  ;;  %v8923_v6 = vcombine.low %v521_v52, %v529_v55 }
 0x29b   :  { %v257_v40 = vld [vmem:[%s13887_s1 + $0x6e8] sm:$0xff] }
 0x29c   :  { %v505_v1 = vld [vmem:[%s13887_s1 + $0xea8] sm:$0xff]  ;;  %v8652_v2 = vcombine.high %v249_v63, %v257_v40 }
 0x29d   :  { %7095 = vmatpush1.bf16.msra.mxu0 %v8475_v11  ;;  %7136 = vmatpush1.bf16.msra.mxu1 %v8731_v12  ;;  %v513_v3 = vld [vmem:[%s13887_s1 + $0xee8] sm:$0xff] }
 0x29e   :  { %7096 = vmatprep.subr.bf16.mxu0 %v8460_v13  ;;  %7137 = vmatprep.subr.bf16.mxu1 %v8716_v15  ;;  %v8908_v8 = vcombine.high %v505_v1, %v513_v3  ;;  %v233_v9 = vld [vmem:[%s13887_s1 + $0x628] sm:$0xff]  ;;  %v8651_v13 = vcombine.low %v249_v63, %v257_v40  ;;  %v8907_v15 = vcombine.low %v505_v1, %v513_v3 }
 0x29f   :  { %v241_v7 = vld [vmem:[%s13887_s1 + $0x668] sm:$0xff] }
 0x2a0   :  { %v489_v11 = vld [vmem:[%s13887_s1 + $0xe28] sm:$0xff]  ;;  %v8636_v17 = vcombine.high %v233_v9, %v241_v7 }
 0x2a1   :  { %7097 = vmatpush1.bf16.msra.mxu0 %v8459_v18  ;;  %7138 = vmatpush1.bf16.msra.mxu1 %v8715_v24  ;;  %v497_v12 = vld [vmem:[%s13887_s1 + $0xe68] sm:$0xff] }
 0x2a2   :  { %7098 = vmatprep.subr.bf16.mxu0 %v8444_v27  ;;  %7139 = vmatprep.subr.bf16.mxu1 %v8700_v30  ;;  %v8892_v21 = vcombine.high %v489_v11, %v497_v12  ;;  %v217_v22 = vld [vmem:[%s13887_s1 + $0x5a8] sm:$0xff]  ;;  %v8635_v27 = vcombine.low %v233_v9, %v241_v7  ;;  %v8891_v30 = vcombine.low %v489_v11, %v497_v12 }
 0x2a3   :  { %v225_v23 = vld [vmem:[%s13887_s1 + $0x5e8] sm:$0xff] }
 0x2a4   :  { %v473_v18 = vld [vmem:[%s13887_s1 + $0xda8] sm:$0xff]  ;;  %v8620_v32 = vcombine.high %v217_v22, %v225_v23 }
 0x2a5   :  { %7099 = vmatpush1.bf16.msra.mxu0 %v8443_v38  ;;  %7140 = vmatpush1.bf16.msra.mxu1 %v8699_v42  ;;  %v481_v24 = vld [vmem:[%s13887_s1 + $0xde8] sm:$0xff] }
 0x2a6   :  { %7100 = vmatprep.subr.bf16.mxu0 %v8684_v43  ;;  %7141 = vmatprep.subr.bf16.mxu1 %v8940_v44  ;;  %v8876_v33 = vcombine.high %v473_v18, %v481_v24  ;;  %v201_v47 = vld [vmem:[%s13887_s1 + $0x528] sm:$0xff]  ;;  %v8619_v43 = vcombine.low %v217_v22, %v225_v23  ;;  %v8875_v44 = vcombine.low %v473_v18, %v481_v24 }
 0x2a7   :  { %v209_v35 = vld [vmem:[%s13887_s1 + $0x568] sm:$0xff] }
 0x2a8   :  { %v457_v38 = vld [vmem:[%s13887_s1 + $0xd28] sm:$0xff]  ;;  %v8604_v46 = vcombine.high %v201_v47, %v209_v35 }
 0x2a9   :  { %7101 = vmatpush2.bf16.msra.mxu0 %v8683_v56  ;;  %7142 = vmatpush2.bf16.msra.mxu1 %v8939_v26  ;;  %v465_v42 = vld [vmem:[%s13887_s1 + $0xd68] sm:$0xff] }
 0x2aa   :  { %7102 = vmatprep.subr.bf16.mxu0 %v8668_v57  ;;  %7143 = vmatprep.subr.bf16.mxu1 %v8924_v62  ;;  %v8860_v48 = vcombine.high %v457_v38, %v465_v42  ;;  %v185_v52 = vld [vmem:[%s13887_s1 + $0x4a8] sm:$0xff]  ;;  %v8603_v57 = vcombine.low %v201_v47, %v209_v35  ;;  %v8859_v62 = vcombine.low %v457_v38, %v465_v42 }
 0x2ab   :  { %v193_v55 = vld [vmem:[%s13887_s1 + $0x4e8] sm:$0xff] }
 0x2ac   :  { %v441_v56 = vld [vmem:[%s13887_s1 + $0xca8] sm:$0xff]  ;;  %v8588_v63 = vcombine.high %v185_v52, %v193_v55 }
 0x2ad   :  { %7103 = vmatpush2.bf16.msra.mxu0 %v8667_v4  ;;  %7144 = vmatpush2.bf16.msra.mxu1 %v8923_v6  ;;  %v449_v26 = vld [vmem:[%s13887_s1 + $0xce8] sm:$0xff] }
 0x2ae   :  { %7104 = vmatprep.subr.bf16.mxu0 %v8652_v2  ;;  %7145 = vmatprep.subr.bf16.mxu1 %v8908_v8  ;;  %v8844_v40 = vcombine.high %v441_v56, %v449_v26  ;;  %v169_v1 = vld [vmem:[%s13887_s1 + $0x428] sm:$0xff]  ;;  %v8587_v2 = vcombine.low %v185_v52, %v193_v55  ;;  %v8843_v8 = vcombine.low %v441_v56, %v449_v26 }
 0x2af   :  { %v177_v3 = vld [vmem:[%s13887_s1 + $0x468] sm:$0xff] }
 0x2b0   :  { %v425_v4 = vld [vmem:[%s13887_s1 + $0xc28] sm:$0xff]  ;;  %v8572_v9 = vcombine.high %v169_v1, %v177_v3 }
 0x2b1   :  { %7105 = vmatpush2.bf16.msra.mxu0 %v8651_v13  ;;  %7146 = vmatpush2.bf16.msra.mxu1 %v8907_v15  ;;  %v433_v6 = vld [vmem:[%s13887_s1 + $0xc68] sm:$0xff] }
 0x2b2   :  { %7106 = vmatprep.subr.bf16.mxu0 %v8636_v17  ;;  %7147 = vmatprep.subr.bf16.mxu1 %v8892_v21  ;;  %v8828_v7 = vcombine.high %v425_v4, %v433_v6  ;;  %v665_v11 = vld [vmem:[%s13887_s1 + $0x13a8] sm:$0xff]  ;;  %v8571_v17 = vcombine.low %v169_v1, %v177_v3  ;;  %v8827_v21 = vcombine.low %v425_v4, %v433_v6 }
 0x2b3   :  { %v673_v12 = vld [vmem:[%s13887_s1 + $0x13e8] sm:$0xff] }
 0x2b4   :  { %v921_v13 = vld [vmem:[%s13887_s1 + $0x1ba8] sm:$0xff]  ;;  %v9068_v22 = vcombine.high %v665_v11, %v673_v12 }
 0x2b5   :  { %7107 = vmatpush2.bf16.msra.mxu0 %v8635_v27  ;;  %7148 = vmatpush2.bf16.msra.mxu1 %v8891_v30  ;;  %v929_v15 = vld [vmem:[%s13887_s1 + $0x1be8] sm:$0xff] }
 0x2b6   :  { %7108 = vmatprep.subr.bf16.mxu0 %v8620_v32  ;;  %7149 = vmatprep.subr.bf16.mxu1 %v8876_v33  ;;  %v9324_v23 = vcombine.high %v921_v13, %v929_v15  ;;  %v649_v18 = vld [vmem:[%s13887_s1 + $0x1328] sm:$0xff]  ;;  %v9067_v32 = vcombine.low %v665_v11, %v673_v12  ;;  %v9323_v33 = vcombine.low %v921_v13, %v929_v15 }
 0x2b7   :  { %v657_v24 = vld [vmem:[%s13887_s1 + $0x1368] sm:$0xff] }
 0x2b8   :  { %v905_v27 = vld [vmem:[%s13887_s1 + $0x1b28] sm:$0xff]  ;;  %v9052_v47 = vcombine.high %v649_v18, %v657_v24  ;;  %v9051_v55 = vcombine.low %v649_v18, %v657_v24 }
 0x2b9   :  { %7109 = vmatpush2.bf16.msra.mxu0 %v8619_v43  ;;  %7150 = vmatpush2.bf16.msra.mxu1 %v8875_v44  ;;  %v913_v30 = vld [vmem:[%s13887_s1 + $0x1b68] sm:$0xff] }
 0x2ba   :  { %7110 = vmatprep.subr.bf16.mxu0 %v8604_v46  ;;  %7151 = vmatprep.subr.bf16.mxu1 %v8860_v48  ;;  %v9308_v35 = vcombine.high %v905_v27, %v913_v30  ;;  %v633_v38 = vld [vmem:[%s13887_s1 + $0x12a8] sm:$0xff]  ;;  %v9307_v26 = vcombine.low %v905_v27, %v913_v30 }
 0x2bb   :  { %v641_v42 = vld [vmem:[%s13887_s1 + $0x12e8] sm:$0xff] }
 0x2bc   :  { %v889_v44 = vld [vmem:[%s13887_s1 + $0x1aa8] sm:$0xff] }
 0x2bd   :  { %7111 = vmatpush2.bf16.msra.mxu0 %v8603_v57  ;;  %7152 = vmatpush2.bf16.msra.mxu1 %v8859_v62  ;;  %v897_v46 = vld [vmem:[%s13887_s1 + $0x1ae8] sm:$0xff]  ;;  %v9036_v57 = vcombine.high %v633_v38, %v641_v42 }
 0x2be   :  { %7112 = vmatprep.subr.bf16.mxu0 %v8588_v63  ;;  %7153 = vmatprep.subr.bf16.mxu1 %v8844_v40  ;;  %v9292_v1 = vcombine.high %v889_v44, %v897_v46  ;;  %v625_v3 = vld [vmem:[%s13887_s1 + $0x1268] sm:$0xff]  ;;  %v9291_v11 = vcombine.low %v889_v44, %v897_v46 }
 0x2bf   :  { %v873_v6 = vld [vmem:[%s13887_s1 + $0x1a28] sm:$0xff] }
 0x2c0   :  { %v569_v46 = vld [vmem:[%s13887_s1 + $0x10a8] sm:$0xff] }
 0x2c1   :  { %7113 = vmatpush2.bf16.msra.mxu0 %v8587_v2  ;;  %7154 = vmatpush2.bf16.msra.mxu1 %v8843_v8 }
 0x2c2   :  { %7114 = vmatprep.subr.bf16.mxu0 %v8572_v9  ;;  %7155 = vmatprep.subr.bf16.mxu1 %v8828_v7  ;;  %v9035_v9 = vcombine.low %v633_v38, %v641_v42 }
 0x2c5   :  { %7115 = vmatpush2.bf16.msra.mxu0 %v8571_v17  ;;  %7156 = vmatpush2.bf16.msra.mxu1 %v8827_v21  ;;  %v601_v17 = vld [vmem:[%s13887_s1 + $0x11a8] sm:$0xff] }
 0x2c6   :  { %7166 = vmatprep.subr.bf16.mxu0 %v9068_v22  ;;  %7207 = vmatprep.subr.bf16.mxu1 %v9324_v23  ;;  %v609_v21 = vld [vmem:[%s13887_s1 + $0x11e8] sm:$0xff] }
 0x2c7   :  { %v857_v22 = vld [vmem:[%s13887_s1 + $0x19a8] sm:$0xff]  ;;  %v9004_v27 = vcombine.high %v601_v17, %v609_v21  ;;  %v9003_v38 = vcombine.low %v601_v17, %v609_v21 }
 0x2c8   :  { %v6872_v43 = vpop.f32.mrf.mxu0  ;;  %7117 = vmatmul.mubr.bf16.vlgmr.msra.gmra.mxu0 %v10001_v16  ;;  %v6913_v52 = vpop.f32.mrf.mxu1  ;;  %7158 = vmatmul.mubr.bf16.vlgmr.msra.gmra.mxu1 %v10012_v20  ;;  %v865_v23 = vld [vmem:[%s13887_s1 + $0x19e8] sm:$0xff] }
 0x2c9   :  { %v6873_v48 = vadd.f32 %v6872_v43, %v11884_v14  ;;  %7167 = vmatpush1.bf16.msra.mxu0 %v9067_v32  ;;  %7208 = vmatpush1.bf16.msra.mxu1 %v9323_v33  ;;  %v617_v14 = vld [vmem:[%s13887_s1 + $0x1228] sm:$0xff]  ;;  %v9260_v30 = vcombine.high %v857_v22, %v865_v23  ;;  %v9259_v42 = vcombine.low %v857_v22, %v865_v23 }
 0x2ca   :  { %v6874_v56 = vpop.f32.mrf.mxu0  ;;  %7168 = vmatprep.subr.bf16.mxu0 %v9052_v47  ;;  %v6915_v40 = vpop.f32.mrf.mxu1  ;;  %7209 = vmatprep.subr.bf16.mxu1 %v9308_v35  ;;  %v9020_v12 = vcombine.high %v617_v14, %v625_v3  ;;  %v9019_v18 = vcombine.low %v617_v14, %v625_v3  ;;  %v585_v32 = vld [vmem:[%s13887_s1 + $0x1128] sm:$0xff] }
 0x2cb   :  { %v12085_v62 = vadd.f32 %v6913_v52, %v6873_v48  ;;  %v6875_v63 = vadd.f32 %v6874_v56, %v11900_v37  ;;  %7198 = vmatprep.mubr.bf16.mxu0 %v10023_v28  ;;  %v881_v37 = vld [vmem:[%s13887_s1 + $0x1a68] sm:$0xff]  ;;  %7239 = vmatprep.mubr.bf16.mxu1 %v10032_v31 }
 0x2cc   :  { %v6876_v4 = vpop.f32.mrf.mxu0  ;;  %v6917_v8 = vpop.f32.mrf.mxu1  ;;  %v9276_v15 = vcombine.high %v873_v6, %v881_v37  ;;  %v9275_v24 = vcombine.low %v873_v6, %v881_v37  ;;  %v593_v33 = vld [vmem:[%s13887_s1 + $0x1168] sm:$0xff] }
 0x2cd   :  { %v12102_v2 = vadd.f32 %v6915_v40, %v6875_v63  ;;  %7169 = vmatpush1.bf16.msra.mxu0 %v9051_v55  ;;  %7210 = vmatpush1.bf16.msra.mxu1 %v9307_v26  ;;  %v841_v47 = vld [vmem:[%s13887_s1 + $0x1928] sm:$0xff]  ;;  %v8988_v43 = vcombine.high %v585_v32, %v593_v33  ;;  %v8987_v56 = vcombine.low %v585_v32, %v593_v33 }
 0x2ce   :  { %v6877_v7 = vpop.f32.mrf.mxu0  ;;  %7170 = vmatprep.subr.bf16.mxu0 %v9036_v57  ;;  %v6918_v13 = vpop.f32.mrf.mxu1  ;;  %7211 = vmatprep.subr.bf16.mxu1 %v9292_v1  ;;  %v849_v35 = vld [vmem:[%s13887_s1 + $0x1968] sm:$0xff] }
 0x2cf   :  { %v9244_v44 = vcombine.high %v841_v47, %v849_v35  ;;  %v577_v48 = vld [vmem:[%s13887_s1 + $0x10e8] sm:$0xff]  ;;  %v9243_v26 = vcombine.low %v841_v47, %v849_v35 }
 0x2d0   :  { %v825_v52 = vld [vmem:[%s13887_s1 + $0x18a8] sm:$0xff]  ;;  %v8972_v57 = vcombine.high %v569_v46, %v577_v48  ;;  %v8971_v4 = vcombine.low %v569_v46, %v577_v48 }
 0x2d1   :  { %7171 = vmatpush1.bf16.msra.mxu0 %v9035_v9  ;;  %7212 = vmatpush1.bf16.msra.mxu1 %v9291_v11  ;;  %v833_v55 = vld [vmem:[%s13887_s1 + $0x18e8] sm:$0xff] }
 0x2d2   :  { %7172 = vmatprep.subr.bf16.mxu0 %v9020_v12  ;;  %7213 = vmatprep.subr.bf16.mxu1 %v9276_v15  ;;  %v9228_v63 = vcombine.high %v825_v52, %v833_v55  ;;  %v553_v40 = vld [vmem:[%s13887_s1 + $0x1028] sm:$0xff]  ;;  %v9227_v6 = vcombine.low %v825_v52, %v833_v55 }
 0x2d3   :  { %v561_v1 = vld [vmem:[%s13887_s1 + $0x1068] sm:$0xff] }
 0x2d4   :  { %v809_v14 = vld [vmem:[%s13887_s1 + $0x1828] sm:$0xff]  ;;  %v8956_v37 = vcombine.high %v553_v40, %v561_v1  ;;  %v8955_v13 = vcombine.low %v553_v40, %v561_v1 }
 0x2d5   :  { %7173 = vmatpush1.bf16.msra.mxu0 %v9019_v18  ;;  %7214 = vmatpush1.bf16.msra.mxu1 %v9275_v24  ;;  %v817_v3 = vld [vmem:[%s13887_s1 + $0x1868] sm:$0xff] }
 0x2d6   :  { %7174 = vmatprep.subr.bf16.mxu0 %v9004_v27  ;;  %7215 = vmatprep.subr.bf16.mxu1 %v9260_v30  ;;  %v9212_v8 = vcombine.high %v809_v14, %v817_v3  ;;  %v793_v9 = vld [vmem:[%s13887_s1 + $0x17a8] sm:$0xff]  ;;  %v9211_v15 = vcombine.low %v809_v14, %v817_v3 }
 0x2d7   :  { %v801_v7 = vld [vmem:[%s13887_s1 + $0x17e8] sm:$0xff] }
 0x2d8   :  { %v1049_v11 = vld [vmem:[%s13887_s1 + $0x1fa8] sm:$0xff]  ;;  %v9196_v17 = vcombine.high %v793_v9, %v801_v7  ;;  %v9195_v27 = vcombine.low %v793_v9, %v801_v7 }
 0x2d9   :  { %7175 = vmatpush1.bf16.msra.mxu0 %v9003_v38  ;;  %7216 = vmatpush1.bf16.msra.mxu1 %v9259_v42  ;;  %v1057_v12 = vld [vmem:[%s13887_s1 + $0x1fe8] sm:$0xff] }
 0x2da   :  { %7176 = vmatprep.subr.bf16.mxu0 %v8988_v43  ;;  %7217 = vmatprep.subr.bf16.mxu1 %v9244_v44  ;;  %v9452_v21 = vcombine.high %v1049_v11, %v1057_v12  ;;  %v777_v22 = vld [vmem:[%s13887_s1 + $0x1728] sm:$0xff]  ;;  %v9451_v30 = vcombine.low %v1049_v11, %v1057_v12 }
 0x2db   :  { %v785_v23 = vld [vmem:[%s13887_s1 + $0x1768] sm:$0xff] }
 0x2dc   :  { %v1033_v18 = vld [vmem:[%s13887_s1 + $0x1f28] sm:$0xff]  ;;  %v9180_v32 = vcombine.high %v777_v22, %v785_v23  ;;  %v9179_v43 = vcombine.low %v777_v22, %v785_v23 }
 0x2dd   :  { %7177 = vmatpush1.bf16.msra.mxu0 %v8987_v56  ;;  %7218 = vmatpush1.bf16.msra.mxu1 %v9243_v26  ;;  %v1041_v24 = vld [vmem:[%s13887_s1 + $0x1f68] sm:$0xff] }
 0x2de   :  { %7178 = vmatprep.subr.bf16.mxu0 %v8972_v57  ;;  %7219 = vmatprep.subr.bf16.mxu1 %v9228_v63  ;;  %v9436_v33 = vcombine.high %v1033_v18, %v1041_v24  ;;  %v761_v47 = vld [vmem:[%s13887_s1 + $0x16a8] sm:$0xff]  ;;  %v9435_v44 = vcombine.low %v1033_v18, %v1041_v24 }
 0x2df   :  { %v769_v35 = vld [vmem:[%s13887_s1 + $0x16e8] sm:$0xff] }
 0x2e0   :  { %v1017_v38 = vld [vmem:[%s13887_s1 + $0x1ea8] sm:$0xff]  ;;  %v9164_v46 = vcombine.high %v761_v47, %v769_v35  ;;  %v9163_v57 = vcombine.low %v761_v47, %v769_v35 }
 0x2e1   :  { %7179 = vmatpush1.bf16.msra.mxu0 %v8971_v4  ;;  %7220 = vmatpush1.bf16.msra.mxu1 %v9227_v6  ;;  %v1025_v42 = vld [vmem:[%s13887_s1 + $0x1ee8] sm:$0xff] }
 0x2e2   :  { %7180 = vmatprep.subr.bf16.mxu0 %v8956_v37  ;;  %7221 = vmatprep.subr.bf16.mxu1 %v9212_v8  ;;  %v9420_v48 = vcombine.high %v1017_v38, %v1025_v42  ;;  %v745_v52 = vld [vmem:[%s13887_s1 + $0x1628] sm:$0xff]  ;;  %v9419_v63 = vcombine.low %v1017_v38, %v1025_v42 }
 0x2e3   :  { %v753_v55 = vld [vmem:[%s13887_s1 + $0x1668] sm:$0xff] }
 0x2e4   :  { %v1001_v56 = vld [vmem:[%s13887_s1 + $0x1e28] sm:$0xff]  ;;  %v9148_v40 = vcombine.high %v745_v52, %v753_v55  ;;  %v9147_v37 = vcombine.low %v745_v52, %v753_v55 }
 0x2e5   :  { %7181 = vmatpush1.bf16.msra.mxu0 %v8955_v13  ;;  %7222 = vmatpush1.bf16.msra.mxu1 %v9211_v15  ;;  %v1009_v26 = vld [vmem:[%s13887_s1 + $0x1e68] sm:$0xff] }
 0x2e6   :  { %7182 = vmatprep.subr.bf16.mxu0 %v9196_v17  ;;  %7223 = vmatprep.subr.bf16.mxu1 %v9452_v21  ;;  %v9404_v1 = vcombine.high %v1001_v56, %v1009_v26  ;;  %v729_v14 = vld [vmem:[%s13887_s1 + $0x15a8] sm:$0xff]  ;;  %v9403_v8 = vcombine.low %v1001_v56, %v1009_v26  ;;  %v154_v56 = vld [vmem:[%s13887_s1 + $0x3b0] sm:$0xff] }
 0x2e7   :  { %v737_v3 = vld [vmem:[%s13887_s1 + $0x15e8] sm:$0xff]  ;;  %v162_v26 = vld [vmem:[%s13887_s1 + $0x3f0] sm:$0xff] }
 0x2e8   :  { %v985_v4 = vld [vmem:[%s13887_s1 + $0x1da8] sm:$0xff]  ;;  %v9132_v9 = vcombine.high %v729_v14, %v737_v3  ;;  %v9131_v17 = vcombine.low %v729_v14, %v737_v3  ;;  %v8558_v3 = vcombine.high %v154_v56, %v162_v26 }
 0x2e9   :  { %7183 = vmatpush2.bf16.msra.mxu0 %v9195_v27  ;;  %7224 = vmatpush2.bf16.msra.mxu1 %v9451_v30  ;;  %v993_v6 = vld [vmem:[%s13887_s1 + $0x1de8] sm:$0xff] }
 0x2ea   :  { %7184 = vmatprep.subr.bf16.mxu0 %v9180_v32  ;;  %7225 = vmatprep.subr.bf16.mxu1 %v9436_v33  ;;  %v9388_v7 = vcombine.high %v985_v4, %v993_v6  ;;  %v713_v11 = vld [vmem:[%s13887_s1 + $0x1528] sm:$0xff]  ;;  %v9387_v21 = vcombine.low %v985_v4, %v993_v6  ;;  %v138_v6 = vld [vmem:[%s13887_s1 + $0x330] sm:$0xff] }
 0x2eb   :  { %v721_v12 = vld [vmem:[%s13887_s1 + $0x1568] sm:$0xff] }
 0x2ec   :  { %v969_v13 = vld [vmem:[%s13887_s1 + $0x1d28] sm:$0xff]  ;;  %v9116_v22 = vcombine.high %v713_v11, %v721_v12  ;;  %v9115_v32 = vcombine.low %v713_v11, %v721_v12  ;;  %v8557_v11 = vcombine.low %v154_v56, %v162_v26 }
 0x2ed   :  { %7185 = vmatpush2.bf16.msra.mxu0 %v9179_v43  ;;  %7226 = vmatpush2.bf16.msra.mxu1 %v9435_v44  ;;  %v977_v15 = vld [vmem:[%s13887_s1 + $0x1d68] sm:$0xff] }
 0x2ee   :  { %7186 = vmatprep.subr.bf16.mxu0 %v9164_v46  ;;  %7227 = vmatprep.subr.bf16.mxu1 %v9420_v48  ;;  %v9372_v23 = vcombine.high %v969_v13, %v977_v15  ;;  %v697_v18 = vld [vmem:[%s13887_s1 + $0x14a8] sm:$0xff]  ;;  %v9371_v33 = vcombine.low %v969_v13, %v977_v15 }
 0x2ef   :  { %v705_v24 = vld [vmem:[%s13887_s1 + $0x14e8] sm:$0xff] }
 0x2f0   :  { %v953_v27 = vld [vmem:[%s13887_s1 + $0x1ca8] sm:$0xff]  ;;  %v9100_v47 = vcombine.high %v697_v18, %v705_v24  ;;  %v9099_v46 = vcombine.low %v697_v18, %v705_v24 }
 0x2f1   :  { %7187 = vmatpush2.bf16.msra.mxu0 %v9163_v57  ;;  %7228 = vmatpush2.bf16.msra.mxu1 %v9419_v63  ;;  %v961_v30 = vld [vmem:[%s13887_s1 + $0x1ce8] sm:$0xff]  ;;  %v410_v57 = vld [vmem:[%s13887_s1 + $0xbb0] sm:$0xff] }
 0x2f2   :  { %7188 = vmatprep.subr.bf16.mxu0 %v9148_v40  ;;  %7229 = vmatprep.subr.bf16.mxu1 %v9404_v1  ;;  %v9356_v35 = vcombine.high %v953_v27, %v961_v30  ;;  %v681_v38 = vld [vmem:[%s13887_s1 + $0x1428] sm:$0xff]  ;;  %v9355_v48 = vcombine.low %v953_v27, %v961_v30  ;;  %v418_v63 = vld [vmem:[%s13887_s1 + $0xbf0] sm:$0xff] }
 0x2f3   :  { %v689_v42 = vld [vmem:[%s13887_s1 + $0x1468] sm:$0xff]  ;;  %v8814_v4 = vcombine.high %v410_v57, %v418_v63  ;;  %v8813_v12 = vcombine.low %v410_v57, %v418_v63 }
 0x2f4   :  { %v937_v43 = vld [vmem:[%s13887_s1 + $0x1c28] sm:$0xff]  ;;  %v9084_v52 = vcombine.high %v681_v38, %v689_v42  ;;  %v9083_v40 = vcombine.low %v681_v38, %v689_v42 }
 0x2f5   :  { %7189 = vmatpush2.bf16.msra.mxu0 %v9147_v37  ;;  %7230 = vmatpush2.bf16.msra.mxu1 %v9403_v8  ;;  %v945_v44 = vld [vmem:[%s13887_s1 + $0x1c68] sm:$0xff]  ;;  %v146_v37 = vld [vmem:[%s13887_s1 + $0x370] sm:$0xff] }
 0x2f6   :  { %7190 = vmatprep.subr.bf16.mxu0 %v9132_v9  ;;  %7231 = vmatprep.subr.bf16.mxu1 %v9388_v7  ;;  %v9340_v55 = vcombine.high %v937_v43, %v945_v44  ;;  %v9339_v1 = vcombine.low %v937_v43, %v945_v44  ;;  %v12263_v14 = vld [vmem:[%s13889_s2 + $0x8] sm:$0xff]  ;;  %v394_v8 = vld [vmem:[%s13887_s1 + $0xb30] sm:$0xff]  ;;  %v8542_v13 = vcombine.high %v138_v6, %v146_v37 }
 0x2f7   :  { %v402_v9 = vld [vmem:[%s13887_s1 + $0xb70] sm:$0xff]  ;;  %v1099_v7 = vrot.slane %v12263_v14, %v1066_v5  ;;  %v1103_v15 = vrot.slane %v12263_v14, %v1070_v10  ;;  %v8541_v27 = vcombine.low %v138_v6, %v146_v37 }
 0x2f8   :  { %v386_v10 = vld [vmem:[%s13887_s1 + $0xaf0] sm:$0xff] }
 0x2f9   :  { %7191 = vmatpush2.bf16.msra.mxu0 %v9131_v17  ;;  %7232 = vmatpush2.bf16.msra.mxu1 %v9387_v21  ;;  %v8798_v17 = vcombine.high %v394_v8, %v402_v9  ;;  %v122_v21 = vld [vmem:[%s13887_s1 + $0x2b0] sm:$0xff] }
 0x2fa   :  { %7192 = vmatprep.subr.bf16.mxu0 %v9116_v22  ;;  %7233 = vmatprep.subr.bf16.mxu1 %v9372_v23  ;;  %v130_v22 = vld [vmem:[%s13887_s1 + $0x2f0] sm:$0xff] }
 0x2fb   :  { %v378_v23 = vld [vmem:[%s13887_s1 + $0xab0] sm:$0xff]  ;;  %v8525_v26 = vcombine.low %v122_v21, %v130_v22 }
 0x2fc   :  { %v8782_v42 = vcombine.high %v378_v23, %v386_v10  ;;  %v106_v43 = vld [vmem:[%s13887_s1 + $0x230] sm:$0xff]  ;;  %v8781_v63 = vcombine.low %v378_v23, %v386_v10 }
 0x2fd   :  { %7193 = vmatpush2.bf16.msra.mxu0 %v9115_v32  ;;  %7234 = vmatpush2.bf16.msra.mxu1 %v9371_v33  ;;  %v8797_v32 = vcombine.low %v394_v8, %v402_v9  ;;  %v8526_v33 = vcombine.high %v122_v21, %v130_v22  ;;  %v114_v44 = vld [vmem:[%s13887_s1 + $0x270] sm:$0xff] }
 0x2fe   :  { %7194 = vmatprep.subr.bf16.mxu0 %v9100_v47  ;;  %7235 = vmatprep.subr.bf16.mxu1 %v9356_v35  ;;  %v98_v6 = vld [vmem:[%s13887_s1 + $0x1f0] sm:$0xff]  ;;  %v8509_v9 = vcombine.low %v106_v43, %v114_v44 }
 0x2ff   :  { %v346_v37 = vld [vmem:[%s13887_s1 + $0x9b0] sm:$0xff] }
 0x300   :  { %v354_v8 = vld [vmem:[%s13887_s1 + $0x9f0] sm:$0xff] }
 0x301   :  { %7195 = vmatpush2.bf16.msra.mxu0 %v9099_v46  ;;  %7236 = vmatpush2.bf16.msra.mxu1 %v9355_v48  ;;  %v362_v48 = vld [vmem:[%s13887_s1 + $0xa30] sm:$0xff] }
 0x302   :  { %7196 = vmatprep.subr.bf16.mxu0 %v9084_v52  ;;  %7237 = vmatprep.subr.bf16.mxu1 %v9340_v55  ;;  %v370_v52 = vld [vmem:[%s13887_s1 + $0xa70] sm:$0xff] }
 0x303   :  { %v338_v21 = vld [vmem:[%s13887_s1 + $0x970] sm:$0xff] }
 0x305   :  { %7197 = vmatpush2.bf16.msra.mxu0 %v9083_v40  ;;  %7238 = vmatpush2.bf16.msra.mxu1 %v9339_v1  ;;  %v8510_v40 = vcombine.high %v106_v43, %v114_v44  ;;  %v50_v43 = vld [vmem:[%s13887_s1 + $0x70] sm:$0xff] }
 0x306   :  { %7248 = vmatprep.subr.bf16.mxu0 %v8558_v3  ;;  %7289 = vmatprep.subr.bf16.mxu1 %v8814_v4  ;;  %v8766_v3 = vcombine.high %v362_v48, %v370_v52  ;;  %v90_v4 = vld [vmem:[%s13887_s1 + $0x1b0] sm:$0xff] }
 0x307   :  { %v8493_v22 = vcombine.low %v90_v4, %v98_v6  ;;  %v298_v44 = vld [vmem:[%s13887_s1 + $0x830] sm:$0xff] }
 0x308   :  { %v6954_v5 = vpop.f32.mrf.mxu0  ;;  %7199 = vmatmul.mubr.bf16.vlgmr.msra.gmra.mxu0 %v10217_v36  ;;  %v6995_v24 = vpop.f32.mrf.mxu1  ;;  %7240 = vmatmul.mubr.bf16.vlgmr.msra.gmra.mxu1 %v10225_v39 }
 0x309   :  { %v6955_v18 = vadd.f32 %v6954_v5, %v1099_v7  ;;  %7249 = vmatpush1.bf16.msra.mxu0 %v8557_v11  ;;  %7290 = vmatpush1.bf16.msra.mxu1 %v8813_v12  ;;  %v8765_v7 = vcombine.low %v362_v48, %v370_v52  ;;  %v8494_v11 = vcombine.high %v90_v4, %v98_v6 }
 0x30a   :  { %v6956_v30 = vpop.f32.mrf.mxu0  ;;  %7250 = vmatprep.subr.bf16.mxu0 %v8542_v13  ;;  %v6997_v38 = vpop.f32.mrf.mxu1  ;;  %7291 = vmatprep.subr.bf16.mxu1 %v8798_v17  ;;  %v8750_v12 = vcombine.high %v346_v37, %v354_v8  ;;  %v74_v13 = vld [vmem:[%s13887_s1 + $0x130] sm:$0xff]  ;;  %v8749_v5 = vcombine.low %v346_v37, %v354_v8 }
 0x30b   :  { %v12297_v47 = vadd.f32 %v6995_v24, %v6955_v18  ;;  %v6957_v35 = vadd.f32 %v6956_v30, %v1103_v15  ;;  %7280 = vmatprep.mubr.bf16.mxu0 %v9869_v58  ;;  %7321 = vmatprep.mubr.bf16.mxu1 %v9871_v59  ;;  %v82_v15 = vld [vmem:[%s13887_s1 + $0x170] sm:$0xff] }
 0x30c   :  { %v6958_v46 = vpop.f32.mrf.mxu0  ;;  %v6999_v56 = vpop.f32.mrf.mxu1  ;;  %v330_v17 = vld [vmem:[%s13887_s1 + $0x930] sm:$0xff]  ;;  %v8478_v23 = vcombine.high %v74_v13, %v82_v15 }
 0x30d   :  { %v12313_v55 = vadd.f32 %v6997_v38, %v6957_v35  ;;  %7251 = vmatpush1.bf16.msra.mxu0 %v8541_v27  ;;  %7292 = vmatpush1.bf16.msra.mxu1 %v8797_v32  ;;  %v8734_v10 = vcombine.high %v330_v17, %v338_v21  ;;  %v58_v18 = vld [vmem:[%s13887_s1 + $0xb0] sm:$0xff]  ;;  %v8477_v32 = vcombine.low %v74_v13, %v82_v15 }
 0x30e   :  { %v6959_v57 = vpop.f32.mrf.mxu0  ;;  %7252 = vmatprep.subr.bf16.mxu0 %v8526_v33  ;;  %v7000_v1 = vpop.f32.mrf.mxu1  ;;  %7293 = vmatprep.subr.bf16.mxu1 %v8782_v42  ;;  %v66_v24 = vld [vmem:[%s13887_s1 + $0xf0] sm:$0xff]  ;;  %v8733_v33 = vcombine.low %v330_v17, %v338_v21 }
 0x30f   :  { %v314_v27 = vld [vmem:[%s13887_s1 + $0x8b0] sm:$0xff]  ;;  %v8462_v35 = vcombine.high %v58_v18, %v66_v24  ;;  %v8461_v48 = vcombine.low %v58_v18, %v66_v24 }
 0x310   :  { %v322_v30 = vld [vmem:[%s13887_s1 + $0x8f0] sm:$0xff] }
 0x311   :  { %7253 = vmatpush1.bf16.msra.mxu0 %v8525_v26  ;;  %7294 = vmatpush1.bf16.msra.mxu1 %v8781_v63  ;;  %v8718_v38 = vcombine.high %v314_v27, %v322_v30  ;;  %v42_v42 = vld [vmem:[%s13887_s1 + $0x30] sm:$0xff]  ;;  %v8717_v52 = vcombine.low %v314_v27, %v322_v30 }
 0x312   :  { %7254 = vmatprep.subr.bf16.mxu0 %v8510_v40  ;;  %7295 = vmatprep.subr.bf16.mxu1 %v8766_v3  ;;  %v306_v46 = vld [vmem:[%s13887_s1 + $0x870] sm:$0xff]  ;;  %v8446_v56 = vcombine.high %v42_v42, %v50_v43  ;;  %v8445_v3 = vcombine.low %v42_v42, %v50_v43 }
 0x313   :  { %v8702_v26 = vcombine.high %v298_v44, %v306_v46  ;;  %v282_v57 = vld [vmem:[%s13887_s1 + $0x7b0] sm:$0xff]  ;;  %v8701_v4 = vcombine.low %v298_v44, %v306_v46 }
 0x314   :  { %v290_v63 = vld [vmem:[%s13887_s1 + $0x7f0] sm:$0xff] }
 0x315   :  { %7255 = vmatpush1.bf16.msra.mxu0 %v8509_v9  ;;  %7296 = vmatpush1.bf16.msra.mxu1 %v8765_v7  ;;  %v538_v40 = vld [vmem:[%s13887_s1 + $0xfb0] sm:$0xff]  ;;  %v8686_v6 = vcombine.high %v282_v57, %v290_v63 }
 0x316   :  { %7256 = vmatprep.subr.bf16.mxu0 %v8494_v11  ;;  %7297 = vmatprep.subr.bf16.mxu1 %v8750_v12  ;;  %v546_v1 = vld [vmem:[%s13887_s1 + $0xff0] sm:$0xff]  ;;  %v8685_v12 = vcombine.low %v282_v57, %v290_v63 }
 0x317   :  { %v8942_v37 = vcombine.high %v538_v40, %v546_v1  ;;  %v266_v8 = vld [vmem:[%s13887_s1 + $0x730] sm:$0xff]  ;;  %v8941_v13 = vcombine.low %v538_v40, %v546_v1 }
 0x318   :  { %v274_v9 = vld [vmem:[%s13887_s1 + $0x770] sm:$0xff] }
 0x319   :  { %7257 = vmatpush1.bf16.msra.mxu0 %v8493_v22  ;;  %7298 = vmatpush1.bf16.msra.mxu1 %v8749_v5  ;;  %v522_v7 = vld [vmem:[%s13887_s1 + $0xf30] sm:$0xff]  ;;  %v8670_v15 = vcombine.high %v266_v8, %v274_v9 }
 0x31a   :  { %7258 = vmatprep.subr.bf16.mxu0 %v8478_v23  ;;  %7299 = vmatprep.subr.bf16.mxu1 %v8734_v10  ;;  %v530_v11 = vld [vmem:[%s13887_s1 + $0xf70] sm:$0xff]  ;;  %v8669_v10 = vcombine.low %v266_v8, %v274_v9 }
 0x31b   :  { %v8926_v17 = vcombine.high %v522_v7, %v530_v11  ;;  %v250_v21 = vld [vmem:[%s13887_s1 + $0x6b0] sm:$0xff]  ;;  %v8925_v18 = vcombine.low %v522_v7, %v530_v11 }
 0x31c   :  { %v258_v22 = vld [vmem:[%s13887_s1 + $0x6f0] sm:$0xff] }
 0x31d   :  { %7259 = vmatpush1.bf16.msra.mxu0 %v8477_v32  ;;  %7300 = vmatpush1.bf16.msra.mxu1 %v8733_v33  ;;  %v506_v5 = vld [vmem:[%s13887_s1 + $0xeb0] sm:$0xff]  ;;  %v8654_v24 = vcombine.high %v250_v21, %v258_v22 }
 0x31e   :  { %7260 = vmatprep.subr.bf16.mxu0 %v8462_v35  ;;  %7301 = vmatprep.subr.bf16.mxu1 %v8718_v38  ;;  %v514_v23 = vld [vmem:[%s13887_s1 + $0xef0] sm:$0xff]  ;;  %v8653_v38 = vcombine.low %v250_v21, %v258_v22 }
 0x31f   :  { %v8910_v27 = vcombine.high %v506_v5, %v514_v23  ;;  %v234_v30 = vld [vmem:[%s13887_s1 + $0x630] sm:$0xff]  ;;  %v8909_v42 = vcombine.low %v506_v5, %v514_v23 }
 0x320   :  { %v242_v32 = vld [vmem:[%s13887_s1 + $0x670] sm:$0xff] }
 0x321   :  { %7261 = vmatpush1.bf16.msra.mxu0 %v8461_v48  ;;  %7302 = vmatpush1.bf16.msra.mxu1 %v8717_v52  ;;  %v490_v33 = vld [vmem:[%s13887_s1 + $0xe30] sm:$0xff]  ;;  %v8638_v43 = vcombine.high %v234_v30, %v242_v32 }
 0x322   :  { %7262 = vmatprep.subr.bf16.mxu0 %v8446_v56  ;;  %7303 = vmatprep.subr.bf16.mxu1 %v8702_v26  ;;  %v498_v35 = vld [vmem:[%s13887_s1 + $0xe70] sm:$0xff]  ;;  %v8637_v26 = vcombine.low %v234_v30, %v242_v32 }
 0x323   :  { %v8894_v44 = vcombine.high %v490_v33, %v498_v35  ;;  %v218_v46 = vld [vmem:[%s13887_s1 + $0x5b0] sm:$0xff]  ;;  %v8893_v57 = vcombine.low %v490_v33, %v498_v35 }
 0x324   :  { %v226_v48 = vld [vmem:[%s13887_s1 + $0x5f0] sm:$0xff] }
 0x325   :  { %7263 = vmatpush1.bf16.msra.mxu0 %v8445_v3  ;;  %7304 = vmatpush1.bf16.msra.mxu1 %v8701_v4  ;;  %v474_v52 = vld [vmem:[%s13887_s1 + $0xdb0] sm:$0xff]  ;;  %v8622_v63 = vcombine.high %v218_v46, %v226_v48 }
 0x326   :  { %7264 = vmatprep.subr.bf16.mxu0 %v8686_v6  ;;  %7305 = vmatprep.subr.bf16.mxu1 %v8942_v37  ;;  %v482_v56 = vld [vmem:[%s13887_s1 + $0xdf0] sm:$0xff]  ;;  %v8621_v37 = vcombine.low %v218_v46, %v226_v48 }
 0x327   :  { %v8878_v40 = vcombine.high %v474_v52, %v482_v56  ;;  %v202_v1 = vld [vmem:[%s13887_s1 + $0x530] sm:$0xff]  ;;  %v8877_v8 = vcombine.low %v474_v52, %v482_v56 }
 0x328   :  { %v210_v3 = vld [vmem:[%s13887_s1 + $0x570] sm:$0xff] }
 0x329   :  { %7265 = vmatpush2.bf16.msra.mxu0 %v8685_v12  ;;  %7306 = vmatpush2.bf16.msra.mxu1 %v8941_v13  ;;  %v458_v4 = vld [vmem:[%s13887_s1 + $0xd30] sm:$0xff]  ;;  %v8606_v9 = vcombine.high %v202_v1, %v210_v3 }
 0x32a   :  { %7266 = vmatprep.subr.bf16.mxu0 %v8670_v15  ;;  %7307 = vmatprep.subr.bf16.mxu1 %v8926_v17  ;;  %v466_v6 = vld [vmem:[%s13887_s1 + $0xd70] sm:$0xff]  ;;  %v8605_v17 = vcombine.low %v202_v1, %v210_v3 }
 0x32b   :  { %v8862_v7 = vcombine.high %v458_v4, %v466_v6  ;;  %v186_v11 = vld [vmem:[%s13887_s1 + $0x4b0] sm:$0xff]  ;;  %v8861_v21 = vcombine.low %v458_v4, %v466_v6 }
 0x32c   :  { %v194_v12 = vld [vmem:[%s13887_s1 + $0x4f0] sm:$0xff] }
 0x32d   :  { %7267 = vmatpush2.bf16.msra.mxu0 %v8669_v10  ;;  %7308 = vmatpush2.bf16.msra.mxu1 %v8925_v18  ;;  %v442_v13 = vld [vmem:[%s13887_s1 + $0xcb0] sm:$0xff]  ;;  %v8590_v22 = vcombine.high %v186_v11, %v194_v12 }
 0x32e   :  { %7268 = vmatprep.subr.bf16.mxu0 %v8654_v24  ;;  %7309 = vmatprep.subr.bf16.mxu1 %v8910_v27  ;;  %v450_v15 = vld [vmem:[%s13887_s1 + $0xcf0] sm:$0xff]  ;;  %v8589_v27 = vcombine.low %v186_v11, %v194_v12 }
 0x32f   :  { %v8846_v5 = vcombine.high %v442_v13, %v450_v15  ;;  %v170_v23 = vld [vmem:[%s13887_s1 + $0x430] sm:$0xff]  ;;  %v8845_v30 = vcombine.low %v442_v13, %v450_v15 }
 0x330   :  { %v178_v10 = vld [vmem:[%s13887_s1 + $0x470] sm:$0xff] }
 0x331   :  { %7269 = vmatpush2.bf16.msra.mxu0 %v8653_v38  ;;  %7310 = vmatpush2.bf16.msra.mxu1 %v8909_v42  ;;  %v426_v18 = vld [vmem:[%s13887_s1 + $0xc30] sm:$0xff]  ;;  %v8574_v32 = vcombine.high %v170_v23, %v178_v10 }
 0x332   :  { %7270 = vmatprep.subr.bf16.mxu0 %v8638_v43  ;;  %7311 = vmatprep.subr.bf16.mxu1 %v8894_v44  ;;  %v434_v24 = vld [vmem:[%s13887_s1 + $0xc70] sm:$0xff]  ;;  %v8573_v44 = vcombine.low %v170_v23, %v178_v10 }
 0x333   :  { %v8830_v33 = vcombine.high %v426_v18, %v434_v24  ;;  %v666_v35 = vld [vmem:[%s13887_s1 + $0x13b0] sm:$0xff]  ;;  %v8829_v46 = vcombine.low %v426_v18, %v434_v24 }
 0x334   :  { %v674_v38 = vld [vmem:[%s13887_s1 + $0x13f0] sm:$0xff] }
 0x335   :  { %7271 = vmatpush2.bf16.msra.mxu0 %v8637_v26  ;;  %7312 = vmatpush2.bf16.msra.mxu1 %v8893_v57  ;;  %v922_v42 = vld [vmem:[%s13887_s1 + $0x1bb0] sm:$0xff]  ;;  %v9070_v48 = vcombine.high %v666_v35, %v674_v38 }
 0x336   :  { %7272 = vmatprep.subr.bf16.mxu0 %v8622_v63  ;;  %7313 = vmatprep.subr.bf16.mxu1 %v8878_v40  ;;  %v930_v43 = vld [vmem:[%s13887_s1 + $0x1bf0] sm:$0xff]  ;;  %v9069_v40 = vcombine.low %v666_v35, %v674_v38 }
 0x337   :  { %v9326_v52 = vcombine.high %v922_v42, %v930_v43  ;;  %v650_v56 = vld [vmem:[%s13887_s1 + $0x1330] sm:$0xff]  ;;  %v9325_v1 = vcombine.low %v922_v42, %v930_v43 }
 0x338   :  { %v658_v26 = vld [vmem:[%s13887_s1 + $0x1370] sm:$0xff] }
 0x339   :  { %7273 = vmatpush2.bf16.msra.mxu0 %v8621_v37  ;;  %7314 = vmatpush2.bf16.msra.mxu1 %v8877_v8  ;;  %v906_v57 = vld [vmem:[%s13887_s1 + $0x1b30] sm:$0xff]  ;;  %v9054_v3 = vcombine.high %v650_v56, %v658_v26  ;;  %v9053_v13 = vcombine.low %v650_v56, %v658_v26 }
 0x33a   :  { %7274 = vmatprep.subr.bf16.mxu0 %v8606_v9  ;;  %7315 = vmatprep.subr.bf16.mxu1 %v8862_v7  ;;  %v914_v63 = vld [vmem:[%s13887_s1 + $0x1b70] sm:$0xff] }
 0x33b   :  { %v9310_v4 = vcombine.high %v906_v57, %v914_v63  ;;  %v634_v6 = vld [vmem:[%s13887_s1 + $0x12b0] sm:$0xff] }
 0x33c   :  { %v642_v37 = vld [vmem:[%s13887_s1 + $0x12f0] sm:$0xff] }
 0x33d   :  { %7275 = vmatpush2.bf16.msra.mxu0 %v8605_v17  ;;  %7316 = vmatpush2.bf16.msra.mxu1 %v8861_v21  ;;  %v890_v9 = vld [vmem:[%s13887_s1 + $0x1ab0] sm:$0xff]  ;;  %v9309_v17 = vcombine.low %v906_v57, %v914_v63  ;;  %v9038_v21 = vcombine.high %v634_v6, %v642_v37 }
 0x33e   :  { %7276 = vmatprep.subr.bf16.mxu0 %v8590_v22  ;;  %7317 = vmatprep.subr.bf16.mxu1 %v8846_v5  ;;  %v898_v7 = vld [vmem:[%s13887_s1 + $0x1af0] sm:$0xff] }
 0x33f   :  { %v9294_v10 = vcombine.high %v890_v9, %v898_v7  ;;  %v626_v18 = vld [vmem:[%s13887_s1 + $0x1270] sm:$0xff]  ;;  %v9293_v38 = vcombine.low %v890_v9, %v898_v7 }
 0x340   :  { %v866_v56 = vld [vmem:[%s13887_s1 + $0x19f0] sm:$0xff] }
 0x341   :  { %7277 = vmatpush2.bf16.msra.mxu0 %v8589_v27  ;;  %7318 = vmatpush2.bf16.msra.mxu1 %v8845_v30  ;;  %v874_v27 = vld [vmem:[%s13887_s1 + $0x1a30] sm:$0xff] }
 0x342   :  { %7278 = vmatprep.subr.bf16.mxu0 %v8574_v32  ;;  %7319 = vmatprep.subr.bf16.mxu1 %v8830_v33  ;;  %v9037_v33 = vcombine.low %v634_v6, %v642_v37  ;;  %v850_v6 = vld [vmem:[%s13887_s1 + $0x1970] sm:$0xff] }
 0x345   :  { %7279 = vmatpush2.bf16.msra.mxu0 %v8573_v44  ;;  %7320 = vmatpush2.bf16.msra.mxu1 %v8829_v46  ;;  %v602_v46 = vld [vmem:[%s13887_s1 + $0x11b0] sm:$0xff] }
 0x346   :  { %7330 = vmatprep.subr.bf16.mxu0 %v9070_v48  ;;  %7371 = vmatprep.subr.bf16.mxu1 %v9326_v52  ;;  %v610_v48 = vld [vmem:[%s13887_s1 + $0x11f0] sm:$0xff] }
 0x347   :  { %v858_v52 = vld [vmem:[%s13887_s1 + $0x19b0] sm:$0xff]  ;;  %v9006_v63 = vcombine.high %v602_v46, %v610_v48  ;;  %v9005_v37 = vcombine.low %v602_v46, %v610_v48 }
 0x348   :  { %v7036_v8 = vpop.f32.mrf.mxu0  ;;  %7281 = vmatmul.mubr.bf16.vlgmr.msra.gmra.mxu0 %v10001_v16  ;;  %v7077_v12 = vpop.f32.mrf.mxu1  ;;  %7322 = vmatmul.mubr.bf16.vlgmr.msra.gmra.mxu1 %v10012_v20 }
 0x349   :  { %v7037_v11 = vadd.f32 %v7036_v8, %v12297_v47  ;;  %7331 = vmatpush1.bf16.msra.mxu0 %v9069_v40  ;;  %7372 = vmatpush1.bf16.msra.mxu1 %v9325_v1  ;;  %v618_v47 = vld [vmem:[%s13887_s1 + $0x1230] sm:$0xff]  ;;  %v9262_v40 = vcombine.high %v858_v52, %v866_v56  ;;  %v9261_v8 = vcombine.low %v858_v52, %v866_v56 }
 0x34a   :  { %v7038_v15 = vpop.f32.mrf.mxu0  ;;  %7332 = vmatprep.subr.bf16.mxu0 %v9054_v3  ;;  %v7079_v23 = vpop.f32.mrf.mxu1  ;;  %7373 = vmatprep.subr.bf16.mxu1 %v9310_v4  ;;  %v9022_v42 = vcombine.high %v618_v47, %v626_v18  ;;  %v9021_v26 = vcombine.low %v618_v47, %v626_v18  ;;  %v586_v1 = vld [vmem:[%s13887_s1 + $0x1130] sm:$0xff] }
 0x34b   :  { %v12498_v22 = vadd.f32 %v7077_v12, %v7037_v11  ;;  %v7039_v5 = vadd.f32 %v7038_v15, %v12313_v55  ;;  %7362 = vmatprep.mubr.bf16.mxu0 %v10023_v28  ;;  %v882_v55 = vld [vmem:[%s13887_s1 + $0x1a70] sm:$0xff]  ;;  %7403 = vmatprep.mubr.bf16.mxu1 %v10032_v31 }
 0x34c   :  { %v7040_v24 = vpop.f32.mrf.mxu0  ;;  %v7081_v32 = vpop.f32.mrf.mxu1  ;;  %v9278_v44 = vcombine.high %v874_v27, %v882_v55  ;;  %v9277_v57 = vcombine.low %v874_v27, %v882_v55  ;;  %v594_v3 = vld [vmem:[%s13887_s1 + $0x1170] sm:$0xff] }
 0x34d   :  { %v12515_v30 = vadd.f32 %v7079_v23, %v7039_v5  ;;  %7333 = vmatpush1.bf16.msra.mxu0 %v9053_v13  ;;  %7374 = vmatpush1.bf16.msra.mxu1 %v9309_v17  ;;  %v842_v4 = vld [vmem:[%s13887_s1 + $0x1930] sm:$0xff]  ;;  %v8990_v9 = vcombine.high %v586_v1, %v594_v3  ;;  %v8989_v17 = vcombine.low %v586_v1, %v594_v3 }
 0x34e   :  { %v7041_v35 = vpop.f32.mrf.mxu0  ;;  %7334 = vmatprep.subr.bf16.mxu0 %v9038_v21  ;;  %v7082_v43 = vpop.f32.mrf.mxu1  ;;  %7375 = vmatprep.subr.bf16.mxu1 %v9294_v10  ;;  %v9246_v7 = vcombine.high %v842_v4, %v850_v6  ;;  %v570_v11 = vld [vmem:[%s13887_s1 + $0x10b0] sm:$0xff]  ;;  %v9245_v21 = vcombine.low %v842_v4, %v850_v6 }
 0x34f   :  { %v578_v12 = vld [vmem:[%s13887_s1 + $0x10f0] sm:$0xff] }
 0x350   :  { %v826_v13 = vld [vmem:[%s13887_s1 + $0x18b0] sm:$0xff]  ;;  %v8974_v5 = vcombine.high %v570_v11, %v578_v12  ;;  %v8973_v27 = vcombine.low %v570_v11, %v578_v12 }
 0x351   :  { %7335 = vmatpush1.bf16.msra.mxu0 %v9037_v33  ;;  %7376 = vmatpush1.bf16.msra.mxu1 %v9293_v38  ;;  %v834_v15 = vld [vmem:[%s13887_s1 + $0x18f0] sm:$0xff] }
 0x352   :  { %7336 = vmatprep.subr.bf16.mxu0 %v9022_v42  ;;  %7377 = vmatprep.subr.bf16.mxu1 %v9278_v44  ;;  %v9230_v23 = vcombine.high %v826_v13, %v834_v15  ;;  %v554_v10 = vld [vmem:[%s13887_s1 + $0x1030] sm:$0xff]  ;;  %v9229_v55 = vcombine.low %v826_v13, %v834_v15 }
 0x353   :  { %v562_v47 = vld [vmem:[%s13887_s1 + $0x1070] sm:$0xff] }
 0x354   :  { %v810_v18 = vld [vmem:[%s13887_s1 + $0x1830] sm:$0xff]  ;;  %v8958_v32 = vcombine.high %v554_v10, %v562_v47  ;;  %v8957_v44 = vcombine.low %v554_v10, %v562_v47 }
 0x355   :  { %7337 = vmatpush1.bf16.msra.mxu0 %v9021_v26  ;;  %7378 = vmatpush1.bf16.msra.mxu1 %v9277_v57  ;;  %v818_v24 = vld [vmem:[%s13887_s1 + $0x1870] sm:$0xff] }
 0x356   :  { %7338 = vmatprep.subr.bf16.mxu0 %v9006_v63  ;;  %7379 = vmatprep.subr.bf16.mxu1 %v9262_v40  ;;  %v9214_v33 = vcombine.high %v810_v18, %v818_v24  ;;  %v794_v35 = vld [vmem:[%s13887_s1 + $0x17b0] sm:$0xff]  ;;  %v9213_v46 = vcombine.low %v810_v18, %v818_v24 }
 0x357   :  { %v802_v38 = vld [vmem:[%s13887_s1 + $0x17f0] sm:$0xff] }
 0x358   :  { %v1050_v42 = vld [vmem:[%s13887_s1 + $0x1fb0] sm:$0xff]  ;;  %v9198_v48 = vcombine.high %v794_v35, %v802_v38  ;;  %v9197_v40 = vcombine.low %v794_v35, %v802_v38 }
 0x359   :  { %7339 = vmatpush1.bf16.msra.mxu0 %v9005_v37  ;;  %7380 = vmatpush1.bf16.msra.mxu1 %v9261_v8  ;;  %v1058_v43 = vld [vmem:[%s13887_s1 + $0x1ff0] sm:$0xff] }
 0x35a   :  { %7340 = vmatprep.subr.bf16.mxu0 %v8990_v9  ;;  %7381 = vmatprep.subr.bf16.mxu1 %v9246_v7  ;;  %v9454_v52 = vcombine.high %v1050_v42, %v1058_v43  ;;  %v778_v56 = vld [vmem:[%s13887_s1 + $0x1730] sm:$0xff]  ;;  %v9453_v1 = vcombine.low %v1050_v42, %v1058_v43 }
 0x35b   :  { %v786_v26 = vld [vmem:[%s13887_s1 + $0x1770] sm:$0xff] }
 0x35c   :  { %v1034_v57 = vld [vmem:[%s13887_s1 + $0x1f30] sm:$0xff]  ;;  %v9182_v3 = vcombine.high %v778_v56, %v786_v26  ;;  %v9181_v7 = vcombine.low %v778_v56, %v786_v26 }
 0x35d   :  { %7341 = vmatpush1.bf16.msra.mxu0 %v8989_v17  ;;  %7382 = vmatpush1.bf16.msra.mxu1 %v9245_v21  ;;  %v1042_v63 = vld [vmem:[%s13887_s1 + $0x1f70] sm:$0xff] }
 0x35e   :  { %7342 = vmatprep.subr.bf16.mxu0 %v8974_v5  ;;  %7383 = vmatprep.subr.bf16.mxu1 %v9230_v23  ;;  %v9438_v4 = vcombine.high %v1034_v57, %v1042_v63  ;;  %v762_v6 = vld [vmem:[%s13887_s1 + $0x16b0] sm:$0xff]  ;;  %v9437_v11 = vcombine.low %v1034_v57, %v1042_v63 }
 0x35f   :  { %v770_v37 = vld [vmem:[%s13887_s1 + $0x16f0] sm:$0xff] }
 0x360   :  { %v1018_v8 = vld [vmem:[%s13887_s1 + $0x1eb0] sm:$0xff]  ;;  %v9166_v12 = vcombine.high %v762_v6, %v770_v37  ;;  %v9165_v23 = vcombine.low %v762_v6, %v770_v37 }
 0x361   :  { %7343 = vmatpush1.bf16.msra.mxu0 %v8973_v27  ;;  %7384 = vmatpush1.bf16.msra.mxu1 %v9229_v55  ;;  %v1026_v9 = vld [vmem:[%s13887_s1 + $0x1ef0] sm:$0xff] }
 0x362   :  { %7344 = vmatprep.subr.bf16.mxu0 %v8958_v32  ;;  %7385 = vmatprep.subr.bf16.mxu1 %v9214_v33  ;;  %v9422_v13 = vcombine.high %v1018_v8, %v1026_v9  ;;  %v746_v15 = vld [vmem:[%s13887_s1 + $0x1630] sm:$0xff]  ;;  %v9421_v10 = vcombine.low %v1018_v8, %v1026_v9 }
 0x363   :  { %v754_v17 = vld [vmem:[%s13887_s1 + $0x1670] sm:$0xff] }
 0x364   :  { %v1002_v21 = vld [vmem:[%s13887_s1 + $0x1e30] sm:$0xff]  ;;  %v9150_v47 = vcombine.high %v746_v15, %v754_v17  ;;  %v9149_v33 = vcombine.low %v746_v15, %v754_v17 }
 0x365   :  { %7345 = vmatpush1.bf16.msra.mxu0 %v8957_v44  ;;  %7386 = vmatpush1.bf16.msra.mxu1 %v9213_v46  ;;  %v1010_v5 = vld [vmem:[%s13887_s1 + $0x1e70] sm:$0xff] }
 0x366   :  { %7346 = vmatprep.subr.bf16.mxu0 %v9198_v48  ;;  %7387 = vmatprep.subr.bf16.mxu1 %v9454_v52  ;;  %v9406_v18 = vcombine.high %v1002_v21, %v1010_v5  ;;  %v730_v24 = vld [vmem:[%s13887_s1 + $0x15b0] sm:$0xff]  ;;  %v9405_v35 = vcombine.low %v1002_v21, %v1010_v5  ;;  %v155_v5 = vld [vmem:[%s13887_s1 + $0x3b8] sm:$0xff] }
 0x367   :  { %v738_v27 = vld [vmem:[%s13887_s1 + $0x15f0] sm:$0xff] }
 0x368   :  { %v986_v55 = vld [vmem:[%s13887_s1 + $0x1db0] sm:$0xff]  ;;  %v9134_v38 = vcombine.high %v730_v24, %v738_v27  ;;  %v9133_v52 = vcombine.low %v730_v24, %v738_v27 }
 0x369   :  { %7347 = vmatpush2.bf16.msra.mxu0 %v9197_v40  ;;  %7388 = vmatpush2.bf16.msra.mxu1 %v9453_v1  ;;  %v994_v32 = vld [vmem:[%s13887_s1 + $0x1df0] sm:$0xff] }
 0x36a   :  { %7348 = vmatprep.subr.bf16.mxu0 %v9182_v3  ;;  %7389 = vmatprep.subr.bf16.mxu1 %v9438_v4  ;;  %v9390_v42 = vcombine.high %v986_v55, %v994_v32  ;;  %v714_v43 = vld [vmem:[%s13887_s1 + $0x1530] sm:$0xff]  ;;  %v9389_v56 = vcombine.low %v986_v55, %v994_v32  ;;  %v139_v32 = vld [vmem:[%s13887_s1 + $0x338] sm:$0xff] }
 0x36b   :  { %v722_v44 = vld [vmem:[%s13887_s1 + $0x1570] sm:$0xff] }
 0x36c   :  { %v970_v46 = vld [vmem:[%s13887_s1 + $0x1d30] sm:$0xff]  ;;  %v9118_v26 = vcombine.high %v714_v43, %v722_v44  ;;  %v9117_v4 = vcombine.low %v714_v43, %v722_v44 }
 0x36d   :  { %7349 = vmatpush2.bf16.msra.mxu0 %v9181_v7  ;;  %7390 = vmatpush2.bf16.msra.mxu1 %v9437_v11  ;;  %v978_v48 = vld [vmem:[%s13887_s1 + $0x1d70] sm:$0xff] }
 0x36e   :  { %7350 = vmatprep.subr.bf16.mxu0 %v9166_v12  ;;  %7391 = vmatprep.subr.bf16.mxu1 %v9422_v13  ;;  %v9374_v57 = vcombine.high %v970_v46, %v978_v48  ;;  %v698_v63 = vld [vmem:[%s13887_s1 + $0x14b0] sm:$0xff]  ;;  %v9373_v6 = vcombine.low %v970_v46, %v978_v48  ;;  %v1111_v48 = vrot.slane %v12263_v14, %v1078_v54  ;;  %v387_v54 = vld [vmem:[%s13887_s1 + $0xaf8] sm:$0xff] }
 0x36f   :  { %v706_v40 = vld [vmem:[%s13887_s1 + $0x14f0] sm:$0xff] }
 0x370   :  { %v954_v1 = vld [vmem:[%s13887_s1 + $0x1cb0] sm:$0xff]  ;;  %v9102_v37 = vcombine.high %v698_v63, %v706_v40  ;;  %v9101_v13 = vcombine.low %v698_v63, %v706_v40 }
 0x371   :  { %7351 = vmatpush2.bf16.msra.mxu0 %v9165_v23  ;;  %7392 = vmatpush2.bf16.msra.mxu1 %v9421_v10  ;;  %v962_v3 = vld [vmem:[%s13887_s1 + $0x1cf0] sm:$0xff]  ;;  %v163_v23 = vld [vmem:[%s13887_s1 + $0x3f8] sm:$0xff] }
 0x372   :  { %7352 = vmatprep.subr.bf16.mxu0 %v9150_v47  ;;  %7393 = vmatprep.subr.bf16.mxu1 %v9406_v18  ;;  %v9358_v8 = vcombine.high %v954_v1, %v962_v3  ;;  %v682_v9 = vld [vmem:[%s13887_s1 + $0x1430] sm:$0xff]  ;;  %v9357_v15 = vcombine.low %v954_v1, %v962_v3  ;;  %v411_v10 = vld [vmem:[%s13887_s1 + $0xbb8] sm:$0xff]  ;;  %v8560_v27 = vcombine.high %v155_v5, %v163_v23 }
 0x373   :  { %v690_v7 = vld [vmem:[%s13887_s1 + $0x1470] sm:$0xff]  ;;  %v419_v47 = vld [vmem:[%s13887_s1 + $0xbf8] sm:$0xff]  ;;  %v8559_v43 = vcombine.low %v155_v5, %v163_v23 }
 0x374   :  { %v938_v11 = vld [vmem:[%s13887_s1 + $0x1c30] sm:$0xff]  ;;  %v9086_v17 = vcombine.high %v682_v9, %v690_v7  ;;  %v9085_v18 = vcombine.low %v682_v9, %v690_v7  ;;  %v8816_v55 = vcombine.high %v411_v10, %v419_v47  ;;  %v8815_v44 = vcombine.low %v411_v10, %v419_v47  ;;  %v107_v7 = vld [vmem:[%s13887_s1 + $0x238] sm:$0xff] }
 0x375   :  { %7353 = vmatpush2.bf16.msra.mxu0 %v9149_v33  ;;  %7394 = vmatpush2.bf16.msra.mxu1 %v9405_v35  ;;  %v946_v12 = vld [vmem:[%s13887_s1 + $0x1c70] sm:$0xff]  ;;  %v147_v33 = vld [vmem:[%s13887_s1 + $0x378] sm:$0xff] }
 0x376   :  { %7354 = vmatprep.subr.bf16.mxu0 %v9134_v38  ;;  %7395 = vmatprep.subr.bf16.mxu1 %v9390_v42  ;;  %v9342_v21 = vcombine.high %v938_v11, %v946_v12  ;;  %v9341_v24 = vcombine.low %v938_v11, %v946_v12  ;;  %v395_v35 = vld [vmem:[%s13887_s1 + $0xb38] sm:$0xff]  ;;  %v1107_v42 = vrot.slane %v12263_v14, %v1074_v50 }
 0x377   :  { %v403_v38 = vld [vmem:[%s13887_s1 + $0xb78] sm:$0xff]  ;;  %v8544_v46 = vcombine.high %v139_v32, %v147_v33  ;;  %v8543_v40 = vcombine.low %v139_v32, %v147_v33 }
 0x378   :  { %v8799_v3 = vcombine.low %v395_v35, %v403_v38  ;;  %v115_v11 = vld [vmem:[%s13887_s1 + $0x278] sm:$0xff] }
 0x379   :  { %7355 = vmatpush2.bf16.msra.mxu0 %v9133_v52  ;;  %7396 = vmatpush2.bf16.msra.mxu1 %v9389_v56  ;;  %v8800_v52 = vcombine.high %v395_v35, %v403_v38  ;;  %v123_v56 = vld [vmem:[%s13887_s1 + $0x2b8] sm:$0xff]  ;;  %v8512_v10 = vcombine.high %v107_v7, %v115_v11  ;;  %v8511_v32 = vcombine.low %v107_v7, %v115_v11 }
 0x37a   :  { %7356 = vmatprep.subr.bf16.mxu0 %v9118_v26  ;;  %7397 = vmatprep.subr.bf16.mxu1 %v9374_v57  ;;  %v131_v26 = vld [vmem:[%s13887_s1 + $0x2f8] sm:$0xff] }
 0x37b   :  { %v379_v57 = vld [vmem:[%s13887_s1 + $0xab8] sm:$0xff]  ;;  %v8527_v5 = vcombine.low %v123_v56, %v131_v26 }
 0x37c   :  { %v8784_v9 = vcombine.high %v379_v57, %v387_v54 }
 0x37d   :  { %7357 = vmatpush2.bf16.msra.mxu0 %v9117_v4  ;;  %7398 = vmatpush2.bf16.msra.mxu1 %v9373_v6  ;;  %v8528_v4 = vcombine.high %v123_v56, %v131_v26 }
 0x37e   :  { %7358 = vmatprep.subr.bf16.mxu0 %v9102_v37  ;;  %7399 = vmatprep.subr.bf16.mxu1 %v9358_v8 }
 0x381   :  { %7359 = vmatpush2.bf16.msra.mxu0 %v9101_v13  ;;  %7400 = vmatpush2.bf16.msra.mxu1 %v9357_v15  ;;  %v363_v13 = vld [vmem:[%s13887_s1 + $0xa38] sm:$0xff] }
 0x382   :  { %7360 = vmatprep.subr.bf16.mxu0 %v9086_v17  ;;  %7401 = vmatprep.subr.bf16.mxu1 %v9342_v21  ;;  %v371_v15 = vld [vmem:[%s13887_s1 + $0xa78] sm:$0xff] }
 0x383   :  { %v8767_v33 = vcombine.low %v363_v13, %v371_v15 }
 0x385   :  { %7361 = vmatpush2.bf16.msra.mxu0 %v9085_v18  ;;  %7402 = vmatpush2.bf16.msra.mxu1 %v9341_v24  ;;  %v8768_v18 = vcombine.high %v363_v13, %v371_v15  ;;  %v91_v24 = vld [vmem:[%s13887_s1 + $0x1b8] sm:$0xff] }
 0x386   :  { %7412 = vmatprep.subr.bf16.mxu0 %v8560_v27  ;;  %7453 = vmatprep.subr.bf16.mxu1 %v8816_v55  ;;  %v347_v27 = vld [vmem:[%s13887_s1 + $0x9b8] sm:$0xff] }
 0x387   :  { %v355_v55 = vld [vmem:[%s13887_s1 + $0x9f8] sm:$0xff] }
 0x388   :  { %v7118_v50 = vpop.f32.mrf.mxu0  ;;  %7363 = vmatmul.mubr.bf16.vlgmr.msra.gmra.mxu0 %v10217_v36  ;;  %v7159_v63 = vpop.f32.mrf.mxu1  ;;  %7404 = vmatmul.mubr.bf16.vlgmr.msra.gmra.mxu1 %v10225_v39  ;;  %v8752_v38 = vcombine.high %v347_v27, %v355_v55  ;;  %v283_v15 = vld [vmem:[%s13887_s1 + $0x7b8] sm:$0xff] }
 0x389   :  { %v7119_v14 = vadd.f32 %v7118_v50, %v1107_v42  ;;  %7413 = vmatpush1.bf16.msra.mxu0 %v8559_v43  ;;  %7454 = vmatpush1.bf16.msra.mxu1 %v8815_v44  ;;  %v75_v42 = vld [vmem:[%s13887_s1 + $0x138] sm:$0xff] }
 0x38a   :  { %v7120_v1 = vpop.f32.mrf.mxu0  ;;  %7414 = vmatprep.subr.bf16.mxu0 %v8544_v46  ;;  %v7161_v8 = vpop.f32.mrf.mxu1  ;;  %7455 = vmatprep.subr.bf16.mxu1 %v8800_v52  ;;  %v83_v43 = vld [vmem:[%s13887_s1 + $0x178] sm:$0xff]  ;;  %v8751_v52 = vcombine.low %v347_v27, %v355_v55 }
 0x38b   :  { %v12705_v6 = vadd.f32 %v7159_v63, %v7119_v14  ;;  %v7121_v37 = vadd.f32 %v7120_v1, %v1111_v48  ;;  %7444 = vmatprep.mubr.bf16.mxu0 %v9869_v58  ;;  %7485 = vmatprep.mubr.bf16.mxu1 %v9871_v59  ;;  %v8783_v58 = vcombine.low %v379_v57, %v387_v54  ;;  %v99_v59 = vld [vmem:[%s13887_s1 + $0x1f8] sm:$0xff] }
 0x38c   :  { %v7122_v12 = vpop.f32.mrf.mxu0  ;;  %v7163_v21 = vpop.f32.mrf.mxu1  ;;  %v8496_v35 = vcombine.high %v91_v24, %v99_v59  ;;  %v331_v44 = vld [vmem:[%s13887_s1 + $0x938] sm:$0xff]  ;;  %v8495_v48 = vcombine.low %v91_v24, %v99_v59  ;;  %v8480_v56 = vcombine.high %v75_v42, %v83_v43  ;;  %v8479_v63 = vcombine.low %v75_v42, %v83_v43 }
 0x38d   :  { %v12721_v17 = vadd.f32 %v7161_v8, %v7121_v37  ;;  %7415 = vmatpush1.bf16.msra.mxu0 %v8543_v40  ;;  %7456 = vmatpush1.bf16.msra.mxu1 %v8799_v3  ;;  %v339_v46 = vld [vmem:[%s13887_s1 + $0x978] sm:$0xff] }
 0x38e   :  { %v7123_v23 = vpop.f32.mrf.mxu0  ;;  %7416 = vmatprep.subr.bf16.mxu0 %v8528_v4  ;;  %v7164_v47 = vpop.f32.mrf.mxu1  ;;  %7457 = vmatprep.subr.bf16.mxu1 %v8784_v9  ;;  %v8736_v26 = vcombine.high %v331_v44, %v339_v46  ;;  %v59_v50 = vld [vmem:[%s13887_s1 + $0xb8] sm:$0xff]  ;;  %v8735_v40 = vcombine.low %v331_v44, %v339_v46 }
 0x38f   :  { %v67_v57 = vld [vmem:[%s13887_s1 + $0xf8] sm:$0xff] }
 0x390   :  { %v315_v54 = vld [vmem:[%s13887_s1 + $0x8b8] sm:$0xff]  ;;  %v8464_v1 = vcombine.high %v59_v50, %v67_v57  ;;  %v8463_v7 = vcombine.low %v59_v50, %v67_v57 }
 0x391   :  { %7417 = vmatpush1.bf16.msra.mxu0 %v8527_v5  ;;  %7458 = vmatpush1.bf16.msra.mxu1 %v8783_v58  ;;  %v323_v14 = vld [vmem:[%s13887_s1 + $0x8f8] sm:$0xff] }
 0x392   :  { %7418 = vmatprep.subr.bf16.mxu0 %v8512_v10  ;;  %7459 = vmatprep.subr.bf16.mxu1 %v8768_v18  ;;  %v8720_v3 = vcombine.high %v315_v54, %v323_v14  ;;  %v43_v4 = vld [vmem:[%s13887_s1 + $0x38] sm:$0xff]  ;;  %v8719_v11 = vcombine.low %v315_v54, %v323_v14 }
 0x393   :  { %v51_v37 = vld [vmem:[%s13887_s1 + $0x78] sm:$0xff] }
 0x394   :  { %v299_v8 = vld [vmem:[%s13887_s1 + $0x838] sm:$0xff]  ;;  %v8448_v12 = vcombine.high %v43_v4, %v51_v37  ;;  %v8447_v58 = vcombine.low %v43_v4, %v51_v37 }
 0x395   :  { %7419 = vmatpush1.bf16.msra.mxu0 %v8511_v32  ;;  %7460 = vmatpush1.bf16.msra.mxu1 %v8767_v33  ;;  %v307_v9 = vld [vmem:[%s13887_s1 + $0x878] sm:$0xff] }
 0x396   :  { %7420 = vmatprep.subr.bf16.mxu0 %v8496_v35  ;;  %7461 = vmatprep.subr.bf16.mxu1 %v8752_v38  ;;  %v8704_v13 = vcombine.high %v299_v8, %v307_v9  ;;  %v291_v21 = vld [vmem:[%s13887_s1 + $0x7f8] sm:$0xff]  ;;  %v8703_v10 = vcombine.low %v299_v8, %v307_v9 }
 0x397   :  { %v539_v5 = vld [vmem:[%s13887_s1 + $0xfb8] sm:$0xff]  ;;  %v8688_v47 = vcombine.high %v283_v15, %v291_v21  ;;  %v8687_v32 = vcombine.low %v283_v15, %v291_v21 }
 0x398   :  { %v547_v23 = vld [vmem:[%s13887_s1 + $0xff8] sm:$0xff] }
 0x399   :  { %7421 = vmatpush1.bf16.msra.mxu0 %v8495_v48  ;;  %7462 = vmatpush1.bf16.msra.mxu1 %v8751_v52  ;;  %v8944_v18 = vcombine.high %v539_v5, %v547_v23  ;;  %v267_v24 = vld [vmem:[%s13887_s1 + $0x738] sm:$0xff]  ;;  %v8943_v33 = vcombine.low %v539_v5, %v547_v23 }
 0x39a   :  { %7422 = vmatprep.subr.bf16.mxu0 %v8480_v56  ;;  %7463 = vmatprep.subr.bf16.mxu1 %v8736_v26  ;;  %v275_v59 = vld [vmem:[%s13887_s1 + $0x778] sm:$0xff] }
 0x39b   :  { %v523_v27 = vld [vmem:[%s13887_s1 + $0xf38] sm:$0xff]  ;;  %v8672_v35 = vcombine.high %v267_v24, %v275_v59  ;;  %v8671_v48 = vcombine.low %v267_v24, %v275_v59 }
 0x39c   :  { %v531_v55 = vld [vmem:[%s13887_s1 + $0xf78] sm:$0xff] }
 0x39d   :  { %7423 = vmatpush1.bf16.msra.mxu0 %v8479_v63  ;;  %7464 = vmatpush1.bf16.msra.mxu1 %v8735_v40  ;;  %v8928_v38 = vcombine.high %v523_v27, %v531_v55  ;;  %v251_v42 = vld [vmem:[%s13887_s1 + $0x6b8] sm:$0xff]  ;;  %v8927_v52 = vcombine.low %v523_v27, %v531_v55 }
 0x39e   :  { %7424 = vmatprep.subr.bf16.mxu0 %v8464_v1  ;;  %7465 = vmatprep.subr.bf16.mxu1 %v8720_v3  ;;  %v259_v43 = vld [vmem:[%s13887_s1 + $0x6f8] sm:$0xff] }
 0x39f   :  { %v507_v44 = vld [vmem:[%s13887_s1 + $0xeb8] sm:$0xff]  ;;  %v8656_v56 = vcombine.high %v251_v42, %v259_v43  ;;  %v8655_v63 = vcombine.low %v251_v42, %v259_v43 }
 0x3a0   :  { %v515_v46 = vld [vmem:[%s13887_s1 + $0xef8] sm:$0xff] }
 0x3a1   :  { %7425 = vmatpush1.bf16.msra.mxu0 %v8463_v7  ;;  %7466 = vmatpush1.bf16.msra.mxu1 %v8719_v11  ;;  %v8912_v26 = vcombine.high %v507_v44, %v515_v46  ;;  %v235_v50 = vld [vmem:[%s13887_s1 + $0x638] sm:$0xff]  ;;  %v8911_v40 = vcombine.low %v507_v44, %v515_v46 }
 0x3a2   :  { %7426 = vmatprep.subr.bf16.mxu0 %v8448_v12  ;;  %7467 = vmatprep.subr.bf16.mxu1 %v8704_v13  ;;  %v243_v57 = vld [vmem:[%s13887_s1 + $0x678] sm:$0xff] }
 0x3a3   :  { %v491_v54 = vld [vmem:[%s13887_s1 + $0xe38] sm:$0xff]  ;;  %v8640_v1 = vcombine.high %v235_v50, %v243_v57  ;;  %v8639_v7 = vcombine.low %v235_v50, %v243_v57 }
 0x3a4   :  { %v499_v14 = vld [vmem:[%s13887_s1 + $0xe78] sm:$0xff] }
 0x3a5   :  { %7427 = vmatpush1.bf16.msra.mxu0 %v8447_v58  ;;  %7468 = vmatpush1.bf16.msra.mxu1 %v8703_v10  ;;  %v8896_v3 = vcombine.high %v491_v54, %v499_v14  ;;  %v219_v4 = vld [vmem:[%s13887_s1 + $0x5b8] sm:$0xff]  ;;  %v8895_v11 = vcombine.low %v491_v54, %v499_v14 }
 0x3a6   :  { %7428 = vmatprep.subr.bf16.mxu0 %v8688_v47  ;;  %7469 = vmatprep.subr.bf16.mxu1 %v8944_v18  ;;  %v227_v37 = vld [vmem:[%s13887_s1 + $0x5f8] sm:$0xff] }
 0x3a7   :  { %v475_v8 = vld [vmem:[%s13887_s1 + $0xdb8] sm:$0xff]  ;;  %v8624_v12 = vcombine.high %v219_v4, %v227_v37  ;;  %v8623_v58 = vcombine.low %v219_v4, %v227_v37 }
 0x3a8   :  { %v483_v9 = vld [vmem:[%s13887_s1 + $0xdf8] sm:$0xff] }
 0x3a9   :  { %7429 = vmatpush2.bf16.msra.mxu0 %v8687_v32  ;;  %7470 = vmatpush2.bf16.msra.mxu1 %v8943_v33  ;;  %v8880_v13 = vcombine.high %v475_v8, %v483_v9  ;;  %v203_v15 = vld [vmem:[%s13887_s1 + $0x538] sm:$0xff]  ;;  %v8879_v10 = vcombine.low %v475_v8, %v483_v9 }
 0x3aa   :  { %7430 = vmatprep.subr.bf16.mxu0 %v8672_v35  ;;  %7471 = vmatprep.subr.bf16.mxu1 %v8928_v38  ;;  %v211_v21 = vld [vmem:[%s13887_s1 + $0x578] sm:$0xff] }
 0x3ab   :  { %v459_v5 = vld [vmem:[%s13887_s1 + $0xd38] sm:$0xff]  ;;  %v8608_v47 = vcombine.high %v203_v15, %v211_v21  ;;  %v8607_v32 = vcombine.low %v203_v15, %v211_v21 }
 0x3ac   :  { %v467_v23 = vld [vmem:[%s13887_s1 + $0xd78] sm:$0xff] }
 0x3ad   :  { %7431 = vmatpush2.bf16.msra.mxu0 %v8671_v48  ;;  %7472 = vmatpush2.bf16.msra.mxu1 %v8927_v52  ;;  %v8864_v18 = vcombine.high %v459_v5, %v467_v23  ;;  %v187_v24 = vld [vmem:[%s13887_s1 + $0x4b8] sm:$0xff]  ;;  %v8863_v33 = vcombine.low %v459_v5, %v467_v23 }
 0x3ae   :  { %7432 = vmatprep.subr.bf16.mxu0 %v8656_v56  ;;  %7473 = vmatprep.subr.bf16.mxu1 %v8912_v26  ;;  %v195_v59 = vld [vmem:[%s13887_s1 + $0x4f8] sm:$0xff] }
 0x3af   :  { %v443_v27 = vld [vmem:[%s13887_s1 + $0xcb8] sm:$0xff]  ;;  %v8592_v35 = vcombine.high %v187_v24, %v195_v59  ;;  %v8591_v48 = vcombine.low %v187_v24, %v195_v59 }
 0x3b0   :  { %v451_v55 = vld [vmem:[%s13887_s1 + $0xcf8] sm:$0xff] }
 0x3b1   :  { %7433 = vmatpush2.bf16.msra.mxu0 %v8655_v63  ;;  %7474 = vmatpush2.bf16.msra.mxu1 %v8911_v40  ;;  %v8848_v38 = vcombine.high %v443_v27, %v451_v55  ;;  %v171_v42 = vld [vmem:[%s13887_s1 + $0x438] sm:$0xff]  ;;  %v8847_v52 = vcombine.low %v443_v27, %v451_v55 }
 0x3b2   :  { %7434 = vmatprep.subr.bf16.mxu0 %v8640_v1  ;;  %7475 = vmatprep.subr.bf16.mxu1 %v8896_v3  ;;  %v179_v43 = vld [vmem:[%s13887_s1 + $0x478] sm:$0xff] }
 0x3b3   :  { %v427_v44 = vld [vmem:[%s13887_s1 + $0xc38] sm:$0xff]  ;;  %v8576_v56 = vcombine.high %v171_v42, %v179_v43  ;;  %v8575_v63 = vcombine.low %v171_v42, %v179_v43 }
 0x3b4   :  { %v435_v46 = vld [vmem:[%s13887_s1 + $0xc78] sm:$0xff] }
 0x3b5   :  { %7435 = vmatpush2.bf16.msra.mxu0 %v8639_v7  ;;  %7476 = vmatpush2.bf16.msra.mxu1 %v8895_v11  ;;  %v8832_v26 = vcombine.high %v427_v44, %v435_v46  ;;  %v667_v50 = vld [vmem:[%s13887_s1 + $0x13b8] sm:$0xff]  ;;  %v8831_v40 = vcombine.low %v427_v44, %v435_v46 }
 0x3b6   :  { %7436 = vmatprep.subr.bf16.mxu0 %v8624_v12  ;;  %7477 = vmatprep.subr.bf16.mxu1 %v8880_v13  ;;  %v675_v57 = vld [vmem:[%s13887_s1 + $0x13f8] sm:$0xff] }
 0x3b7   :  { %v923_v54 = vld [vmem:[%s13887_s1 + $0x1bb8] sm:$0xff]  ;;  %v9072_v1 = vcombine.high %v667_v50, %v675_v57  ;;  %v9071_v7 = vcombine.low %v667_v50, %v675_v57 }
 0x3b8   :  { %v931_v14 = vld [vmem:[%s13887_s1 + $0x1bf8] sm:$0xff] }
 0x3b9   :  { %7437 = vmatpush2.bf16.msra.mxu0 %v8623_v58  ;;  %7478 = vmatpush2.bf16.msra.mxu1 %v8879_v10  ;;  %v9328_v3 = vcombine.high %v923_v54, %v931_v14  ;;  %v651_v4 = vld [vmem:[%s13887_s1 + $0x1338] sm:$0xff]  ;;  %v9327_v11 = vcombine.low %v923_v54, %v931_v14 }
 0x3ba   :  { %7438 = vmatprep.subr.bf16.mxu0 %v8608_v47  ;;  %7479 = vmatprep.subr.bf16.mxu1 %v8864_v18  ;;  %v659_v37 = vld [vmem:[%s13887_s1 + $0x1378] sm:$0xff] }
 0x3bb   :  { %v907_v8 = vld [vmem:[%s13887_s1 + $0x1b38] sm:$0xff]  ;;  %v9056_v12 = vcombine.high %v651_v4, %v659_v37  ;;  %v9055_v18 = vcombine.low %v651_v4, %v659_v37 }
 0x3bc   :  { %v915_v9 = vld [vmem:[%s13887_s1 + $0x1b78] sm:$0xff] }
 0x3bd   :  { %7439 = vmatpush2.bf16.msra.mxu0 %v8607_v32  ;;  %7480 = vmatpush2.bf16.msra.mxu1 %v8863_v33  ;;  %v9312_v13 = vcombine.high %v907_v8, %v915_v9  ;;  %v635_v15 = vld [vmem:[%s13887_s1 + $0x12b8] sm:$0xff]  ;;  %v9311_v59 = vcombine.low %v907_v8, %v915_v9 }
 0x3be   :  { %7440 = vmatprep.subr.bf16.mxu0 %v8592_v35  ;;  %7481 = vmatprep.subr.bf16.mxu1 %v8848_v38  ;;  %v643_v21 = vld [vmem:[%s13887_s1 + $0x12f8] sm:$0xff] }
 0x3bf   :  { %v891_v23 = vld [vmem:[%s13887_s1 + $0x1ab8] sm:$0xff]  ;;  %v9039_v44 = vcombine.low %v635_v15, %v643_v21 }
 0x3c0   :  { %v899_v58 = vld [vmem:[%s13887_s1 + $0x1af8] sm:$0xff] }
 0x3c1   :  { %7441 = vmatpush2.bf16.msra.mxu0 %v8591_v48  ;;  %7482 = vmatpush2.bf16.msra.mxu1 %v8847_v52  ;;  %v9296_v33 = vcombine.high %v891_v23, %v899_v58  ;;  %v875_v38 = vld [vmem:[%s13887_s1 + $0x1a38] sm:$0xff] }
 0x3c2   :  { %7442 = vmatprep.subr.bf16.mxu0 %v8576_v56  ;;  %7483 = vmatprep.subr.bf16.mxu1 %v8832_v26  ;;  %v603_v26 = vld [vmem:[%s13887_s1 + $0x11b8] sm:$0xff] }
 0x3c3   :  { %v859_v50 = vld [vmem:[%s13887_s1 + $0x19b8] sm:$0xff] }
 0x3c4   :  { %v867_v57 = vld [vmem:[%s13887_s1 + $0x19f8] sm:$0xff] }
 0x3c5   :  { %7443 = vmatpush2.bf16.msra.mxu0 %v8575_v63  ;;  %7484 = vmatpush2.bf16.msra.mxu1 %v8831_v40  ;;  %v9264_v40 = vcombine.high %v859_v50, %v867_v57  ;;  %v843_v4 = vld [vmem:[%s13887_s1 + $0x1938] sm:$0xff]  ;;  %v9263_v9 = vcombine.low %v859_v50, %v867_v57 }
 0x3c6   :  { %7494 = vmatprep.subr.bf16.mxu0 %v9072_v1  ;;  %7535 = vmatprep.subr.bf16.mxu1 %v9328_v3  ;;  %v587_v1 = vld [vmem:[%s13887_s1 + $0x1138] sm:$0xff] }
 0x3c7   :  { %v595_v3 = vld [vmem:[%s13887_s1 + $0x1178] sm:$0xff] }
 0x3c8   :  { %v7200_v5 = vpop.f32.mrf.mxu0  ;;  %7445 = vmatmul.mubr.bf16.vlgmr.msra.gmra.mxu0 %v10001_v16  ;;  %v7241_v47 = vpop.f32.mrf.mxu1  ;;  %7486 = vmatmul.mubr.bf16.vlgmr.msra.gmra.mxu1 %v10012_v20  ;;  %v9040_v16 = vcombine.high %v635_v15, %v643_v21  ;;  %v627_v20 = vld [vmem:[%s13887_s1 + $0x1278] sm:$0xff] }
 0x3c9   :  { %v7201_v10 = vadd.f32 %v7200_v5, %v12705_v6  ;;  %7495 = vmatpush1.bf16.msra.mxu0 %v9071_v7  ;;  %7536 = vmatpush1.bf16.msra.mxu1 %v9327_v11  ;;  %v619_v6 = vld [vmem:[%s13887_s1 + $0x1238] sm:$0xff]  ;;  %v8992_v7 = vcombine.high %v587_v1, %v595_v3  ;;  %v8991_v5 = vcombine.low %v587_v1, %v595_v3 }
 0x3ca   :  { %v7202_v24 = vpop.f32.mrf.mxu0  ;;  %7496 = vmatprep.subr.bf16.mxu0 %v9056_v12  ;;  %v7243_v32 = vpop.f32.mrf.mxu1  ;;  %7537 = vmatprep.subr.bf16.mxu1 %v9312_v13  ;;  %v9024_v48 = vcombine.high %v619_v6, %v627_v20  ;;  %v9023_v54 = vcombine.low %v619_v6, %v627_v20  ;;  %v851_v37 = vld [vmem:[%s13887_s1 + $0x1978] sm:$0xff] }
 0x3cb   :  { %v12906_v27 = vadd.f32 %v7241_v47, %v7201_v10  ;;  %v7203_v55 = vadd.f32 %v7202_v24, %v12721_v17  ;;  %7526 = vmatprep.mubr.bf16.mxu0 %v10023_v28  ;;  %v883_v17 = vld [vmem:[%s13887_s1 + $0x1a78] sm:$0xff]  ;;  %7567 = vmatprep.mubr.bf16.mxu1 %v10032_v31  ;;  %v9295_v28 = vcombine.low %v891_v23, %v899_v58 }
 0x3cc   :  { %v7204_v35 = vpop.f32.mrf.mxu0  ;;  %v7245_v43 = vpop.f32.mrf.mxu1  ;;  %v9280_v56 = vcombine.high %v875_v38, %v883_v17  ;;  %v611_v31 = vld [vmem:[%s13887_s1 + $0x11f8] sm:$0xff]  ;;  %v9279_v14 = vcombine.low %v875_v38, %v883_v17  ;;  %v9248_v11 = vcombine.high %v843_v4, %v851_v37  ;;  %v9247_v23 = vcombine.low %v843_v4, %v851_v37 }
 0x3cd   :  { %v12923_v42 = vadd.f32 %v7243_v32, %v7203_v55  ;;  %7497 = vmatpush1.bf16.msra.mxu0 %v9055_v18  ;;  %7538 = vmatpush1.bf16.msra.mxu1 %v9311_v59  ;;  %v9008_v63 = vcombine.high %v603_v26, %v611_v31  ;;  %v9007_v8 = vcombine.low %v603_v26, %v611_v31  ;;  %v571_v12 = vld [vmem:[%s13887_s1 + $0x10b8] sm:$0xff] }
 0x3ce   :  { %v7205_v46 = vpop.f32.mrf.mxu0  ;;  %7498 = vmatprep.subr.bf16.mxu0 %v9040_v16  ;;  %v7246_v52 = vpop.f32.mrf.mxu1  ;;  %7539 = vmatprep.subr.bf16.mxu1 %v9296_v33  ;;  %v579_v13 = vld [vmem:[%s13887_s1 + $0x10f8] sm:$0xff] }
 0x3cf   :  { %v827_v15 = vld [vmem:[%s13887_s1 + $0x18b8] sm:$0xff]  ;;  %v8976_v58 = vcombine.high %v571_v12, %v579_v13  ;;  %v8975_v16 = vcombine.low %v571_v12, %v579_v13 }
 0x3d0   :  { %v835_v21 = vld [vmem:[%s13887_s1 + $0x18f8] sm:$0xff] }
 0x3d1   :  { %7499 = vmatpush1.bf16.msra.mxu0 %v9039_v44  ;;  %7540 = vmatpush1.bf16.msra.mxu1 %v9295_v28  ;;  %v9232_v10 = vcombine.high %v827_v15, %v835_v21  ;;  %v555_v47 = vld [vmem:[%s13887_s1 + $0x1038] sm:$0xff]  ;;  %v9231_v55 = vcombine.low %v827_v15, %v835_v21 }
 0x3d2   :  { %7500 = vmatprep.subr.bf16.mxu0 %v9024_v48  ;;  %7541 = vmatprep.subr.bf16.mxu1 %v9280_v56  ;;  %v563_v18 = vld [vmem:[%s13887_s1 + $0x1078] sm:$0xff] }
 0x3d3   :  { %v811_v24 = vld [vmem:[%s13887_s1 + $0x1838] sm:$0xff]  ;;  %v8960_v32 = vcombine.high %v555_v47, %v563_v18  ;;  %v8959_v17 = vcombine.low %v555_v47, %v563_v18 }
 0x3d4   :  { %v819_v59 = vld [vmem:[%s13887_s1 + $0x1878] sm:$0xff] }
 0x3d5   :  { %7501 = vmatpush1.bf16.msra.mxu0 %v9023_v54  ;;  %7542 = vmatpush1.bf16.msra.mxu1 %v9279_v14  ;;  %v9216_v33 = vcombine.high %v811_v24, %v819_v59  ;;  %v795_v6 = vld [vmem:[%s13887_s1 + $0x17b8] sm:$0xff]  ;;  %v9215_v43 = vcombine.low %v811_v24, %v819_v59 }
 0x3d6   :  { %7502 = vmatprep.subr.bf16.mxu0 %v9008_v63  ;;  %7543 = vmatprep.subr.bf16.mxu1 %v9264_v40  ;;  %v803_v20 = vld [vmem:[%s13887_s1 + $0x17f8] sm:$0xff] }
 0x3d7   :  { %v1051_v35 = vld [vmem:[%s13887_s1 + $0x1fb8] sm:$0xff]  ;;  %v9200_v44 = vcombine.high %v795_v6, %v803_v20  ;;  %v9199_v26 = vcombine.low %v795_v6, %v803_v20 }
 0x3d8   :  { %v1059_v38 = vld [vmem:[%s13887_s1 + $0x1ff8] sm:$0xff] }
 0x3d9   :  { %7503 = vmatpush1.bf16.msra.mxu0 %v9007_v8  ;;  %7544 = vmatpush1.bf16.msra.mxu1 %v9263_v9  ;;  %v9456_v46 = vcombine.high %v1051_v35, %v1059_v38  ;;  %v779_v28 = vld [vmem:[%s13887_s1 + $0x1738] sm:$0xff]  ;;  %v9455_v31 = vcombine.low %v1051_v35, %v1059_v38 }
 0x3da   :  { %7504 = vmatprep.subr.bf16.mxu0 %v8992_v7  ;;  %7545 = vmatprep.subr.bf16.mxu1 %v9248_v11  ;;  %v787_v48 = vld [vmem:[%s13887_s1 + $0x1778] sm:$0xff] }
 0x3db   :  { %v1035_v52 = vld [vmem:[%s13887_s1 + $0x1f38] sm:$0xff]  ;;  %v9184_v50 = vcombine.high %v779_v28, %v787_v48  ;;  %v9183_v1 = vcombine.low %v779_v28, %v787_v48 }
 0x3dc   :  { %v1043_v56 = vld [vmem:[%s13887_s1 + $0x1f78] sm:$0xff] }
 0x3dd   :  { %7505 = vmatpush1.bf16.msra.mxu0 %v8991_v5  ;;  %7546 = vmatpush1.bf16.msra.mxu1 %v9247_v23  ;;  %v9440_v57 = vcombine.high %v1035_v52, %v1043_v56  ;;  %v763_v54 = vld [vmem:[%s13887_s1 + $0x16b8] sm:$0xff]  ;;  %v9439_v3 = vcombine.low %v1035_v52, %v1043_v56 }
 0x3de   :  { %7506 = vmatprep.subr.bf16.mxu0 %v8976_v58  ;;  %7547 = vmatprep.subr.bf16.mxu1 %v9232_v10  ;;  %v771_v14 = vld [vmem:[%s13887_s1 + $0x16f8] sm:$0xff] }
 0x3df   :  { %v1019_v63 = vld [vmem:[%s13887_s1 + $0x1eb8] sm:$0xff]  ;;  %v9168_v4 = vcombine.high %v763_v54, %v771_v14  ;;  %v9167_v12 = vcombine.low %v763_v54, %v771_v14 }
 0x3e0   :  { %v1027_v40 = vld [vmem:[%s13887_s1 + $0x1ef8] sm:$0xff] }
 0x3e1   :  { %7507 = vmatpush1.bf16.msra.mxu0 %v8975_v16  ;;  %7548 = vmatpush1.bf16.msra.mxu1 %v9231_v55  ;;  %v9424_v37 = vcombine.high %v1019_v63, %v1027_v40  ;;  %v747_v8 = vld [vmem:[%s13887_s1 + $0x1638] sm:$0xff]  ;;  %v9423_v13 = vcombine.low %v1019_v63, %v1027_v40 }
 0x3e2   :  { %7508 = vmatprep.subr.bf16.mxu0 %v8960_v32  ;;  %7549 = vmatprep.subr.bf16.mxu1 %v9216_v33  ;;  %v755_v9 = vld [vmem:[%s13887_s1 + $0x1678] sm:$0xff] }
 0x3e3   :  { %v1003_v7 = vld [vmem:[%s13887_s1 + $0x1e38] sm:$0xff]  ;;  %v9152_v15 = vcombine.high %v747_v8, %v755_v9  ;;  %v9151_v47 = vcombine.low %v747_v8, %v755_v9  ;;  %v9741_v8 = vld [vmem:[%s13889_s2 + $0x8] sm:$0xff] }
 0x3e4   :  { %v1011_v11 = vld [vmem:[%s13887_s1 + $0x1e78] sm:$0xff]  ;;  %v1115_v9 = vrot.slane %v9741_v8, %v1082_v53  ;;  %v7622_v53 = vld [vmem:[%s13890_s3 + $0xf0] sm:$0xff] }
 0x3e5   :  { %7509 = vmatpush1.bf16.msra.mxu0 %v8959_v17  ;;  %7550 = vmatpush1.bf16.msra.mxu1 %v9215_v43  ;;  %v9408_v21 = vcombine.high %v1003_v7, %v1011_v11  ;;  %v731_v5 = vld [vmem:[%s13887_s1 + $0x15b8] sm:$0xff]  ;;  %v9407_v18 = vcombine.low %v1003_v7, %v1011_v11 }
 0x3e6   :  { %7510 = vmatprep.subr.bf16.mxu0 %v9200_v44  ;;  %7551 = vmatprep.subr.bf16.mxu1 %v9456_v46  ;;  %v739_v23 = vld [vmem:[%s13887_s1 + $0x15f8] sm:$0xff] }
 0x3e7   :  { %v987_v58 = vld [vmem:[%s13887_s1 + $0x1db8] sm:$0xff]  ;;  %v9136_v24 = vcombine.high %v731_v5, %v739_v23  ;;  %v9135_v6 = vcombine.low %v731_v5, %v739_v23 }
 0x3e8   :  { %v995_v10 = vld [vmem:[%s13887_s1 + $0x1df8] sm:$0xff] }
 0x3e9   :  { %7511 = vmatpush2.bf16.msra.mxu0 %v9199_v26  ;;  %7552 = vmatpush2.bf16.msra.mxu1 %v9455_v31  ;;  %v9392_v59 = vcombine.high %v987_v58, %v995_v10  ;;  %v715_v16 = vld [vmem:[%s13887_s1 + $0x1538] sm:$0xff]  ;;  %v9391_v20 = vcombine.low %v987_v58, %v995_v10 }
 0x3ea   :  { %7512 = vmatprep.subr.bf16.mxu0 %v9184_v50  ;;  %7553 = vmatprep.subr.bf16.mxu1 %v9440_v57  ;;  %v723_v55 = vld [vmem:[%s13887_s1 + $0x1578] sm:$0xff] }
 0x3eb   :  { %v971_v32 = vld [vmem:[%s13887_s1 + $0x1d38] sm:$0xff]  ;;  %v9120_v35 = vcombine.high %v715_v16, %v723_v55  ;;  %v9119_v28 = vcombine.low %v715_v16, %v723_v55  ;;  %v7637_v16 = vld [vmem:[%s13890_s3 + $0x168] sm:$0xff]  ;;  %v7620_v55 = vld [vmem:[%s13890_s3 + $0xe0] sm:$0xff] }
 0x3ec   :  { %v979_v33 = vld [vmem:[%s13887_s1 + $0x1d78] sm:$0xff] }
 0x3ed   :  { %7513 = vmatpush2.bf16.msra.mxu0 %v9183_v1  ;;  %7554 = vmatpush2.bf16.msra.mxu1 %v9439_v3  ;;  %v9376_v38 = vcombine.high %v971_v32, %v979_v33  ;;  %v699_v17 = vld [vmem:[%s13887_s1 + $0x14b8] sm:$0xff]  ;;  %v9375_v48 = vcombine.low %v971_v32, %v979_v33 }
 0x3ee   :  { %7514 = vmatprep.subr.bf16.mxu0 %v9168_v4  ;;  %7555 = vmatprep.subr.bf16.mxu1 %v9424_v37  ;;  %v707_v43 = vld [vmem:[%s13887_s1 + $0x14f8] sm:$0xff] }
 0x3ef   :  { %v955_v44 = vld [vmem:[%s13887_s1 + $0x1cb8] sm:$0xff]  ;;  %v9104_v52 = vcombine.high %v699_v17, %v707_v43  ;;  %v9103_v54 = vcombine.low %v699_v17, %v707_v43 }
 0x3f0   :  { %v963_v46 = vld [vmem:[%s13887_s1 + $0x1cf8] sm:$0xff] }
 0x3f1   :  { %7515 = vmatpush2.bf16.msra.mxu0 %v9167_v12  ;;  %7556 = vmatpush2.bf16.msra.mxu1 %v9423_v13  ;;  %v9360_v56 = vcombine.high %v955_v44, %v963_v46  ;;  %v683_v26 = vld [vmem:[%s13887_s1 + $0x1438] sm:$0xff]  ;;  %v9359_v14 = vcombine.low %v955_v44, %v963_v46  ;;  %v1119_v12 = vrot.slane %v9741_v8, %v1086_v61  ;;  %v7577_v13 = vmax.f32 %v10867_v34, 0.0  ;;  %v7654_v61 = vld [vmem:[%s13890_s3 + $0x1f0] sm:$0xff] }
 0x3f2   :  { %7516 = vmatprep.subr.bf16.mxu0 %v9152_v15  ;;  %7557 = vmatprep.subr.bf16.mxu1 %v9408_v21  ;;  %v691_v31 = vld [vmem:[%s13887_s1 + $0x1478] sm:$0xff]  ;;  %v7579_v21 = vmax.f32 %v11277_v29, 0.0  ;;  %v7606_v34 = vld [vmem:[%s13890_s3 + $0x70] sm:$0xff] }
 0x3f3   :  { %v939_v50 = vld [vmem:[%s13887_s1 + $0x1c38] sm:$0xff]  ;;  %v9088_v63 = vcombine.high %v683_v26, %v691_v31  ;;  %v9087_v1 = vcombine.low %v683_v26, %v691_v31  ;;  %v7638_v29 = vld [vmem:[%s13890_s3 + $0x170] sm:$0xff]  ;;  %v7617_v31 = vld [vmem:[%s13890_s3 + $0xc8] sm:$0xff] }
 0x3f4   :  { %v947_v57 = vld [vmem:[%s13887_s1 + $0x1c78] sm:$0xff]  ;;  %v7634_v26 = vld [vmem:[%s13890_s3 + $0x150] sm:$0xff] }
 0x3f5   :  { %7517 = vmatpush2.bf16.msra.mxu0 %v9151_v47  ;;  %7558 = vmatpush2.bf16.msra.mxu1 %v9407_v18  ;;  %v9344_v40 = vcombine.high %v939_v50, %v947_v57  ;;  %v9343_v3 = vcombine.low %v939_v50, %v947_v57  ;;  %v7623_v4 = vld [vmem:[%s13890_s3 + $0xf8] sm:$0xff]  ;;  %v7653_v18 = vld [vmem:[%s13890_s3 + $0x1e8] sm:$0xff] }
 0x3f6   :  { %7518 = vmatprep.subr.bf16.mxu0 %v9136_v24  ;;  %7559 = vmatprep.subr.bf16.mxu1 %v9392_v59  ;;  %v7655_v37 = vld [vmem:[%s13890_s3 + $0x1f8] sm:$0xff]  ;;  %v7605_v24 = vld [vmem:[%s13890_s3 + $0x68] sm:$0xff] }
 0x3f7   :  { %v7607_v7 = vld [vmem:[%s13890_s3 + $0x78] sm:$0xff]  ;;  %v7649_v50 = vld [vmem:[%s13890_s3 + $0x1c8] sm:$0xff] }
 0x3f8   :  { %v7639_v11 = vld [vmem:[%s13890_s3 + $0x178] sm:$0xff]  ;;  %v7601_v57 = vld [vmem:[%s13890_s3 + $0x48] sm:$0xff] }
 0x3f9   :  { %7519 = vmatpush2.bf16.msra.mxu0 %v9135_v6  ;;  %7560 = vmatpush2.bf16.msra.mxu1 %v9391_v20  ;;  %v7652_v6 = vld [vmem:[%s13890_s3 + $0x1e0] sm:$0xff]  ;;  %v7619_v17 = vld [vmem:[%s13890_s3 + $0xd8] sm:$0xff] }
 0x3fa   :  { %7520 = vmatprep.subr.bf16.mxu0 %v9120_v35  ;;  %7561 = vmatprep.subr.bf16.mxu1 %v9376_v38  ;;  %v7604_v20 = vld [vmem:[%s13890_s3 + $0x60] sm:$0xff]  ;;  %v7651_v44 = vld [vmem:[%s13890_s3 + $0x1d8] sm:$0xff] }
 0x3fb   :  { %v7636_v38 = vld [vmem:[%s13890_s3 + $0x160] sm:$0xff]  ;;  %v7603_v46 = vld [vmem:[%s13890_s3 + $0x58] sm:$0xff] }
 0x3fc   :  { %v7631_v8 = vld [vmem:[%s13890_s3 + $0x138] sm:$0xff] }
 0x3fd   :  { %7521 = vmatpush2.bf16.msra.mxu0 %v9119_v28  ;;  %7562 = vmatpush2.bf16.msra.mxu1 %v9375_v48  ;;  %v7635_v28 = vld [vmem:[%s13890_s3 + $0x158] sm:$0xff]  ;;  %v7618_v48 = vld [vmem:[%s13890_s3 + $0xd0] sm:$0xff] }
 0x3fe   :  { %7522 = vmatprep.subr.bf16.mxu0 %v9104_v52  ;;  %7563 = vmatprep.subr.bf16.mxu1 %v9360_v56  ;;  %v7650_v52 = vld [vmem:[%s13890_s3 + $0x1d0] sm:$0xff] }
 0x3ff   :  { %v7602_v56 = vld [vmem:[%s13890_s3 + $0x50] sm:$0xff] }
 0x401   :  { %7523 = vmatpush2.bf16.msra.mxu0 %v9103_v54  ;;  %7564 = vmatpush2.bf16.msra.mxu1 %v9359_v14  ;;  %v7633_v54 = vld [vmem:[%s13890_s3 + $0x148] sm:$0xff]  ;;  %v7616_v14 = vld [vmem:[%s13890_s3 + $0xc0] sm:$0xff] }
 0x402   :  { %7524 = vmatprep.subr.bf16.mxu0 %v9088_v63  ;;  %7565 = vmatprep.subr.bf16.mxu1 %v9344_v40  ;;  %v7648_v63 = vld [vmem:[%s13890_s3 + $0x1c0] sm:$0xff] }
 0x403   :  { %v7600_v40 = vld [vmem:[%s13890_s3 + $0x40] sm:$0xff] }
 0x405   :  { %7525 = vmatpush2.bf16.msra.mxu0 %v9087_v1  ;;  %7566 = vmatpush2.bf16.msra.mxu1 %v9343_v3  ;;  %v7632_v1 = vld [vmem:[%s13890_s3 + $0x140] sm:$0xff]  ;;  %v7615_v3 = vld [vmem:[%s13890_s3 + $0xb8] sm:$0xff] }
 0x406   :  { %9458 = vmatprep.subr.mxu0 %v7623_v4  ;;  %9493 = vmatprep.subr.mxu1 %v7655_v37  ;;  %v7647_v4 = vld [vmem:[%s13890_s3 + $0x1b8] sm:$0xff] }
 0x407   :  { %v7599_v37 = vld [vmem:[%s13890_s3 + $0x38] sm:$0xff] }
 0x408   :  { %v7282_v15 = vpop.f32.mrf.mxu0  ;;  %7527 = vmatmul.mubr.bf16.vlgmr.msra.gmra.mxu0 %v10217_v36  ;;  %v7323_v23 = vpop.f32.mrf.mxu1  ;;  %7568 = vmatmul.mubr.bf16.vlgmr.msra.gmra.mxu1 %v10225_v39  ;;  %v7621_v39 = vld [vmem:[%s13890_s3 + $0xe8] sm:$0xff] }
 0x409   :  { %v7283_v5 = vadd.f32 %v7282_v15, %v1115_v9  ;;  %9459 = vmatpush3.msra.mxu0 %v7607_v7  ;;  %7919 = vmatprep.mubr.f32.mxu0 %v7577_v13  ;;  %v7614_v9 = vld [vmem:[%s13890_s3 + $0xb0] sm:$0xff]  ;;  %v7613_v13 = vld [vmem:[%s13890_s3 + $0xa8] sm:$0xff] }
 0x40a   :  { %9494 = vmatpush3.msra.mxu1 %v7639_v11  ;;  %v7284_v36 = vpop.f32.mrf.mxu0  ;;  %7989 = vmatprep.mubr.f32.mxu1 %v7579_v21  ;;  %v7325_v47 = vpop.f32.mrf.mxu1  ;;  %v7646_v7 = vld [vmem:[%s13890_s3 + $0x1b0] sm:$0xff]  ;;  %v7645_v15 = vld [vmem:[%s13890_s3 + $0x1a8] sm:$0xff] }
 0x40b   :  { %v13107_v58 = vadd.f32 %v7323_v23, %v7283_v5  ;;  %v7285_v10 = vadd.f32 %v7284_v36, %v1119_v12  ;;  %9460 = vmatprep.subr.mxu0 %v7622_v53  ;;  %9495 = vmatprep.subr.mxu1 %v7654_v61  ;;  %v7598_v11 = vld [vmem:[%s13890_s3 + $0x30] sm:$0xff]  ;;  %v7597_v53 = vld [vmem:[%s13890_s3 + $0x28] sm:$0xff]  ;;  %v7612_v5 = vld [vmem:[%s13890_s3 + $0xa0] sm:$0xff] }
 0x40c   :  { %9461 = vmatpush3.msra.mxu0 %v7606_v34  ;;  %v7286_v59 = vpop.f32.mrf.mxu0  ;;  %9496 = vmatpush3.msra.mxu1 %v7638_v29  ;;  %v7327_v33 = vpop.f32.mrf.mxu1  ;;  %v7630_v12 = vld [vmem:[%s13890_s3 + $0x130] sm:$0xff]  ;;  %v7629_v21 = vld [vmem:[%s13890_s3 + $0x128] sm:$0xff]  ;;  %v7644_v23 = vld [vmem:[%s13890_s3 + $0x1a0] sm:$0xff] }
 0x40d   :  { %v13121_v32 = vadd.f32 %v7325_v47, %v7285_v10  ;;  %9462 = vmatprep.subr.mxu0 %v7621_v39  ;;  %9497 = vmatprep.subr.mxu1 %v7653_v18  ;;  %v7596_v61 = vld [vmem:[%s13890_s3 + $0x20] sm:$0xff]  ;;  %v7611_v36 = vld [vmem:[%s13890_s3 + $0x98] sm:$0xff]  ;;  %v7610_v47 = vld [vmem:[%s13890_s3 + $0x90] sm:$0xff] }
 0x40e   :  { %9463 = vmatpush3.msra.mxu0 %v7605_v24  ;;  %v7287_v35 = vpop.f32.mrf.mxu0  ;;  %9498 = vmatpush3.msra.mxu1 %v7637_v16  ;;  %v7328_v43 = vpop.f32.mrf.mxu1  ;;  %v7628_v34 = vld [vmem:[%s13890_s3 + $0x120] sm:$0xff]  ;;  %v7643_v29 = vld [vmem:[%s13890_s3 + $0x198] sm:$0xff]  ;;  %v7642_v18 = vld [vmem:[%s13890_s3 + $0x190] sm:$0xff] }
 0x40f   :  { %9464 = vmatprep.subr.mxu0 %v7620_v55  ;;  %9499 = vmatprep.subr.mxu1 %v7652_v6  ;;  %v7595_v39 = vld [vmem:[%s13890_s3 + $0x18] sm:$0xff]  ;;  %v7594_v24 = vld [vmem:[%s13890_s3 + $0x10] sm:$0xff]  ;;  %v7609_v16 = vld [vmem:[%s13890_s3 + $0x88] sm:$0xff]  ;;  %v7576_v43 = vmax.f32 %v10850_v25, 0.0 }
 0x410   :  { %9465 = vmatpush3.msra.mxu0 %v7604_v20  ;;  %9500 = vmatpush3.msra.mxu1 %v7636_v38  ;;  %v7627_v10 = vld [vmem:[%s13890_s3 + $0x118] sm:$0xff]  ;;  %v7626_v59 = vld [vmem:[%s13890_s3 + $0x110] sm:$0xff]  ;;  %v7641_v55 = vld [vmem:[%s13890_s3 + $0x188] sm:$0xff] }
 0x411   :  { %9466 = vmatprep.subr.mxu0 %v7619_v17  ;;  %9501 = vmatprep.subr.mxu1 %v7651_v44  ;;  %v7593_v33 = vld [vmem:[%s13890_s3 + $0x8] sm:$0xff]  ;;  %v7608_v20 = vld [vmem:[%s13890_s3 + $0x80] sm:$0xff]  ;;  %v7687_v44 = vld [vmem:[%s13890_s3 + $0x2f8] sm:$0xff] }
 0x412   :  { %9467 = vmatpush3.msra.mxu0 %v7603_v46  ;;  %9502 = vmatpush3.msra.mxu1 %v7635_v28  ;;  %v7625_v6 = vld [vmem:[%s13890_s3 + $0x108] sm:$0xff]  ;;  %v7640_v35 = vld [vmem:[%s13890_s3 + $0x180] sm:$0xff]  ;;  %v7578_v46 = vmax.f32 %v11260_v19, 0.0  ;;  %v7719_v28 = vld [vmem:[%s13890_s3 + $0x3f8] sm:$0xff] }
 0x413   :  { %9468 = vmatprep.subr.mxu0 %v7618_v48  ;;  %9503 = vmatprep.subr.mxu1 %v7650_v52  ;;  %v7592_v38 = vld [vmem:[%s13890_s3] sm:$0xff]  ;;  %v7671_v48 = vld [vmem:[%s13890_s3 + $0x278] sm:$0xff]  ;;  %v7581_v52 = vmax.f32 %v11692_v0, 0.0  ;;  %v7686_v19 = vld [vmem:[%s13890_s3 + $0x2f0] sm:$0xff] }
 0x414   :  { %9469 = vmatpush3.msra.mxu0 %v7602_v56  ;;  %9504 = vmatpush3.msra.mxu1 %v7634_v26  ;;  %v7624_v17 = vld [vmem:[%s13890_s3 + $0x100] sm:$0xff]  ;;  %v7703_v25 = vld [vmem:[%s13890_s3 + $0x378] sm:$0xff]  ;;  %v7583_v56 = vmax.f32 %v12102_v2, 0.0  ;;  %v7718_v26 = vld [vmem:[%s13890_s3 + $0x3f0] sm:$0xff] }
 0x415   :  { %9470 = vmatprep.subr.mxu0 %v7617_v31  ;;  %9505 = vmatprep.subr.mxu1 %v7649_v50  ;;  %v7670_v31 = vld [vmem:[%s13890_s3 + $0x270] sm:$0xff]  ;;  %v7685_v2 = vld [vmem:[%s13890_s3 + $0x2e8] sm:$0xff] }
 0x416   :  { %9471 = vmatpush3.msra.mxu0 %v7601_v57  ;;  %9506 = vmatpush3.msra.mxu1 %v7633_v54  ;;  %v7702_v0 = vld [vmem:[%s13890_s3 + $0x370] sm:$0xff]  ;;  %v7717_v50 = vld [vmem:[%s13890_s3 + $0x3e8] sm:$0xff] }
 0x417   :  { %9472 = vmatprep.subr.mxu0 %v7616_v14  ;;  %9507 = vmatprep.subr.mxu1 %v7648_v63  ;;  %v7669_v57 = vld [vmem:[%s13890_s3 + $0x268] sm:$0xff]  ;;  %v7684_v14 = vld [vmem:[%s13890_s3 + $0x2e0] sm:$0xff] }
 0x418   :  { %9473 = vmatpush3.msra.mxu0 %v7600_v40  ;;  %9508 = vmatpush3.msra.mxu1 %v7632_v1  ;;  %v7701_v54 = vld [vmem:[%s13890_s3 + $0x368] sm:$0xff]  ;;  %v7716_v63 = vld [vmem:[%s13890_s3 + $0x3e0] sm:$0xff] }
 0x419   :  { %9474 = vmatprep.subr.mxu0 %v7615_v3  ;;  %9509 = vmatprep.subr.mxu1 %v7647_v4  ;;  %v7668_v40 = vld [vmem:[%s13890_s3 + $0x260] sm:$0xff]  ;;  %v7683_v3 = vld [vmem:[%s13890_s3 + $0x2d8] sm:$0xff] }
 0x41a   :  { %9475 = vmatpush3.msra.mxu0 %v7599_v37  ;;  %9510 = vmatpush3.msra.mxu1 %v7631_v8  ;;  %v7700_v1 = vld [vmem:[%s13890_s3 + $0x360] sm:$0xff]  ;;  %v7715_v4 = vld [vmem:[%s13890_s3 + $0x3d8] sm:$0xff] }
 0x41b   :  { %9476 = vmatprep.subr.mxu0 %v7614_v9  ;;  %9511 = vmatprep.subr.mxu1 %v7646_v7  ;;  %v7667_v37 = vld [vmem:[%s13890_s3 + $0x258] sm:$0xff]  ;;  %v7682_v9 = vld [vmem:[%s13890_s3 + $0x2d0] sm:$0xff] }
 0x41c   :  { %9477 = vmatpush3.msra.mxu0 %v7598_v11  ;;  %9512 = vmatpush3.msra.mxu1 %v7630_v12  ;;  %v7699_v8 = vld [vmem:[%s13890_s3 + $0x358] sm:$0xff]  ;;  %v7714_v7 = vld [vmem:[%s13890_s3 + $0x3d0] sm:$0xff] }
 0x41d   :  { %9478 = vmatprep.subr.mxu0 %v7613_v13  ;;  %9513 = vmatprep.subr.mxu1 %v7645_v15  ;;  %v7666_v11 = vld [vmem:[%s13890_s3 + $0x250] sm:$0xff]  ;;  %v7681_v13 = vld [vmem:[%s13890_s3 + $0x2c8] sm:$0xff] }
 0x41e   :  { %9479 = vmatpush3.msra.mxu0 %v7597_v53  ;;  %9514 = vmatpush3.msra.mxu1 %v7629_v21  ;;  %v7698_v12 = vld [vmem:[%s13890_s3 + $0x350] sm:$0xff]  ;;  %v7713_v15 = vld [vmem:[%s13890_s3 + $0x3c8] sm:$0xff] }
 0x41f   :  { %9480 = vmatprep.subr.mxu0 %v7612_v5  ;;  %9515 = vmatprep.subr.mxu1 %v7644_v23  ;;  %v7665_v53 = vld [vmem:[%s13890_s3 + $0x248] sm:$0xff]  ;;  %v7680_v5 = vld [vmem:[%s13890_s3 + $0x2c0] sm:$0xff] }
 0x420   :  { %9481 = vmatpush3.msra.mxu0 %v7596_v61  ;;  %9516 = vmatpush3.msra.mxu1 %v7628_v34  ;;  %v7697_v21 = vld [vmem:[%s13890_s3 + $0x348] sm:$0xff]  ;;  %v7712_v23 = vld [vmem:[%s13890_s3 + $0x3c0] sm:$0xff] }
 0x421   :  { %9482 = vmatprep.subr.mxu0 %v7611_v36  ;;  %9517 = vmatprep.subr.mxu1 %v7643_v29  ;;  %v7664_v61 = vld [vmem:[%s13890_s3 + $0x240] sm:$0xff]  ;;  %v7679_v36 = vld [vmem:[%s13890_s3 + $0x2b8] sm:$0xff] }
 0x422   :  { %9483 = vmatpush3.msra.mxu0 %v7595_v39  ;;  %9518 = vmatpush3.msra.mxu1 %v7627_v10  ;;  %v7696_v34 = vld [vmem:[%s13890_s3 + $0x340] sm:$0xff]  ;;  %v7711_v29 = vld [vmem:[%s13890_s3 + $0x3b8] sm:$0xff] }
 0x423   :  { %9484 = vmatprep.subr.mxu0 %v7610_v47  ;;  %9519 = vmatprep.subr.mxu1 %v7642_v18  ;;  %v7663_v39 = vld [vmem:[%s13890_s3 + $0x238] sm:$0xff]  ;;  %v7678_v47 = vld [vmem:[%s13890_s3 + $0x2b0] sm:$0xff] }
 0x424   :  { %9485 = vmatpush3.msra.mxu0 %v7594_v24  ;;  %9520 = vmatpush3.msra.mxu1 %v7626_v59  ;;  %v7695_v10 = vld [vmem:[%s13890_s3 + $0x338] sm:$0xff]  ;;  %v7710_v18 = vld [vmem:[%s13890_s3 + $0x3b0] sm:$0xff] }
 0x425   :  { %9486 = vmatprep.subr.mxu0 %v7609_v16  ;;  %9521 = vmatprep.subr.mxu1 %v7641_v55  ;;  %v7662_v24 = vld [vmem:[%s13890_s3 + $0x230] sm:$0xff]  ;;  %v7677_v16 = vld [vmem:[%s13890_s3 + $0x2a8] sm:$0xff] }
 0x426   :  { %9487 = vmatpush3.msra.mxu0 %v7593_v33  ;;  %9522 = vmatpush3.msra.mxu1 %v7625_v6  ;;  %v7694_v59 = vld [vmem:[%s13890_s3 + $0x330] sm:$0xff]  ;;  %v7709_v55 = vld [vmem:[%s13890_s3 + $0x3a8] sm:$0xff] }
 0x427   :  { %9488 = vmatprep.subr.mxu0 %v7608_v20  ;;  %9523 = vmatprep.subr.mxu1 %v7640_v35  ;;  %v7661_v33 = vld [vmem:[%s13890_s3 + $0x228] sm:$0xff]  ;;  %v7676_v20 = vld [vmem:[%s13890_s3 + $0x2a0] sm:$0xff] }
 0x428   :  { %9489 = vmatpush3.msra.mxu0 %v7592_v38  ;;  %9524 = vmatpush3.msra.mxu1 %v7624_v17  ;;  %v7693_v6 = vld [vmem:[%s13890_s3 + $0x328] sm:$0xff]  ;;  %v7708_v35 = vld [vmem:[%s13890_s3 + $0x3a0] sm:$0xff] }
 0x429   :  { %7920 = vmatmul.mubr.f32.vlgmr.msra.gmra.mxu0 %v7576_v43  ;;  %7990 = vmatmul.mubr.f32.vlgmr.msra.gmra.mxu1 %v7578_v46  ;;  %v7660_v38 = vld [vmem:[%s13890_s3 + $0x220] sm:$0xff]  ;;  %v7675_v43 = vld [vmem:[%s13890_s3 + $0x298] sm:$0xff] }
 0x42a   :  { %9528 = vmatprep.subr.mxu0 %v7687_v44  ;;  %9563 = vmatprep.subr.mxu1 %v7719_v28  ;;  %v7692_v17 = vld [vmem:[%s13890_s3 + $0x320] sm:$0xff]  ;;  %v7707_v44 = vld [vmem:[%s13890_s3 + $0x398] sm:$0xff] }
 0x42b   :  { %9529 = vmatpush3.msra.mxu0 %v7671_v48  ;;  %8059 = vmatprep.mubr.f32.mxu0 %v7581_v52  ;;  %v7659_v46 = vld [vmem:[%s13890_s3 + $0x218] sm:$0xff]  ;;  %v7674_v48 = vld [vmem:[%s13890_s3 + $0x290] sm:$0xff] }
 0x42c   :  { %9564 = vmatpush3.msra.mxu1 %v7703_v25  ;;  %8129 = vmatprep.mubr.f32.mxu1 %v7583_v56  ;;  %v7691_v28 = vld [vmem:[%s13890_s3 + $0x318] sm:$0xff]  ;;  %v7706_v25 = vld [vmem:[%s13890_s3 + $0x390] sm:$0xff]  ;;  %v7673_v56 = vld [vmem:[%s13890_s3 + $0x288] sm:$0xff] }
 0x42d   :  { %9530 = vmatprep.subr.mxu0 %v7686_v19  ;;  %9565 = vmatprep.subr.mxu1 %v7718_v26  ;;  %v7658_v52 = vld [vmem:[%s13890_s3 + $0x210] sm:$0xff]  ;;  %v7705_v26 = vld [vmem:[%s13890_s3 + $0x388] sm:$0xff] }
 0x42e   :  { %9531 = vmatpush3.msra.mxu0 %v7670_v31  ;;  %9566 = vmatpush3.msra.mxu1 %v7702_v0  ;;  %v7690_v19 = vld [vmem:[%s13890_s3 + $0x310] sm:$0xff]  ;;  %v7657_v31 = vld [vmem:[%s13890_s3 + $0x208] sm:$0xff] }
 0x42f   :  { %9532 = vmatprep.subr.mxu0 %v7685_v2  ;;  %9567 = vmatprep.subr.mxu1 %v7717_v50  ;;  %v7689_v0 = vld [vmem:[%s13890_s3 + $0x308] sm:$0xff]  ;;  %v7672_v2 = vld [vmem:[%s13890_s3 + $0x280] sm:$0xff] }
 0x430   :  { %9533 = vmatpush3.msra.mxu0 %v7669_v57  ;;  %9568 = vmatpush3.msra.mxu1 %v7701_v54  ;;  %v7704_v50 = vld [vmem:[%s13890_s3 + $0x380] sm:$0xff] }
 0x431   :  { %9534 = vmatprep.subr.mxu0 %v7684_v14  ;;  %9569 = vmatprep.subr.mxu1 %v7716_v63  ;;  %v7656_v57 = vld [vmem:[%s13890_s3 + $0x200] sm:$0xff]  ;;  %v7580_v63 = vmax.f32 %v11675_v51, 0.0  ;;  %v7735_v51 = vld [vmem:[%s13890_s3 + $0x478] sm:$0xff] }
 0x432   :  { %9535 = vmatpush3.msra.mxu0 %v7668_v40  ;;  %9570 = vmatpush3.msra.mxu1 %v7700_v1  ;;  %v7688_v54 = vld [vmem:[%s13890_s3 + $0x300] sm:$0xff] }
 0x433   :  { %9536 = vmatprep.subr.mxu0 %v7683_v3  ;;  %9571 = vmatprep.subr.mxu1 %v7715_v4  ;;  %v7751_v3 = vld [vmem:[%s13890_s3 + $0x4f8] sm:$0xff]  ;;  %v7582_v4 = vmax.f32 %v12085_v62, 0.0 }
 0x434   :  { %9537 = vmatpush3.msra.mxu0 %v7667_v37  ;;  %9572 = vmatpush3.msra.mxu1 %v7699_v8  ;;  %v7783_v37 = vld [vmem:[%s13890_s3 + $0x5f8] sm:$0xff] }
 0x435   :  { %9538 = vmatprep.subr.mxu0 %v7682_v9  ;;  %9573 = vmatprep.subr.mxu1 %v7714_v7  ;;  %v7767_v62 = vld [vmem:[%s13890_s3 + $0x578] sm:$0xff]  ;;  %v7585_v7 = vmax.f32 %v12515_v30, 0.0 }
 0x436   :  { %9539 = vmatpush3.msra.mxu0 %v7666_v11  ;;  %9574 = vmatpush3.msra.mxu1 %v7698_v12  ;;  %v7750_v11 = vld [vmem:[%s13890_s3 + $0x4f0] sm:$0xff] }
 0x437   :  { %9540 = vmatprep.subr.mxu0 %v7681_v13  ;;  %9575 = vmatprep.subr.mxu1 %v7713_v15  ;;  %v7587_v13 = vmax.f32 %v12923_v42, 0.0  ;;  %v7782_v15 = vld [vmem:[%s13890_s3 + $0x5f0] sm:$0xff]  ;;  %v7749_v42 = vld [vmem:[%s13890_s3 + $0x4e8] sm:$0xff] }
 0x438   :  { %9541 = vmatpush3.msra.mxu0 %v7665_v53  ;;  %9576 = vmatpush3.msra.mxu1 %v7697_v21  ;;  %v7734_v53 = vld [vmem:[%s13890_s3 + $0x470] sm:$0xff] }
 0x439   :  { %9542 = vmatprep.subr.mxu0 %v7680_v5  ;;  %9577 = vmatprep.subr.mxu1 %v7712_v23  ;;  %v7766_v21 = vld [vmem:[%s13890_s3 + $0x570] sm:$0xff]  ;;  %v7781_v23 = vld [vmem:[%s13890_s3 + $0x5e8] sm:$0xff] }
 0x43a   :  { %9543 = vmatpush3.msra.mxu0 %v7664_v61  ;;  %9578 = vmatpush3.msra.mxu1 %v7696_v34  ;;  %v7733_v61 = vld [vmem:[%s13890_s3 + $0x468] sm:$0xff] }
 0x43b   :  { %9544 = vmatprep.subr.mxu0 %v7679_v36  ;;  %9579 = vmatprep.subr.mxu1 %v7711_v29  ;;  %v7765_v36 = vld [vmem:[%s13890_s3 + $0x568] sm:$0xff]  ;;  %v7748_v29 = vld [vmem:[%s13890_s3 + $0x4e0] sm:$0xff] }
 0x43c   :  { %9545 = vmatpush3.msra.mxu0 %v7663_v39  ;;  %9580 = vmatpush3.msra.mxu1 %v7695_v10  ;;  %v7780_v39 = vld [vmem:[%s13890_s3 + $0x5e0] sm:$0xff] }
 0x43d   :  { %9546 = vmatprep.subr.mxu0 %v7678_v47  ;;  %9581 = vmatprep.subr.mxu1 %v7710_v18  ;;  %v7732_v10 = vld [vmem:[%s13890_s3 + $0x460] sm:$0xff]  ;;  %v7747_v18 = vld [vmem:[%s13890_s3 + $0x4d8] sm:$0xff] }
 0x43e   :  { %9547 = vmatpush3.msra.mxu0 %v7662_v24  ;;  %9582 = vmatpush3.msra.mxu1 %v7694_v59  ;;  %v7764_v47 = vld [vmem:[%s13890_s3 + $0x560] sm:$0xff]  ;;  %v7779_v24 = vld [vmem:[%s13890_s3 + $0x5d8] sm:$0xff] }
 0x43f   :  { %9548 = vmatprep.subr.mxu0 %v7677_v16  ;;  %9583 = vmatprep.subr.mxu1 %v7709_v55  ;;  %v7731_v59 = vld [vmem:[%s13890_s3 + $0x458] sm:$0xff]  ;;  %v7746_v55 = vld [vmem:[%s13890_s3 + $0x4d0] sm:$0xff] }
 0x440   :  { %9549 = vmatpush3.msra.mxu0 %v7661_v33  ;;  %9584 = vmatpush3.msra.mxu1 %v7693_v6  ;;  %v7763_v16 = vld [vmem:[%s13890_s3 + $0x558] sm:$0xff]  ;;  %v7778_v33 = vld [vmem:[%s13890_s3 + $0x5d0] sm:$0xff] }
 0x441   :  { %9550 = vmatprep.subr.mxu0 %v7676_v20  ;;  %9585 = vmatprep.subr.mxu1 %v7708_v35  ;;  %v7730_v6 = vld [vmem:[%s13890_s3 + $0x450] sm:$0xff]  ;;  %v7745_v35 = vld [vmem:[%s13890_s3 + $0x4c8] sm:$0xff] }
 0x442   :  { %9551 = vmatpush3.msra.mxu0 %v7660_v38  ;;  %9586 = vmatpush3.msra.mxu1 %v7692_v17  ;;  %v7762_v20 = vld [vmem:[%s13890_s3 + $0x550] sm:$0xff]  ;;  %v7777_v38 = vld [vmem:[%s13890_s3 + $0x5c8] sm:$0xff] }
 0x443   :  { %9552 = vmatprep.subr.mxu0 %v7675_v43  ;;  %9587 = vmatprep.subr.mxu1 %v7707_v44  ;;  %v7729_v17 = vld [vmem:[%s13890_s3 + $0x448] sm:$0xff]  ;;  %v7744_v44 = vld [vmem:[%s13890_s3 + $0x4c0] sm:$0xff] }
 0x444   :  { %9553 = vmatpush3.msra.mxu0 %v7659_v46  ;;  %9588 = vmatpush3.msra.mxu1 %v7691_v28  ;;  %v7761_v43 = vld [vmem:[%s13890_s3 + $0x548] sm:$0xff]  ;;  %v7776_v46 = vld [vmem:[%s13890_s3 + $0x5c0] sm:$0xff] }
 0x445   :  { %9554 = vmatprep.subr.mxu0 %v7674_v48  ;;  %9589 = vmatprep.subr.mxu1 %v7706_v25  ;;  %v7728_v28 = vld [vmem:[%s13890_s3 + $0x440] sm:$0xff]  ;;  %v7743_v25 = vld [vmem:[%s13890_s3 + $0x4b8] sm:$0xff] }
 0x446   :  { %9555 = vmatpush3.msra.mxu0 %v7658_v52  ;;  %9590 = vmatpush3.msra.mxu1 %v7690_v19  ;;  %v7760_v48 = vld [vmem:[%s13890_s3 + $0x540] sm:$0xff]  ;;  %v7775_v52 = vld [vmem:[%s13890_s3 + $0x5b8] sm:$0xff] }
 0x447   :  { %9556 = vmatprep.subr.mxu0 %v7673_v56  ;;  %9591 = vmatprep.subr.mxu1 %v7705_v26  ;;  %v7727_v19 = vld [vmem:[%s13890_s3 + $0x438] sm:$0xff]  ;;  %v7742_v26 = vld [vmem:[%s13890_s3 + $0x4b0] sm:$0xff] }
 0x448   :  { %9557 = vmatpush3.msra.mxu0 %v7657_v31  ;;  %v7364_v14 = vpop.f32.mrf.mxu0  ;;  %9592 = vmatpush3.msra.mxu1 %v7689_v0  ;;  %v7405_v1 = vpop.f32.mrf.mxu1  ;;  %v7759_v56 = vld [vmem:[%s13890_s3 + $0x538] sm:$0xff]  ;;  %v7774_v31 = vld [vmem:[%s13890_s3 + $0x5b0] sm:$0xff] }
 0x449   :  { %9558 = vmatprep.subr.mxu0 %v7672_v2  ;;  %v7365_v40 = vadd.f32 %v7364_v14, %v13107_v58  ;;  %9593 = vmatprep.subr.mxu1 %v7704_v50  ;;  %v7726_v0 = vld [vmem:[%s13890_s3 + $0x430] sm:$0xff]  ;;  %v7741_v50 = vld [vmem:[%s13890_s3 + $0x4a8] sm:$0xff] }
 0x44a   :  { %9559 = vmatpush3.msra.mxu0 %v7656_v57  ;;  %v13484_v8 = vpop.f32.mrf.mxu0  ;;  %9594 = vmatpush3.msra.mxu1 %v7688_v54  ;;  %v13491_v9 = vpop.f32.mrf.mxu1  ;;  %v7758_v2 = vld [vmem:[%s13890_s3 + $0x530] sm:$0xff]  ;;  %v7773_v57 = vld [vmem:[%s13890_s3 + $0x5a8] sm:$0xff] }
 0x44b   :  { %v13486_v58 = vadd.f32 %v7405_v1, %v7365_v40  ;;  %8060 = vmatmul.mubr.f32.vlgmr.msra.gmra.mxu0 %v7580_v63  ;;  %8130 = vmatmul.mubr.f32.vlgmr.msra.gmra.mxu1 %v7582_v4  ;;  %v7725_v54 = vld [vmem:[%s13890_s3 + $0x428] sm:$0xff]  ;;  %v7740_v63 = vld [vmem:[%s13890_s3 + $0x4a0] sm:$0xff]  ;;  %v7739_v4 = vld [vmem:[%s13890_s3 + $0x498] sm:$0xff] }
 0x44c   :  { %9598 = vmatprep.subr.mxu0 %v7751_v3  ;;  %v7368_v12 = vpop.f32.mrf.mxu0  ;;  %9633 = vmatprep.subr.mxu1 %v7783_v37  ;;  %v7409_v30 = vpop.f32.mrf.mxu1  ;;  %v7757_v14 = vld [vmem:[%s13890_s3 + $0x528] sm:$0xff]  ;;  %v7772_v40 = vld [vmem:[%s13890_s3 + $0x5a0] sm:$0xff]  ;;  %v7771_v37 = vld [vmem:[%s13890_s3 + $0x598] sm:$0xff] }
 0x44d   :  { %9599 = vmatpush3.msra.mxu0 %v7735_v51  ;;  %8199 = vmatprep.mubr.f32.mxu0 %v7585_v7  ;;  %v7724_v1 = vld [vmem:[%s13890_s3 + $0x420] sm:$0xff]  ;;  %v7723_v51 = vld [vmem:[%s13890_s3 + $0x418] sm:$0xff]  ;;  %v7738_v7 = vld [vmem:[%s13890_s3 + $0x490] sm:$0xff] }
 0x44e   :  { %9634 = vmatpush3.msra.mxu1 %v7767_v62  ;;  %v7369_v5 = vpop.f32.mrf.mxu0  ;;  %8269 = vmatprep.mubr.f32.mxu1 %v7587_v13  ;;  %v7410_v34 = vpop.f32.mrf.mxu1  ;;  %v7756_v3 = vld [vmem:[%s13890_s3 + $0x520] sm:$0xff]  ;;  %v7755_v62 = vld [vmem:[%s13890_s3 + $0x518] sm:$0xff]  ;;  %v7770_v12 = vld [vmem:[%s13890_s3 + $0x590] sm:$0xff] }
 0x44f   :  { %9600 = vmatprep.subr.mxu0 %v7750_v11  ;;  %9635 = vmatprep.subr.mxu1 %v7782_v15  ;;  %v7367_v11 = vadd.f32 %v13484_v8, %v13121_v32  ;;  %v7722_v13 = vld [vmem:[%s13890_s3 + $0x410] sm:$0xff]  ;;  %v7737_v32 = vld [vmem:[%s13890_s3 + $0x488] sm:$0xff]  ;;  %v7768_v5 = vld [vmem:[%s13890_s3 + $0x580] sm:$0xff]  ;;  %v7584_v34 = vmax.f32 %v12498_v22, 0.0 }
 0x450   :  { %9601 = vmatpush3.msra.mxu0 %v7734_v53  ;;  %9636 = vmatpush3.msra.mxu1 %v7766_v21  ;;  %v7754_v15 = vld [vmem:[%s13890_s3 + $0x510] sm:$0xff]  ;;  %v7769_v8 = vld [vmem:[%s13890_s3 + $0x588] sm:$0xff]  ;;  %v7736_v21 = vld [vmem:[%s13890_s3 + $0x480] sm:$0xff] }
 0x451   :  { %9602 = vmatprep.subr.mxu0 %v7749_v42  ;;  %9637 = vmatprep.subr.mxu1 %v7781_v23  ;;  %v7721_v53 = vld [vmem:[%s13890_s3 + $0x408] sm:$0xff]  ;;  %v7408_v42 = vadd.f32 %v13491_v9, %v7367_v11  ;;  %v7720_v23 = vld [vmem:[%s13890_s3 + $0x400] sm:$0xff]  ;;  %v7815_v9 = vld [vmem:[%s13890_s3 + $0x6f8] sm:$0xff] }
 0x452   :  { %9603 = vmatpush3.msra.mxu0 %v7733_v61  ;;  %9638 = vmatpush3.msra.mxu1 %v7765_v36  ;;  %v7753_v30 = vld [vmem:[%s13890_s3 + $0x508] sm:$0xff]  ;;  %v7752_v61 = vld [vmem:[%s13890_s3 + $0x500] sm:$0xff]  ;;  %v7586_v36 = vmax.f32 %v12906_v27, 0.0  ;;  %v7814_v22 = vld [vmem:[%s13890_s3 + $0x6f0] sm:$0xff] }
 0x453   :  { %9604 = vmatprep.subr.mxu0 %v7748_v29  ;;  %9639 = vmatprep.subr.mxu1 %v7780_v39  ;;  %v7799_v29 = vld [vmem:[%s13890_s3 + $0x678] sm:$0xff]  ;;  %v7589_v39 = vmax.f32 %v7408_v42, 0.0  ;;  %v7798_v27 = vld [vmem:[%s13890_s3 + $0x670] sm:$0xff]  ;;  %v7837_v11 = vld [vmem:[%s13890_s3 + $0x7a8] sm:$0xff] }
 0x454   :  { %9605 = vmatpush3.msra.mxu0 %v7732_v10  ;;  %9640 = vmatpush3.msra.mxu1 %v7764_v47  ;;  %v7847_v10 = vld [vmem:[%s13890_s3 + $0x7f8] sm:$0xff]  ;;  %v7786_v42 = vld [vmem:[%s13890_s3 + $0x610] sm:$0xff] }
 0x455   :  { %9606 = vmatprep.subr.mxu0 %v7747_v18  ;;  %9641 = vmatprep.subr.mxu1 %v7779_v24  ;;  %v7831_v47 = vld [vmem:[%s13890_s3 + $0x778] sm:$0xff]  ;;  %v7813_v18 = vld [vmem:[%s13890_s3 + $0x6e8] sm:$0xff]  ;;  %v7846_v24 = vld [vmem:[%s13890_s3 + $0x7f0] sm:$0xff] }
 0x456   :  { %9607 = vmatpush3.msra.mxu0 %v7731_v59  ;;  %9642 = vmatpush3.msra.mxu1 %v7763_v16  ;;  %v7797_v59 = vld [vmem:[%s13890_s3 + $0x668] sm:$0xff]  ;;  %v7830_v16 = vld [vmem:[%s13890_s3 + $0x770] sm:$0xff] }
 0x457   :  { %9608 = vmatprep.subr.mxu0 %v7746_v55  ;;  %9643 = vmatprep.subr.mxu1 %v7778_v33  ;;  %v7812_v55 = vld [vmem:[%s13890_s3 + $0x6e0] sm:$0xff]  ;;  %v7845_v33 = vld [vmem:[%s13890_s3 + $0x7e8] sm:$0xff] }
 0x458   :  { %9609 = vmatpush3.msra.mxu0 %v7730_v6  ;;  %9644 = vmatpush3.msra.mxu1 %v7762_v20  ;;  %v7796_v6 = vld [vmem:[%s13890_s3 + $0x660] sm:$0xff]  ;;  %v7829_v20 = vld [vmem:[%s13890_s3 + $0x768] sm:$0xff] }
 0x459   :  { %9610 = vmatprep.subr.mxu0 %v7745_v35  ;;  %9645 = vmatprep.subr.mxu1 %v7777_v38  ;;  %v7811_v35 = vld [vmem:[%s13890_s3 + $0x6d8] sm:$0xff]  ;;  %v7844_v38 = vld [vmem:[%s13890_s3 + $0x7e0] sm:$0xff] }
 0x45a   :  { %9611 = vmatpush3.msra.mxu0 %v7729_v17  ;;  %9646 = vmatpush3.msra.mxu1 %v7761_v43  ;;  %v7795_v17 = vld [vmem:[%s13890_s3 + $0x658] sm:$0xff]  ;;  %v7828_v43 = vld [vmem:[%s13890_s3 + $0x760] sm:$0xff] }
 0x45b   :  { %9612 = vmatprep.subr.mxu0 %v7744_v44  ;;  %9647 = vmatprep.subr.mxu1 %v7776_v46  ;;  %v7810_v44 = vld [vmem:[%s13890_s3 + $0x6d0] sm:$0xff]  ;;  %v7843_v46 = vld [vmem:[%s13890_s3 + $0x7d8] sm:$0xff] }
 0x45c   :  { %9613 = vmatpush3.msra.mxu0 %v7728_v28  ;;  %9648 = vmatpush3.msra.mxu1 %v7760_v48  ;;  %v7794_v28 = vld [vmem:[%s13890_s3 + $0x650] sm:$0xff]  ;;  %v7827_v48 = vld [vmem:[%s13890_s3 + $0x758] sm:$0xff] }
 0x45d   :  { %9614 = vmatprep.subr.mxu0 %v7743_v25  ;;  %9649 = vmatprep.subr.mxu1 %v7775_v52  ;;  %v7809_v25 = vld [vmem:[%s13890_s3 + $0x6c8] sm:$0xff]  ;;  %v7842_v52 = vld [vmem:[%s13890_s3 + $0x7d0] sm:$0xff] }
 0x45e   :  { %9615 = vmatpush3.msra.mxu0 %v7727_v19  ;;  %9650 = vmatpush3.msra.mxu1 %v7759_v56  ;;  %v7793_v19 = vld [vmem:[%s13890_s3 + $0x648] sm:$0xff]  ;;  %v7826_v56 = vld [vmem:[%s13890_s3 + $0x750] sm:$0xff] }
 0x45f   :  { %9616 = vmatprep.subr.mxu0 %v7742_v26  ;;  %9651 = vmatprep.subr.mxu1 %v7774_v31  ;;  %v7808_v26 = vld [vmem:[%s13890_s3 + $0x6c0] sm:$0xff]  ;;  %v7841_v31 = vld [vmem:[%s13890_s3 + $0x7c8] sm:$0xff] }
 0x460   :  { %9617 = vmatpush3.msra.mxu0 %v7726_v0  ;;  %9652 = vmatpush3.msra.mxu1 %v7758_v2  ;;  %v7792_v0 = vld [vmem:[%s13890_s3 + $0x640] sm:$0xff]  ;;  %v7825_v2 = vld [vmem:[%s13890_s3 + $0x748] sm:$0xff] }
 0x461   :  { %9618 = vmatprep.subr.mxu0 %v7741_v50  ;;  %9653 = vmatprep.subr.mxu1 %v7773_v57  ;;  %v7807_v50 = vld [vmem:[%s13890_s3 + $0x6b8] sm:$0xff]  ;;  %v7840_v57 = vld [vmem:[%s13890_s3 + $0x7c0] sm:$0xff] }
 0x462   :  { %9619 = vmatpush3.msra.mxu0 %v7725_v54  ;;  %9654 = vmatpush3.msra.mxu1 %v7757_v14  ;;  %v7791_v54 = vld [vmem:[%s13890_s3 + $0x638] sm:$0xff]  ;;  %v7824_v14 = vld [vmem:[%s13890_s3 + $0x740] sm:$0xff] }
 0x463   :  { %9620 = vmatprep.subr.mxu0 %v7740_v63  ;;  %9655 = vmatprep.subr.mxu1 %v7772_v40  ;;  %v7806_v63 = vld [vmem:[%s13890_s3 + $0x6b0] sm:$0xff]  ;;  %v7839_v40 = vld [vmem:[%s13890_s3 + $0x7b8] sm:$0xff] }
 0x464   :  { %9621 = vmatpush3.msra.mxu0 %v7724_v1  ;;  %9656 = vmatpush3.msra.mxu1 %v7756_v3  ;;  %v7790_v1 = vld [vmem:[%s13890_s3 + $0x630] sm:$0xff]  ;;  %v7823_v3 = vld [vmem:[%s13890_s3 + $0x738] sm:$0xff] }
 0x465   :  { %9622 = vmatprep.subr.mxu0 %v7739_v4  ;;  %9657 = vmatprep.subr.mxu1 %v7771_v37  ;;  %v7805_v4 = vld [vmem:[%s13890_s3 + $0x6a8] sm:$0xff]  ;;  %v7838_v37 = vld [vmem:[%s13890_s3 + $0x7b0] sm:$0xff] }
 0x466   :  { %9623 = vmatpush3.msra.mxu0 %v7723_v51  ;;  %9658 = vmatpush3.msra.mxu1 %v7755_v62  ;;  %v7789_v51 = vld [vmem:[%s13890_s3 + $0x628] sm:$0xff]  ;;  %v7822_v62 = vld [vmem:[%s13890_s3 + $0x730] sm:$0xff] }
 0x467   :  { %9624 = vmatprep.subr.mxu0 %v7738_v7  ;;  %9659 = vmatprep.subr.mxu1 %v7770_v12  ;;  %v7804_v7 = vld [vmem:[%s13890_s3 + $0x6a0] sm:$0xff] }
 0x468   :  { %9625 = vmatpush3.msra.mxu0 %v7722_v13  ;;  %9660 = vmatpush3.msra.mxu1 %v7754_v15  ;;  %v7788_v12 = vld [vmem:[%s13890_s3 + $0x620] sm:$0xff]  ;;  %v7821_v13 = vld [vmem:[%s13890_s3 + $0x728] sm:$0xff]  ;;  %v7803_v15 = vld [vmem:[%s13890_s3 + $0x698] sm:$0xff] }
 0x469   :  { %9626 = vmatprep.subr.mxu0 %v7737_v32  ;;  %9661 = vmatprep.subr.mxu1 %v7769_v8  ;;  %v7836_v32 = vld [vmem:[%s13890_s3 + $0x7a0] sm:$0xff]  ;;  %v7787_v8 = vld [vmem:[%s13890_s3 + $0x618] sm:$0xff] }
 0x46a   :  { %9627 = vmatpush3.msra.mxu0 %v7721_v53  ;;  %9662 = vmatpush3.msra.mxu1 %v7753_v30  ;;  %v7820_v53 = vld [vmem:[%s13890_s3 + $0x720] sm:$0xff]  ;;  %v7802_v30 = vld [vmem:[%s13890_s3 + $0x690] sm:$0xff] }
 0x46b   :  { %9628 = vmatprep.subr.mxu0 %v7736_v21  ;;  %9663 = vmatprep.subr.mxu1 %v7768_v5  ;;  %v7835_v21 = vld [vmem:[%s13890_s3 + $0x798] sm:$0xff] }
 0x46c   :  { %9629 = vmatpush3.msra.mxu0 %v7720_v23  ;;  %9664 = vmatpush3.msra.mxu1 %v7752_v61  ;;  %v7819_v5 = vld [vmem:[%s13890_s3 + $0x718] sm:$0xff]  ;;  %v7801_v23 = vld [vmem:[%s13890_s3 + $0x688] sm:$0xff]  ;;  %v7834_v61 = vld [vmem:[%s13890_s3 + $0x790] sm:$0xff] }
 0x46d   :  { %8200 = vmatmul.mubr.f32.vlgmr.msra.gmra.mxu0 %v7584_v34  ;;  %8270 = vmatmul.mubr.f32.vlgmr.msra.gmra.mxu1 %v7586_v36  ;;  %v7785_v34 = vld [vmem:[%s13890_s3 + $0x608] sm:$0xff]  ;;  %v7818_v36 = vld [vmem:[%s13890_s3 + $0x710] sm:$0xff] }
 0x46e   :  { %9668 = vmatprep.subr.mxu0 %v7815_v9  ;;  %8339 = vmatprep.mubr.f32.mxu0 %v7589_v39 }
 0x46f   :  { %9669 = vmatpush3.msra.mxu0 %v7799_v29  ;;  %9703 = vmatprep.subr.mxu1 %v7847_v10  ;;  %v7800_v29 = vld [vmem:[%s13890_s3 + $0x680] sm:$0xff] }
 0x470   :  { %9670 = vmatprep.subr.mxu0 %v7814_v22  ;;  %9704 = vmatpush3.msra.mxu1 %v7831_v47  ;;  %v7833_v22 = vld [vmem:[%s13890_s3 + $0x788] sm:$0xff]  ;;  %v7784_v10 = vld [vmem:[%s13890_s3 + $0x600] sm:$0xff] }
 0x471   :  { %9671 = vmatpush3.msra.mxu0 %v7798_v27  ;;  %9705 = vmatprep.subr.mxu1 %v7846_v24  ;;  %v7817_v47 = vld [vmem:[%s13890_s3 + $0x708] sm:$0xff]  ;;  %v7832_v24 = vld [vmem:[%s13890_s3 + $0x780] sm:$0xff] }
 0x472   :  { %9672 = vmatprep.subr.mxu0 %v7813_v18  ;;  %9706 = vmatpush3.msra.mxu1 %v7830_v16 }
 0x473   :  { %9673 = vmatpush3.msra.mxu0 %v7797_v59  ;;  %9707 = vmatprep.subr.mxu1 %v7845_v33  ;;  %v7588_v59 = vmax.f32 %v13486_v58, 0.0 }
 0x474   :  { %9674 = vmatprep.subr.mxu0 %v7812_v55  ;;  %9708 = vmatpush3.msra.mxu1 %v7829_v20  ;;  %v7816_v55 = vld [vmem:[%s13890_s3 + $0x700] sm:$0xff] }
 0x475   :  { %9675 = vmatpush3.msra.mxu0 %v7796_v6  ;;  %9709 = vmatprep.subr.mxu1 %v7844_v38 }
 0x476   :  { %9676 = vmatprep.subr.mxu0 %v7811_v35  ;;  %9710 = vmatpush3.msra.mxu1 %v7828_v43  ;;  %v9742_v35 = vld [vmem:[%s13889_s2 + $0x8] sm:$0xff] }
 0x477   :  { %9677 = vmatpush3.msra.mxu0 %v7795_v17  ;;  %9711 = vmatprep.subr.mxu1 %v7843_v46  ;;  %v1123_v58 = vrot.slane %v9742_v35, %v1090_v41  ;;  %v1127_v38 = vrot.slane %v9742_v35, %v1094_v45 }
 0x478   :  { %9678 = vmatprep.subr.mxu0 %v7810_v44  ;;  %9712 = vmatpush3.msra.mxu1 %v7827_v48 }
 0x479   :  { %9679 = vmatpush3.msra.mxu0 %v7794_v28  ;;  %9713 = vmatprep.subr.mxu1 %v7842_v52 }
 0x47a   :  { %9680 = vmatprep.subr.mxu0 %v7809_v25  ;;  %9714 = vmatpush3.msra.mxu1 %v7826_v56 }
 0x47b   :  { %9681 = vmatpush3.msra.mxu0 %v7793_v19  ;;  %9715 = vmatprep.subr.mxu1 %v7841_v31 }
 0x47c   :  { %9682 = vmatprep.subr.mxu0 %v7808_v26  ;;  %9716 = vmatpush3.msra.mxu1 %v7825_v2 }
 0x47d   :  { %9683 = vmatpush3.msra.mxu0 %v7792_v0  ;;  %9717 = vmatprep.subr.mxu1 %v7840_v57 }
 0x47e   :  { %9684 = vmatprep.subr.mxu0 %v7807_v50  ;;  %9718 = vmatpush3.msra.mxu1 %v7824_v14 }
 0x47f   :  { %9685 = vmatpush3.msra.mxu0 %v7791_v54  ;;  %9719 = vmatprep.subr.mxu1 %v7839_v40 }
 0x480   :  { %9686 = vmatprep.subr.mxu0 %v7806_v63  ;;  %9720 = vmatpush3.msra.mxu1 %v7823_v3 }
 0x481   :  { %9687 = vmatpush3.msra.mxu0 %v7790_v1  ;;  %9721 = vmatprep.subr.mxu1 %v7838_v37  ;;  %v9457_v1 = vld [vmem:[%s13891_s4] ss:$0 sm:$0xff] }
 0x482   :  { %9688 = vmatprep.subr.mxu0 %v7805_v4  ;;  %9722 = vmatpush3.msra.mxu1 %v7822_v62 }
 0x483   :  { %9689 = vmatpush3.msra.mxu0 %v7789_v51  ;;  %9723 = vmatprep.subr.mxu1 %v7837_v11 }
 0x484   :  { %9690 = vmatprep.subr.mxu0 %v7804_v7  ;;  %9724 = vmatpush3.msra.mxu1 %v7821_v13 }
 0x485   :  { %9691 = vmatpush3.msra.mxu0 %v7788_v12  ;;  %9725 = vmatprep.subr.mxu1 %v7836_v32 }
 0x486   :  { %9692 = vmatprep.subr.mxu0 %v7803_v15  ;;  %9726 = vmatpush3.msra.mxu1 %v7820_v53 }
 0x487   :  { %9693 = vmatpush3.msra.mxu0 %v7787_v8  ;;  %9727 = vmatprep.subr.mxu1 %v7835_v21 }
 0x488   :  { %9694 = vmatprep.subr.mxu0 %v7802_v30  ;;  %v7446_v9 = vpop.f32.mrf.mxu0  ;;  %v7487_v39 = vpop.f32.mrf.mxu1  ;;  %9728 = vmatpush3.msra.mxu1 %v7819_v5 }
 0x489   :  { %9695 = vmatpush3.msra.mxu0 %v7786_v42  ;;  %9729 = vmatprep.subr.mxu1 %v7834_v61  ;;  %v7447_v17 = vadd.f32 %v7446_v9, %v1123_v58 }
 0x48a   :  { %9696 = vmatprep.subr.mxu0 %v7801_v23  ;;  %v7448_v27 = vpop.f32.mrf.mxu0  ;;  %v7489_v18 = vpop.f32.mrf.mxu1  ;;  %9730 = vmatpush3.msra.mxu1 %v7818_v36  ;;  %v8416_v36 = vand.u32 127, %v1064_v49 }
 0x48b   :  { %9697 = vmatpush3.msra.mxu0 %v7785_v34  ;;  %9731 = vmatprep.subr.mxu1 %v7833_v22  ;;  %v7449_v43 = vadd.f32 %v7448_v27, %v1127_v38  ;;  %v7488_v44 = vadd.f32 %v7487_v39, %v7447_v17 }
 0x48c   :  { %9698 = vmatprep.subr.mxu0 %v7800_v29  ;;  %v7450_v16 = vpop.f32.mrf.mxu0  ;;  %v7491_v33 = vpop.f32.mrf.mxu1  ;;  %9732 = vmatpush3.msra.mxu1 %v7817_v47  ;;  %vm8417_vm0 = vcmp.ge.s32.totalorder %v8416_v36, 3  ;;  %vm8418_vm1 = vcmp.lt.s32.totalorder %v8416_v36, 7 }
 0x48d   :  { %9699 = vmatpush3.msra.mxu0 %v7784_v10  ;;  %9733 = vmatprep.subr.mxu1 %v7832_v24  ;;  %v7490_v28 = vadd.f32 %v7489_v18, %v7449_v43  ;;  %vm8419_vm2 = vmand %vm8417_vm0, %vm8418_vm1 }
 0x48e   :  { %8340 = vmatmul.mubr.f32.vlgmr.msra.gmra.mxu0 %v7588_v59  ;;  %v7451_v6 = vpop.f32.mrf.mxu0  ;;  %v7492_v20 = vpop.f32.mrf.mxu1  ;;  %9734 = vmatpush3.msra.mxu1 %v7816_v55 }
 0x4c8   :  { %v7528_v46 = vpop.f32.mrf.mxu0  ;;  %v7569_v25 = vpop.f32.mrf.mxu1 }
 0x4c9   :  { %v7529_v48 = vadd.f32 %v7528_v46, %v7488_v44 }
 0x4ca   :  { %v7530_v52 = vpop.f32.mrf.mxu0  ;;  %v7571_v56 = vpop.f32.mrf.mxu1 }
 0x4cb   :  { %v7531_v19 = vadd.f32 %v7530_v52, %v7490_v28  ;;  %v7570_v26 = vadd.f32 %v7569_v25, %v7529_v48 }
 0x4cc   :  { %v7532_v31 = vpop.f32.mrf.mxu0  ;;  %v7573_v2 = vpop.f32.mrf.mxu1 }
 0x4cd   :  { %v7572_v0 = vadd.f32 %v7571_v56, %v7531_v19  ;;  %v7590_v54 = vmax.f32 %v7570_v26, 0.0 }
 0x4ce   :  { %v7533_v50 = vpop.f32.mrf.mxu0  ;;  %v7574_v41 = vpop.f32.mrf.mxu1 }
 0x4cf   :  { %v7591_v57 = vmax.f32 %v7572_v0, 0.0 }
 0x4d1   :  { %8409 = vmatprep.mubr.f32.mxu1 %v7591_v57 }
 0x4d2   :  { %8410 = vmatmul.mubr.f32.vlgmr.msra.gmra.mxu1 %v7590_v54 }
 0x4e9   :  { %v9490_v60 = vpop.f32.mrf.mxu0  ;;  %v9525_v14 = vpop.f32.mrf.mxu1 }
 0x4eb   :  { %v9491_v45 = vpop.f32.mrf.mxu0  ;;  %v9526_v3 = vpop.f32.mrf.mxu1 }
 0x4ec   :  { %v9492_v40 = vadd.f32 %v9491_v45, %v9490_v60  ;;  %v9527_v7 = vadd.f32 %v9526_v3, %v9525_v14 }
 0x4ee   :  { %v7922_v37 = vadd.f32 %v9492_v40, %v9457_v1 }
 0x4f0   :  { %v7992_v12 = vadd.f32 %v9527_v7, %v7922_v37 }
 0x50b   :  { %v9560_v63 = vpop.f32.mrf.mxu0  ;;  %v9595_v51 = vpop.f32.mrf.mxu1 }
 0x50d   :  { %v9561_v4 = vpop.f32.mrf.mxu0  ;;  %v9596_v13 = vpop.f32.mrf.mxu1 }
 0x50e   :  { %v9562_v11 = vadd.f32 %v9561_v4, %v9560_v63  ;;  %v9597_v30 = vadd.f32 %v9596_v13, %v9595_v51 }
 0x510   :  { %v8062_v32 = vadd.f32 %v9562_v11, %v7992_v12 }
 0x512   :  { %v8132_v42 = vadd.f32 %v9597_v30, %v8062_v32 }
 0x52d   :  { %v9630_v62 = vpop.f32.mrf.mxu0  ;;  %v9665_v8 = vpop.f32.mrf.mxu1 }
 0x52f   :  { %v9631_v15 = vpop.f32.mrf.mxu0  ;;  %v9666_v5 = vpop.f32.mrf.mxu1 }
 0x530   :  { %v9632_v21 = vadd.f32 %v9631_v15, %v9630_v62  ;;  %v9667_v34 = vadd.f32 %v9666_v5, %v9665_v8 }
 0x532   :  { %v8202_v61 = vadd.f32 %v9632_v21, %v8132_v42 }
 0x534   :  { %v8272_v39 = vadd.f32 %v9667_v34, %v8202_v61 }
 0x54e   :  { %v9700_v53 = vpop.f32.mrf.mxu0 }
 0x550   :  { %v9701_v23 = vpop.f32.mrf.mxu0 }
 0x551   :  { %v9702_v9 = vadd.f32 %v9701_v23, %v9700_v53 }
 0x553   :  { %v8342_v10 = vadd.f32 %v9702_v9, %v8272_v39 }
 0x592   :  { %v9735_v29 = vpop.f32.mrf.mxu1 }
 0x594   :  { %v9736_v22 = vpop.f32.mrf.mxu1 }
 0x595   :  { %v9737_v27 = vadd.f32 %v9736_v22, %v9735_v29 }
 0x597   :  { %v8412_v47 = vadd.f32 %v9737_v27, %v8342_v10 }
 0x599   :  { %v8420_v18 = vmul.f32 %v8412_v47, %v8412_v47 }
 0x59b   :  { %v8421_v24 = vsel %vm8419_vm2, %v8420_v18, 0.0 }
 0x59c   :  { %8422 = vadd.xlane.f32.xlu0 %v8421_v24 }
 0x625   :  { %v8423_v59 = vpop.xlane.xlu0 %8422 }
 0x626   :  { %v8424_v16 = vmax.f32 %v8423_v59, 1e-24 }
 0x628   :  { %9738 = vrsqrt.f32 %v8424_v16 }
 0x635   :  { %v9739_v55 = vpop.eup %9738 }
 0x636   :  { %v8426_v33 = vmul.f32 %v9739_v55, %v8412_v47 }
 0x638   :  { %v8427_v6 = vsel %vm8419_vm2, %v8426_v33, %v8412_v47 }
 0x639   :  { %8428 = vst [vmem:[%s13892_s5] sm:$0xff] %v8427_v6 }

</bundles_post_ra>
